<compile_context>
chip_gen: v7x
topology: tpu7x:2x2x1
jax: 0.10.0
libtpu: 0.0.40
codegen_flags: <defaults>
</compile_context>

<pallas_src>
import functools

import jax
import jax.numpy as jnp
from jax.experimental import pallas as pl
from jax.experimental.pallas import tpu as pltpu

IN_FEATURES = 1032
HIDDEN = 2000
TN = 512  # weight column-chunk width (multiple of 128); 2048 / 512 = 4 chunks per layer


def _round_up(x, m):
    return (x + m - 1) // m * m


def _fused_mlp_kernel(x_ref, w1_ref, b1_ref, w2_ref, b2_ref, w3_ref, b3_ref,
                      o_ref, h1_ref, acc_ref, *, tn):
    p = pl.program_id(0)            # 0: layer 1, 1: layer 2 + fused layer 3
    j = pl.program_id(1)            # column-chunk index
    last = pl.num_programs(1) - 1
    col = pl.multiple_of(j * tn, tn)

    @pl.when(jnp.logical_and(p == 0, j == 0))
    def _():
        acc_ref[...] = jnp.zeros_like(acc_ref)

    @pl.when(p == 0)
    def _():
        # h1[:, chunk j] = relu(x @ W1[:, chunk j] + b1[chunk j])   (kept in VMEM scratch)
        h1 = jnp.dot(x_ref[...], w1_ref[...], preferred_element_type=jnp.float32)
        h1_ref[:, pl.ds(col, tn)] = jnp.maximum(h1 + b1_ref[...], 0.0)

    @pl.when(p == 1)
    def _():
        # h2 chunk lives only in vregs; layer-3 partial product fused per chunk:
        #   acc += sum(relu(h1 @ W2[:, chunk] + b2[chunk]) * W3[chunk], axis=-1)
        h2 = jnp.maximum(
            jnp.dot(h1_ref[...], w2_ref[...], preferred_element_type=jnp.float32)
            + b2_ref[...], 0.0)
        acc_ref[...] += jnp.sum(h2 * w3_ref[...], axis=-1, keepdims=True)

    @pl.when(jnp.logical_and(p == 1, j == last))
    def _():
        o_ref[...] = (acc_ref[...] + b3_ref[...]).astype(o_ref.dtype)


def regression_model_forward(x, padded_params, *, tn=TN):
    """x: (batch, 1032) float32; padded_params from pad_params(). Returns (batch, 1)."""
    w1, b1, w2, b2, w3t, b3 = padded_params
    B = x.shape[0]
    K1p, Hp = w1.shape
    assert Hp % tn == 0
    nc = Hp // tn

    # Tiny one-off pad of the activation feature dim (~36 KB); weights were padded at init.
    if x.shape[1] < K1p:
        x = jnp.pad(x, ((0, 0), (0, K1p - x.shape[1])))

    kernel = functools.partial(_fused_mlp_kernel, tn=tn)

    return pl.pallas_call(
        kernel,
        out_shape=jax.ShapeDtypeStruct((B, 1), jnp.float32),
        grid_spec=pltpu.PrefetchScalarGridSpec(
            num_scalar_prefetch=0,
            grid=(2, nc),
            in_specs=[
                # activations: resident for the whole kernel
                pl.BlockSpec((B, K1p), lambda p, j: (0, 0)),
                # W1 / b1: stream chunks during phase 0; park on the last chunk during phase 1
                pl.BlockSpec((K1p, tn), lambda p, j: (0, j * (1 - p) + (nc - 1) * p)),
                pl.BlockSpec((1, tn), lambda p, j: (0, j * (1 - p) + (nc - 1) * p)),
                # W2 / b2: park on chunk 0 during phase 0 (early prefetch), stream during phase 1
                pl.BlockSpec((Hp, tn), lambda p, j: (0, j * p)),
                pl.BlockSpec((1, tn), lambda p, j: (0, j * p)),
                # W3 row-vector slice: streams in lockstep with W2's chunks
                pl.BlockSpec((1, tn), lambda p, j: (0, j * p)),
                # b3: resident
                pl.BlockSpec((1, 1), lambda p, j: (0, 0)),
            ],
            out_specs=pl.BlockSpec((B, 1), lambda p, j: (0, 0)),
            scratch_shapes=[
                pltpu.VMEM((B, Hp), jnp.float32),   # h1 (kept on-chip across phases)
                pltpu.VMEM((B, 1), jnp.float32),    # layer-3 accumulator
            ],
        ),
        compiler_params=pltpu.CompilerParams(
            # Phase 1 depends on all of phase 0 through VMEM scratch -> both axes sequential.
            dimension_semantics=("arbitrary", "arbitrary"),
            vmem_limit_bytes=48 * 1024 * 1024,
        ),
    )(x, w1, b1, w2, b2, w3t, b3)


def init_params(key):
    """PyTorch-default-style uniform(-1/sqrt(fan_in), 1/sqrt(fan_in)) init, deterministic."""
    dims = [(IN_FEATURES, HIDDEN), (HIDDEN, HIDDEN), (HIDDEN, 1)]
    params = []
    for fan_in, fan_out in dims:
        key, kw, kb = jax.random.split(key, 3)
        bound = 1.0 / jnp.sqrt(fan_in)
        w = jax.random.uniform(kw, (fan_in, fan_out), jnp.float32, -bound, bound)
        b = jax.random.uniform(kb, (fan_out,), jnp.float32, -bound, bound)
        params.append((w, b))
    return params


def pad_params(params, *, tn=TN):
    """One-time (outside jit) zero-padding of weights to lane/tile-friendly shapes.

    Exact: padded h1/h2 features are relu(0 + 0) = 0 and the padded rows/cols of W2/W3
    only ever multiply those zeros.
    """
    (w1, b1), (w2, b2), (w3, b3) = params
    K1, H = w1.shape
    K1p = _round_up(K1, 128)
    Hp = _round_up(H, max(tn, 128))
    w1p = jnp.zeros((K1p, Hp), w1.dtype).at[:K1, :H].set(w1)
    b1p = jnp.zeros((1, Hp), b1.dtype).at[0, :H].set(b1)
    w2p = jnp.zeros((Hp, Hp), w2.dtype).at[:H, :H].set(w2)
    b2p = jnp.zeros((1, Hp), b2.dtype).at[0, :H].set(b2)
    # W3 stored transposed as a (1, Hp) row vector (layer 3 becomes a per-chunk lane reduction).
    w3p = jnp.zeros((1, Hp), w3.dtype).at[0, :H].set(w3[:, 0])
    b3p = b3.reshape(1, 1)
    return (w1p, b1p, w2p, b2p, w3p, b3p)


if __name__ == "__main__":
    key = jax.random.PRNGKey(0)
    key, kx = jax.random.split(key)

    batch = 8
    x = jax.random.normal(kx, (batch, IN_FEATURES), jnp.float32)

    params = init_params(key)
    padded = pad_params(params)          # one-time padding, outside jit

    fwd = jax.jit(regression_model_forward)
    y = jax.block_until_ready(fwd(x, padded))

    # Reference check in plain JAX (unpadded params).
    (w1, b1), (w2, b2), (w3, b3) = params
    ref = jnp.maximum(x @ w1 + b1, 0.0)
    ref = jnp.maximum(ref @ w2 + b2, 0.0)
    ref = ref @ w3 + b3

    assert y.shape == (batch, 1), y.shape
    assert jnp.allclose(y, ref, atol=1e-3, rtol=1e-3), "mismatch vs reference"

    print("KERNEL_OK")
</pallas_src>

<mosaic_0001>
module attributes {stable_mosaic.version = 11 : i64} {
  func.func @_fused_mlp_kernel(%arg0: i32, %arg1: i32, %arg2: memref<8x1152xf32, #tpu.memory_space<vmem>>, %arg3: memref<1152x512xf32, #tpu.memory_space<vmem>>, %arg4: memref<1x512xf32, #tpu.memory_space<vmem>>, %arg5: memref<2048x512xf32, #tpu.memory_space<vmem>>, %arg6: memref<1x512xf32, #tpu.memory_space<vmem>>, %arg7: memref<1x512xf32, #tpu.memory_space<vmem>>, %arg8: memref<1x1xf32, #tpu.memory_space<vmem>>, %arg9: memref<8x1xf32, #tpu.memory_space<vmem>>, %arg10: memref<8x2048xf32, #tpu.memory_space<vmem>>, %arg11: memref<8x1xf32, #tpu.memory_space<vmem>>) attributes {dimension_semantics = [#tpu.dimension_semantics<arbitrary>, #tpu.dimension_semantics<arbitrary>], iteration_bounds = array<i64: 2, 4>, scalar_prefetch = 0 : i64, scratch_operands = 2 : i64, tpu.core_type = #tpu.core_type<tc>, window_params = [{pipeline_mode = #tpu.pipeline_mode<synchronous>, transform_indices = @transform_0, window_bounds = array<i64: 8, 1152>}, {transform_indices = @transform_1, window_bounds = array<i64: 1152, 512>}, {transform_indices = @transform_2, window_bounds = array<i64: 1, 512>}, {transform_indices = @transform_3, window_bounds = array<i64: 2048, 512>}, {transform_indices = @transform_4, window_bounds = array<i64: 1, 512>}, {transform_indices = @transform_5, window_bounds = array<i64: 1, 512>}, {pipeline_mode = #tpu.pipeline_mode<synchronous>, transform_indices = @transform_6, window_bounds = array<i64: 1, 1>}, {pipeline_mode = #tpu.pipeline_mode<synchronous>, transform_indices = @transform_7, window_bounds = array<i64: 8, 1>}]} {
    %c512_i32 = arith.constant 512 : i32
    %0 = arith.muli %arg1, %c512_i32 : i32
    %1 = tpu.assume_multiple %0, 512 : i32
    %c0_i32 = arith.constant 0 : i32
    %2 = arith.cmpi eq, %arg0, %c0_i32 : i32
    %c0_i32_0 = arith.constant 0 : i32
    %3 = arith.cmpi eq, %arg1, %c0_i32_0 : i32
    %4 = arith.andi %2, %3 : i1
    %5 = arith.extui %4 : i1 to i32
    %c0_i32_1 = arith.constant 0 : i32
    %6 = arith.cmpi ne, %5, %c0_i32_1 : i32
    scf.if %6 {
      %cst = arith.constant 0.000000e+00 : f32
      %18 = vector.broadcast %cst : f32 to vector<8x1xf32>
      %c0 = arith.constant 0 : index
      %c0_7 = arith.constant 0 : index
      %19 = vector.load %arg11[%c0, %c0_7] : memref<8x1xf32, #tpu.memory_space<vmem>>, vector<8x1xf32>
      tpu.vector_store %arg11[%c0, %c0_7], %18 {strides = array<i32>} : memref<8x1xf32, #tpu.memory_space<vmem>>, vector<8x1xf32>,
    } else {
    }
    %c0_i32_2 = arith.constant 0 : i32
    %7 = arith.cmpi eq, %arg0, %c0_i32_2 : i32
    %8 = arith.extui %7 : i1 to i32
    %c0_i32_3 = arith.constant 0 : i32
    %9 = arith.cmpi ne, %8, %c0_i32_3 : i32
    scf.if %9 {
      %c0 = arith.constant 0 : index
      %c0_7 = arith.constant 0 : index
      %18 = vector.load %arg2[%c0, %c0_7] : memref<8x1152xf32, #tpu.memory_space<vmem>>, vector<8x1152xf32>
      %c0_8 = arith.constant 0 : index
      %c0_9 = arith.constant 0 : index
      %19 = vector.load %arg3[%c0_8, %c0_9] : memref<1152x512xf32, #tpu.memory_space<vmem>>, vector<1152x512xf32>
      %cst = arith.constant dense<0.000000e+00> : vector<8x512xf32>
      %20 = tpu.matmul %18, %19, %cst {dimension_numbers = #tpu.dot_dimension_numbers<[1], [0], [0], [1], [0, 0, 1, 1], [], []>} : vector<8x1152xf32>, vector<1152x512xf32>, vector<8x512xf32> -> vector<8x512xf32>
      %c0_10 = arith.constant 0 : index
      %c0_11 = arith.constant 0 : index
      %21 = vector.load %arg4[%c0_10, %c0_11] : memref<1x512xf32, #tpu.memory_space<vmem>>, vector<1x512xf32>
      %22 = vector.broadcast %21 : vector<1x512xf32> to vector<8x512xf32>
      %23 = arith.addf %20, %22 : vector<8x512xf32>
      %cst_12 = arith.constant 0.000000e+00 : f32
      %24 = vector.broadcast %cst_12 : f32 to vector<8x512xf32>
      %25 = arith.maximumf %23, %24 : vector<8x512xf32>
      %c0_13 = arith.constant 0 : index
      %26 = arith.index_cast %1 : i32 to index
      %27 = vector.load %arg10[%c0_13, %26] : memref<8x2048xf32, #tpu.memory_space<vmem>>, vector<8x512xf32>
      tpu.vector_store %arg10[%c0_13, %26], %25 {strides = array<i32>} : memref<8x2048xf32, #tpu.memory_space<vmem>>, vector<8x512xf32>,
    } else {
    }
    %c1_i32 = arith.constant 1 : i32
    %10 = arith.cmpi eq, %arg0, %c1_i32 : i32
    %11 = arith.extui %10 : i1 to i32
    %c0_i32_4 = arith.constant 0 : i32
    %12 = arith.cmpi ne, %11, %c0_i32_4 : i32
    scf.if %12 {
      %c0 = arith.constant 0 : index
      %c0_7 = arith.constant 0 : index
      %18 = vector.load %arg10[%c0, %c0_7] : memref<8x2048xf32, #tpu.memory_space<vmem>>, vector<8x2048xf32>
      %c0_8 = arith.constant 0 : index
      %c0_9 = arith.constant 0 : index
      %19 = vector.load %arg5[%c0_8, %c0_9] : memref<2048x512xf32, #tpu.memory_space<vmem>>, vector<2048x512xf32>
      %cst = arith.constant dense<0.000000e+00> : vector<8x512xf32>
      %20 = tpu.matmul %18, %19, %cst {dimension_numbers = #tpu.dot_dimension_numbers<[1], [0], [0], [1], [0, 0, 1, 1], [], []>} : vector<8x2048xf32>, vector<2048x512xf32>, vector<8x512xf32> -> vector<8x512xf32>
      %c0_10 = arith.constant 0 : index
      %c0_11 = arith.constant 0 : index
      %21 = vector.load %arg6[%c0_10, %c0_11] : memref<1x512xf32, #tpu.memory_space<vmem>>, vector<1x512xf32>
      %22 = vector.broadcast %21 : vector<1x512xf32> to vector<8x512xf32>
      %23 = arith.addf %20, %22 : vector<8x512xf32>
      %cst_12 = arith.constant 0.000000e+00 : f32
      %24 = vector.broadcast %cst_12 : f32 to vector<8x512xf32>
      %25 = arith.maximumf %23, %24 : vector<8x512xf32>
      %c0_13 = arith.constant 0 : index
      %c0_14 = arith.constant 0 : index
      %26 = vector.load %arg11[%c0_13, %c0_14] : memref<8x1xf32, #tpu.memory_space<vmem>>, vector<8x1xf32>
      %c0_15 = arith.constant 0 : index
      %c0_16 = arith.constant 0 : index
      %27 = vector.load %arg7[%c0_15, %c0_16] : memref<1x512xf32, #tpu.memory_space<vmem>>, vector<1x512xf32>
      %28 = vector.broadcast %27 : vector<1x512xf32> to vector<8x512xf32>
      %29 = arith.mulf %25, %28 : vector<8x512xf32>
      %cst_17 = arith.constant dense<0.000000e+00> : vector<8xf32>
      %30 = vector.multi_reduction <add>, %29, %cst_17 [1] : vector<8x512xf32> to vector<8xf32>
      %31 = vector.shape_cast %30 : vector<8xf32> to vector<8x1xf32>
      %32 = arith.addf %26, %31 : vector<8x1xf32>
      %c0_18 = arith.constant 0 : index
      %c0_19 = arith.constant 0 : index
      %33 = vector.load %arg11[%c0_18, %c0_19] : memref<8x1xf32, #tpu.memory_space<vmem>>, vector<8x1xf32>
      tpu.vector_store %arg11[%c0_18, %c0_19], %32 {strides = array<i32>} : memref<8x1xf32, #tpu.memory_space<vmem>>, vector<8x1xf32>,
    } else {
    }
    %c1_i32_5 = arith.constant 1 : i32
    %13 = arith.cmpi eq, %arg0, %c1_i32_5 : i32
    %c3_i32 = arith.constant 3 : i32
    %14 = arith.cmpi eq, %arg1, %c3_i32 : i32
    %15 = arith.andi %13, %14 : i1
    %16 = arith.extui %15 : i1 to i32
    %c0_i32_6 = arith.constant 0 : i32
    %17 = arith.cmpi ne, %16, %c0_i32_6 : i32
    scf.if %17 {
      %c0 = arith.constant 0 : index
      %c0_7 = arith.constant 0 : index
      %18 = vector.load %arg11[%c0, %c0_7] : memref<8x1xf32, #tpu.memory_space<vmem>>, vector<8x1xf32>
      %c0_8 = arith.constant 0 : index
      %c0_9 = arith.constant 0 : index
      %19 = vector.load %arg8[%c0_8, %c0_9] : memref<1x1xf32, #tpu.memory_space<vmem>>, vector<1x1xf32>
      %20 = vector.broadcast %19 : vector<1x1xf32> to vector<8x1xf32>
      %21 = arith.addf %18, %20 : vector<8x1xf32>
      %c0_10 = arith.constant 0 : index
      %c0_11 = arith.constant 0 : index
      %22 = vector.load %arg9[%c0_10, %c0_11] : memref<8x1xf32, #tpu.memory_space<vmem>>, vector<8x1xf32>
      tpu.vector_store %arg9[%c0_10, %c0_11], %21 {strides = array<i32>} : memref<8x1xf32, #tpu.memory_space<vmem>>, vector<8x1xf32>,
    } else {
    }
    return
  }
  func.func @transform_0(%arg0: i32, %arg1: i32) -> (i32, i32) {
    %c0_i32 = arith.constant 0 : i32
    %c0_i32_0 = arith.constant 0 : i32
    %c0_i32_1 = arith.constant 0 : i32
    return %c0_i32, %c0_i32_0 : i32, i32
  }
  func.func @transform_1(%arg0: i32, %arg1: i32) -> (i32, i32) {
    %c1_i32 = arith.constant 1 : i32
    %0 = arith.subi %c1_i32, %arg0 : i32
    %1 = arith.muli %arg1, %0 : i32
    %c3_i32 = arith.constant 3 : i32
    %2 = arith.muli %c3_i32, %arg0 : i32
    %3 = arith.addi %1, %2 : i32
    %c0_i32 = arith.constant 0 : i32
    %c0_i32_0 = arith.constant 0 : i32
    return %c0_i32, %3 : i32, i32
  }
  func.func @transform_2(%arg0: i32, %arg1: i32) -> (i32, i32) {
    %c1_i32 = arith.constant 1 : i32
    %0 = arith.subi %c1_i32, %arg0 : i32
    %1 = arith.muli %arg1, %0 : i32
    %c3_i32 = arith.constant 3 : i32
    %2 = arith.muli %c3_i32, %arg0 : i32
    %3 = arith.addi %1, %2 : i32
    %c0_i32 = arith.constant 0 : i32
    %c0_i32_0 = arith.constant 0 : i32
    return %c0_i32, %3 : i32, i32
  }
  func.func @transform_3(%arg0: i32, %arg1: i32) -> (i32, i32) {
    %0 = arith.muli %arg1, %arg0 : i32
    %c0_i32 = arith.constant 0 : i32
    %c0_i32_0 = arith.constant 0 : i32
    return %c0_i32, %0 : i32, i32
  }
  func.func @transform_4(%arg0: i32, %arg1: i32) -> (i32, i32) {
    %0 = arith.muli %arg1, %arg0 : i32
    %c0_i32 = arith.constant 0 : i32
    %c0_i32_0 = arith.constant 0 : i32
    return %c0_i32, %0 : i32, i32
  }
  func.func @transform_5(%arg0: i32, %arg1: i32) -> (i32, i32) {
    %0 = arith.muli %arg1, %arg0 : i32
    %c0_i32 = arith.constant 0 : i32
    %c0_i32_0 = arith.constant 0 : i32
    return %c0_i32, %0 : i32, i32
  }
  func.func @transform_6(%arg0: i32, %arg1: i32) -> (i32, i32) {
    %c0_i32 = arith.constant 0 : i32
    %c0_i32_0 = arith.constant 0 : i32
    %c0_i32_1 = arith.constant 0 : i32
    return %c0_i32, %c0_i32_0 : i32, i32
  }
  func.func @transform_7(%arg0: i32, %arg1: i32) -> (i32, i32) {
    %c0_i32 = arith.constant 0 : i32
    %c0_i32_0 = arith.constant 0 : i32
    %c0_i32_1 = arith.constant 0 : i32
    return %c0_i32, %c0_i32_0 : i32, i32
  }
}

</mosaic_0001>

<bundles_post_ra>
// kernel: regression_model_forward.1
= control target key start
LH: loop header
LB: loop body
LE: loop exit
PB: predicated region body
PF: predicated region fallthrough
CT: control target
= control target key end

     0   :  { %s8394_s0 = inlined_call_operand.vmem [shape: f32[8,1152], index: 0, kind: input, shape index: {}]   ;;  %s8395_s1 = inlined_call_operand.hbm [shape: f32[1152,2048], index: 1, kind: input, shape index: {}]   ;;  %s8396_s2 = inlined_call_operand.hbm [shape: f32[1,2048], index: 2, kind: input, shape index: {}]   ;;  %s8397_s3 = inlined_call_operand.hbm [shape: f32[2048,2048], index: 3, kind: input, shape index: {}]   ;;  %s8398_s4 = inlined_call_operand.hbm [shape: f32[1,2048], index: 4, kind: input, shape index: {}]   ;;  %s8399_s5 = inlined_call_operand.hbm [shape: f32[1,2048], index: 5, kind: input, shape index: {}]   ;;  %s8400_s6 = inlined_call_operand.<no memory space> [shape: f32[1,1], index: 6, kind: input, shape index: {}]   ;;  %s8401_s7 = inlined_call_operand.vmem [shape: f32[8,1], index: 7, kind: output, shape index: {}]  }
   0x1   :  { %8427 = sst [smem:[#allocation29_spill]] %s8394_s0  ;;  %v12_v0 = vstv %s8400_s6 }
   0x2   :  { %8428 = sst [smem:[#allocation30_spill]] %s8396_s2  ;;  %13 = vst [vmem:[#allocation4] sm:$0x1] %v12_v0 }
   0x3   :  { %8429 = sst [smem:[#allocation31_spill]] %s8398_s4 }
   0x4   :  { %8430 = sst [smem:[#allocation32_spill]] %s8401_s7 }
   0x5   :  { %14 = vsyncpa [#allocation6], 0 }
   0x6   :  { %16 = vsyncpa [#allocation6 + $0x1], 0 }
   0x7   :  { %17 = vsyncpa [#allocation8], 0 }
   0x8   :  { %19 = vsyncpa [#allocation8 + $0x1], 0 }
   0x9   :  { %20 = vsyncpa [#allocation11], 0 }
   0xa   :  { %22 = vsyncpa [#allocation11 + $0x1], 0  ;;  %s6351_s26 = smov 0   ;;  %s6353_s27 = smov 0  }
   0xb   :  { %s6355_s28 = smov 0   ;;  %s6357_s29 = smov 0  }
   0xc   :  { %s6359_s30 = smov 0   ;;  %s6361_s8 = smov 0  }
   0xd   :  { %s6363_s6 = smov 0   ;;  %s6365_s9 = smov 0  }
   0xe   :  { %s6367_s10 = smov 0   ;;  %s6369_s11 = smov 0  }
   0xf   :  { %s6371_s12 = smov 0  }
  0x10 LB: > { %8431 = sst [smem:[#allocation17_spill]] %s6264_s28  ;;  %s8402_s13 = sadd.s32 4294967295, %s6296_s12   ;;  %s6296_s12 = sphi %s6371_s12, %s28_s12   ;;  %s6292_s11 = sphi %s6369_s11, %s8486_s11   ;;  %s6288_s10 = sphi %s6367_s10, %s8485_s10   ;;  %s6284_s9 = sphi %s6365_s9, %s8491_s9   ;;  %s6280_s6 = sphi %s6363_s6, %s8483_s6   ;;  %s6276_s8 = sphi %s6361_s8, %s8482_s8   ;;  %s6272_s30 = sphi %s6359_s30, %s8490_s30   ;;  %s6268_s29 = sphi %s6357_s29, %s8489_s29   ;;  %s6264_s28 = sphi %s6355_s28, %s8480_s28   ;;  %s6260_s27 = sphi %s6353_s27, %s8488_s27   ;;  %s6256_s26 = sphi %s6351_s26, %s8487_s26  }
  0x11   : > { %8432 = sst [smem:[#allocation18_spill]] %s6276_s8  ;;  %s37_s14 = sadd.s32 1, %s6288_s10 }
  0x12   : > { %8433 = sst [smem:[#allocation19_spill]] %s6280_s6  ;;  %p38_p0 = scmp.ge.s32.totalorder %s37_s14, 4 }
  0x13   : > { %8434 = sst [smem:[#allocation20_spill]] %s6284_s9  ;;  %s40_s15 = sadd.s32 1, %s6292_s11 }
  0x14   : > { %8435 = sst [smem:[#allocation21_spill]] %s6288_s10  ;;  %s65_s16 = ssub.s32 1, %s6292_s11 }
  0x15   : > { %8436 = sst [smem:[#allocation22_spill]] %s6292_s11  ;;  %s67_s17 = smul.u32 3, %s6292_s11 }
  0x16   : > { %s8493_s14 = smov (%p38_p0, %s37_s14), 0  ;;  %s8495_s15 = smov (!%p38_p0, %s40_s15), %s6292_s11 }
  0x17   : > { %8437 = sst [smem:[#allocation23_spill]] %s8493_s14  ;;  %s66_s18 = smul.u32 %s6288_s10, %s65_s16 }
  0x18   : > { %s76_s19 = sadd.s32 1, %s6276_s8  ;;  %p42_p1 = scmp.ge.s32.totalorder %s8495_s15, 2 }
  0x19   : > { %p83_p2 = scmp.ne.s32.totalorder %s6276_s8, %s6272_s30  ;;  %s68_s20 = sadd.s32 %s67_s17, %s66_s18 }
  0x1a   : > { %p8410_p3 = scmp.eq.s32.totalorder %s6296_s12, 0  ;;  %s8497_s15 = smov (%p42_p1, %s8495_s15), 0 }
  0x1b   : > { %8438 = sst [smem:[#allocation24_spill]] %s8497_s15  ;;  %p89_p5 = scmp.ne.s32.totalorder %s6272_s30, %s6268_s29 }
  0x1c   : > { %p6423_p4 = por %p8410_p3, %p83_p2  ;;  %s69_s22 = ssub.s32 1, %s8497_s15 }
  0x1d   : > { %s71_s23 = smul.u32 3, %s8497_s15  ;;  %p6434_p6 = scmp.eq.s32.totalorder %s8402_s13, 0 }
  0x1e   : > { %s70_s24 = smul.u32 %s69_s22, %s8493_s14  ;;  %p8409_p8 = scmp.lt.s32.totalorder %s6296_s12, 8 }
  0x1f   : > { %p6442_p7 = por %p6434_p6, %p89_p5  ;;  %s6448_s22 = sand.u32 1, %s6276_s8  }
  0x20   : > { %s72_s17 = sadd.s32 %s71_s23, %s70_s24  ;;  %s5922_s13 = smul.u32 4608, %s6448_s22 }
  0x21   : > { %s8441_s18 = scalar_select %p6442_p7, 1, 0 }
  0x22   : > { %s73_s29 = ssub.s32 %s68_s20, %s72_s17  ;;  %s4265_s0 = sshll.u32 %s68_s20, 9 }
  0x23   : > { %8442 = sst [smem:[#allocation25_spill]] %s8441_s18  ;;  %p74_p9 = scmp.eq.s32.totalorder %s73_s29, 0 }
  0x24   : > { %s6457_s24 = scalar_lea.hbm %s8395_s1, %s4265_s0  ;;  %s283_s9 = scalar_lea.vmem [#allocation5], %s5922_s13 }
  0x25   : > { %s6452_s7 = scalar_select %p74_p9, %s6276_s8, %s76_s19  }
  0x26   : > { %s294_s6 = sshll.u32 %s283_s9, 4  ;;  %p6465_p10 = pnand %p8409_p8, %p6423_p4  ;;  %s6459_s6 = int_to_ptr.vmem [resolvable:$true] %s294_s6 }
  0x27   : > { %8443 = sst [smem:[#allocation26_spill]] %s6452_s7  ;;  %s8412_s19 = sand.u32 1, %s6296_s12  }
  0x28   : > { %s8444_s17 = scalar_select %p6465_p10, 1, 0 }
  0x29   : > { %s4241_s29 = sshll.u32 %s6448_s22, 2  ;;  %s4266_s7 = sshll.u32 %s68_s20, 6 }
  0x2a   : > { %s8445_s2 = sld [smem:[#allocation30_spill]]  ;;  %s308_s9 = scalar_lea.vmem [#allocation7], %s4241_s29 }
  0x2b   : > { %s320_s13 = sshll.u32 %s308_s9, 4  ;;  %s6481_s21 = scalar_lea.sflag [#allocation8], %s8412_s19  ;;  %s6476_s13 = int_to_ptr.vmem [resolvable:$true] %s320_s13 }
  0x2c   : > { %p8418_p13 = pneg %p6465_p10 }
  0x30   : > { %s6474_s0 = scalar_lea.hbm %s8445_s2, %s4266_s7  ;;  %s6049_s20 = scalar_lea.hbm %s8445_s2, 256 }
  0x31   : > { %s6044_s16 = scalar_lea.hbm %s6474_s0, 64  ;;  %p6050_p2 = scmp.lt.u32.totalorder %s6474_s0, %s8445_s2 }
  0x32   : > { %p6045_p12 = scmp.ne.s32.totalorder %s6474_s0, %s6044_s16  ;;  %p6051_p4 = scmp.lt.u32.totalorder %s6049_s20, %s6044_s16 }
  0x33   : > { %p6053_p9 = scmp.lt.u32.totalorder %s6044_s16, %s6474_s0 }
  0x34   : > { %p6047_p0 = pnand %p8418_p13, %p6045_p12  ;;  %p6052_p5 = por %p6051_p4, %p6050_p2 }
  0x36   : > { %p6048_p1 = pneg %p6047_p0  ;;  %p6054_p8 = por %p6053_p9, %p6052_p5 }
  0x38   : > { %p6055_p3 = pnand %p6054_p8, %p6048_p1 }
  0x3a   : > { %6058 = shalt.err (!%p6055_p3)
}
  0x3b   : > { %s6059_s29 = scalar_lea.vmem %s6476_s13, 64  ;;  %s6298_s9 = smov [#allocation7]  }
  0x3c   : > { %p6060_p12 = scmp.ne.s32.totalorder %s6476_s13, %s6059_s29  ;;  %s6064_s7 = sshll.u32 %s6298_s9, 4  ;;  %s6065_s7 = int_to_ptr.vmem [resolvable:$false] %s6064_s7 }
  0x3d   : > { %s6066_s8 = scalar_lea.vmem %s6065_s7, 128  ;;  %p6067_p7 = scmp.lt.s32.totalorder %s6476_s13, %s6065_s7 }
  0x3e   : > { %p6062_p0 = pnand %p6060_p12, %p8418_p13  ;;  %p6068_p2 = scmp.lt.s32.totalorder %s6066_s8, %s6059_s29 }
  0x40   : > { %p6063_p11 = pneg %p6062_p0  ;;  %p6069_p4 = por %p6068_p2, %p6067_p7 }
  0x42   : > { %p6070_p5 = pnand %p6069_p4, %p6063_p11 }
  0x44   : > { %6073 = shalt.err (!%p6070_p5)
}
  0x45   : > { %5940 = dma.hbm_to_vmem [thread:$0]  (!%p6465_p10), %s6474_s0, 64, %s6476_s13, %s6481_s21  }
  0x46   : > { %p387_p3 = scmp.lt.s32.totalorder %s6296_s12, 9  ;;  %p8446_p7 = scmp.ge.s32.totalorder %s6296_s12, 1 }
  0x47   : > { %s6518_s20 = smul.u32 %s6288_s10, %s6292_s11  ;;  %s138_s18 = sadd.s32 1, %s6264_s28 }
  0x48   : > { %p6512_p8 = pnand %p8446_p7, %p387_p3  ;;  %p145_p11 = scmp.ne.s32.totalorder %s6264_s28, %s6260_s27 }
  0x49   : > { %p151_p1 = scmp.ne.s32.totalorder %s6260_s27, %s6256_s26  ;;  %s8448_s23 = smul.u32 %s8497_s15, %s8493_s14 }
  0x4a   : > { %s8447_s16 = scalar_select %p6512_p8, 1, 0 }
  0x4b   : > { %s135_s29 = ssub.s32 %s6518_s20, %s8448_s23  ;;  %s329_s9 = sand.u32 1, %s6264_s28  }
  0x4c   : > { %p136_p9 = scmp.eq.s32.totalorder %s135_s29, 0  ;;  %p8449_p12 = scmp.eq.s32.totalorder %s6296_s12, 0 }
  0x4d   : > { %p6534_p2 = por %p151_p1, %p6434_p6  ;;  %s4244_s13 = sshll.u32 %s329_s9, 13 }
  0x4e   : > { %p147_p0 = por %p145_p11, %p8449_p12  ;;  %s4267_s8 = sshll.u32 %s6518_s20, 9 }
  0x4f   : > { %s8450_s0 = scalar_select %p6534_p2, 1, 0 }
  0x50   : > { %s6539_s7 = scalar_select %p136_p9, %s6264_s28, %s138_s18  }
  0x51   : > { %8451 = sst [smem:[#allocation27_spill]] %s8450_s0  ;;  %s6545_s26 = scalar_lea.hbm %s8397_s3, %s4267_s8 }
  0x52   : > { %8452 = sst [smem:[#allocation28_spill]] %s6539_s7  ;;  %s331_s23 = scalar_lea.vmem [#allocation9], %s4244_s13 }
  0x53   : > { %s339_s15 = sshll.u32 %s331_s23, 4  ;;  %p8453_p4 = scmp.lt.s32.totalorder %s6296_s12, 8  ;;  %s6547_s15 = int_to_ptr.vmem [resolvable:$true] %s339_s15 }
  0x54   : > { %s6555_s29 = sshll.u32 %s329_s9, 2  ;;  %s8416_s18 = sshll.u32 %s6518_s20, 6 }
  0x55   : > { %p6551_p5 = pnand %p8453_p4, %p147_p0  ;;  %s353_s14 = scalar_lea.vmem [#allocation10], %s6555_s29 }
  0x56   : > { %s362_s11 = sshll.u32 %s353_s14, 4  ;;  %s8455_s4 = sld [smem:[#allocation31_spill]]  ;;  %s6566_s11 = int_to_ptr.vmem [resolvable:$true] %s362_s11 }
  0x57   : > { %s8454_s25 = scalar_select %p6551_p5, 1, 0 }
  0x58   : > { %s8456_s8 = sand.u32 1, %s6296_s12   ;;  %p6576_p3 = pneg %p6551_p5 }
  0x59   : > { %s6570_s23 = scalar_lea.sflag [#allocation11], %s8456_s8 }
  0x5c   : > { %s6564_s13 = scalar_lea.hbm %s8455_s4, %s8416_s18  ;;  %s6079_s18 = scalar_lea.hbm %s8455_s4, 256 }
  0x5d   : > { %s6074_s9 = scalar_lea.hbm %s6564_s13, 64  ;;  %p6080_p1 = scmp.lt.u32.totalorder %s6564_s13, %s8455_s4 }
  0x5e   : > { %p6075_p6 = scmp.ne.s32.totalorder %s6564_s13, %s6074_s9  ;;  %p6081_p9 = scmp.lt.u32.totalorder %s6079_s18, %s6074_s9 }
  0x5f   : > { %p6083_p0 = scmp.lt.u32.totalorder %s6074_s9, %s6564_s13 }
  0x60   : > { %p6077_p7 = pnand %p6576_p3, %p6075_p6  ;;  %p6082_p12 = por %p6081_p9, %p6080_p1 }
  0x62   : > { %p6078_p11 = pneg %p6077_p7  ;;  %p6084_p4 = por %p6083_p0, %p6082_p12 }
  0x64   : > { %p6085_p13 = pnand %p6084_p4, %p6078_p11 }
  0x66   : > { %6088 = shalt.err (!%p6085_p13)
}
  0x67   : > { %s6089_s8 = scalar_lea.vmem %s6566_s11, 64  ;;  %s6299_s2 = smov [#allocation10]  }
  0x68   : > { %p6090_p6 = scmp.ne.s32.totalorder %s6566_s11, %s6089_s8  ;;  %s6094_s19 = sshll.u32 %s6299_s2, 4  ;;  %s6095_s19 = int_to_ptr.vmem [resolvable:$false] %s6094_s19 }
  0x69   : > { %s6096_s10 = scalar_lea.vmem %s6095_s19, 128  ;;  %p6097_p8 = scmp.lt.s32.totalorder %s6566_s11, %s6095_s19 }
  0x6a   : > { %p6092_p7 = pnand %p6090_p6, %p6576_p3  ;;  %p6098_p10 = scmp.lt.s32.totalorder %s6096_s10, %s6089_s8 }
  0x6c   : > { %p6093_p2 = pneg %p6092_p7  ;;  %p6099_p1 = por %p6098_p10, %p6097_p8 }
  0x6e   : > { %p6100_p9 = pnand %p6099_p1, %p6093_p2 }
  0x70   : > { %6103 = shalt.err (!%p6100_p9)
}
  0x71   : > { %5946 = dma.hbm_to_vmem [thread:$0]  (!%p6551_p5), %s6564_s13, 64, %s6566_s11, %s6570_s23  }
  0x72   : > { %s8458_s7 = sshll.u32 %s6518_s20, 6  ;;  %s373_s2 = scalar_lea.vmem [#allocation12], %s6555_s29 }
  0x73   : > { %s6605_s8 = scalar_lea.hbm %s8399_s5, %s8458_s7  ;;  %s6608_s19 = sshll.u32 %s373_s2, 4  ;;  %s383_s19 = int_to_ptr.vmem [resolvable:$true] %s6608_s19 }
  0x74   : > { %s280_s10 = scalar_lea.sflag [#allocation6], %s6448_s22  ;;  %s6104_s4 = scalar_lea.hbm %s6457_s24, 73728 }
  0x75   : > { %p6105_p10 = scmp.ne.s32.totalorder %s6457_s24, %s6104_s4  ;;  %p8459_p13 = scmp.ne.s32.totalorder %s8444_s17, 0 }
  0x76   : > { %s6109_s11 = scalar_lea.hbm %s8395_s1, 294912  ;;  %p6110_p12 = scmp.lt.u32.totalorder %s6457_s24, %s8395_s1 }
  0x77   : > { %p8460_p8 = pneg %p8459_p13  ;;  %p6111_p0 = scmp.lt.u32.totalorder %s6109_s11, %s6104_s4 }
  0x78   : > { %p6113_p6 = scmp.lt.u32.totalorder %s6104_s4, %s6457_s24 }
  0x79   : > { %p6107_p2 = pnand %p6105_p10, %p8460_p8  ;;  %p6112_p4 = por %p6111_p0, %p6110_p12 }
  0x7b   : > { %p6108_p11 = pneg %p6107_p2  ;;  %p6114_p7 = por %p6113_p6, %p6112_p4 }
  0x7d   : > { %p6115_p1 = pnand %p6114_p7, %p6108_p11 }
  0x7f   : > { %6118 = shalt.err (!%p6115_p1)
}
  0x80   : > { %s6119_s29 = scalar_lea.vmem %s6459_s6, 73728  ;;  %p8461_p10 = pmov %p8460_p8 }
  0x81   : > { %p6120_p9 = scmp.ne.s32.totalorder %s6459_s6, %s6119_s29  ;;  %s6300_s28 = smov [#allocation5]  }
  0x82   : > { %s6124_s0 = sshll.u32 %s6300_s28, 4  ;;  %s6125_s0 = int_to_ptr.vmem [resolvable:$false] %s6124_s0 }
  0x83   : > { %p6122_p8 = pnand %p6120_p9, %p8461_p10  ;;  %s6126_s7 = scalar_lea.vmem %s6125_s0, 147456 }
  0x84   : > { %p6127_p5 = scmp.lt.s32.totalorder %s6459_s6, %s6125_s0  ;;  %p6128_p12 = scmp.lt.s32.totalorder %s6126_s7, %s6119_s29 }
  0x85   : > { %p6123_p2 = pneg %p6122_p8 }
  0x86   : > { %p6129_p0 = por %p6128_p12, %p6127_p5 }
  0x88   : > { %p6130_p4 = pnand %p6129_p0, %p6123_p2 }
  0x8a   : > { %6133 = shalt.err (!%p6130_p4)
}
  0x8b   : > { %s6301_s4 = smov 2048   ;;  %s6302_s18 = smov 512  }
  0x8c   : > { %s6303_s9 = smov 32   ;;  %s6134_s2 = scalar_lea.hbm %s6545_s26, 131072 }
  0x8d   : > { %5937 = dma.hbm_to_vmem [thread:$0]  (!%p8459_p13), %s6457_s24, 73728, %s6459_s6, %s280_s10, %s6301_s4, %s6302_s18, %s6303_s9  }
  0x8e   : > { %p6135_p5 = scmp.ne.s32.totalorder %s6545_s26, %s6134_s2  ;;  %s6139_s13 = scalar_lea.hbm %s8397_s3, 524288 }
  0x8f   : > { %p6140_p7 = scmp.lt.u32.totalorder %s6545_s26, %s8397_s3  ;;  %p6141_p1 = scmp.lt.u32.totalorder %s6139_s13, %s6134_s2 }
  0x90   : > { %p6137_p11 = pnand %p6135_p5, %p6576_p3  ;;  %p6143_p10 = scmp.lt.u32.totalorder %s6134_s2, %s6545_s26 }
  0x91   : > { %p6142_p9 = por %p6141_p1, %p6140_p7 }
  0x92   : > { %p6138_p6 = pneg %p6137_p11 }
  0x93   : > { %p6144_p8 = por %p6143_p10, %p6142_p9 }
  0x95   : > { %p6145_p2 = pnand %p6144_p8, %p6138_p6 }
  0x97   : > { %6148 = shalt.err (!%p6145_p2)
}
  0x98   : > { %s6149_s6 = scalar_lea.vmem %s6547_s15, 131072  ;;  %s6304_s22 = smov [#allocation9]  }
  0x99   : > { %p6150_p13 = scmp.ne.s32.totalorder %s6547_s15, %s6149_s6  ;;  %s6154_s24 = sshll.u32 %s6304_s22, 4  ;;  %s6155_s24 = int_to_ptr.vmem [resolvable:$false] %s6154_s24 }
  0x9a   : > { %s6156_s17 = scalar_lea.vmem %s6155_s24, 262144  ;;  %p6157_p4 = scmp.lt.s32.totalorder %s6547_s15, %s6155_s24 }
  0x9b   : > { %p6152_p12 = pnand %p6150_p13, %p6576_p3  ;;  %p6158_p5 = scmp.lt.s32.totalorder %s6156_s17, %s6149_s6 }
  0x9d   : > { %p6153_p0 = pneg %p6152_p12  ;;  %p6159_p11 = por %p6158_p5, %p6157_p4 }
  0x9f   : > { %p6160_p7 = pnand %p6159_p11, %p6153_p0 }
  0xa1   : > { %6163 = shalt.err (!%p6160_p7)
}
  0xa2   : > { %p8462_p6 = scmp.ne.s32.totalorder %s8454_s25, 0  ;;  %s6164_s10 = scalar_lea.hbm %s6605_s8, 64 }
  0xa3   : > { %p6165_p1 = scmp.ne.s32.totalorder %s6605_s8, %s6164_s10  ;;  %s6169_s2 = scalar_lea.hbm %s8399_s5, 256 }
  0xa4   : > { %5943 = dma.hbm_to_vmem [thread:$0]  (!%p8462_p6), %s6545_s26, 131072, %s6547_s15, %s6481_s21, %s6301_s4, %s6302_s18, %s6303_s9  }
  0xa5   : > { %p6167_p9 = pnand %p6165_p1, %p6576_p3  ;;  %p6170_p8 = scmp.lt.u32.totalorder %s6605_s8, %s8399_s5 }
  0xa6   : > { %p6171_p2 = scmp.lt.u32.totalorder %s6169_s2, %s6164_s10  ;;  %p6173_p12 = scmp.lt.u32.totalorder %s6164_s10, %s6605_s8 }
  0xa7   : > { %p6168_p10 = pneg %p6167_p9 }
  0xa8   : > { %p6172_p13 = por %p6171_p2, %p6170_p8 }
  0xaa   : > { %p6174_p0 = por %p6173_p12, %p6172_p13 }
  0xac   : > { %p6175_p4 = pnand %p6174_p0, %p6168_p10 }
  0xae   : > { %6178 = shalt.err (!%p6175_p4)
}
  0xaf   : > { %s6179_s15 = scalar_lea.vmem %s383_s19, 64  ;;  %s6305_s21 = smov [#allocation12]  }
  0xb0   : > { %p6180_p5 = scmp.ne.s32.totalorder %s383_s19, %s6179_s15  ;;  %s6184_s26 = sshll.u32 %s6305_s21, 4  ;;  %s6185_s26 = int_to_ptr.vmem [resolvable:$false] %s6184_s26 }
  0xb1   : > { %s6186_s4 = scalar_lea.vmem %s6185_s26, 128  ;;  %p6187_p1 = scmp.lt.s32.totalorder %s383_s19, %s6185_s26 }
  0xb2   : > { %p6182_p11 = pnand %p6180_p5, %p6576_p3  ;;  %p6188_p9 = scmp.lt.s32.totalorder %s6186_s4, %s6179_s15 }
  0xb4   : > { %p6183_p7 = pneg %p6182_p11  ;;  %p6189_p6 = por %p6188_p9, %p6187_p1 }
  0xb6   : > { %p6190_p2 = pnand %p6189_p6, %p6183_p7 }
  0xb8   : > { %6193 = shalt.err (!%p6190_p2)
}
  0xb9   : > { %p8463_p8 = scmp.ne.s32.totalorder %s8454_s25, 0  ;;  %p8464_p10 = scmp.ne.s32.totalorder %s8447_s16, 0 }
  0xba   : > { %s8465_s14 = sld [smem:[#allocation25_spill]] (!%p8464_p10)  ;;  %s393_s18 = sand.u32 (!%p8464_p10), 1, %s6272_s30  }
  0xbb   : > { %5949 = dma.hbm_to_vmem [thread:$0]  (!%p8463_p8), %s6605_s8, 64, %s383_s19, %s6570_s23  }
  0xbc   : > { %391 = sbr.rel (%p8464_p10) target bundleno = 1658 (0x67a), region = 48  ;;  %s394_s13 = scalar_lea.sflag (!%p8464_p10), [#allocation6], %s393_s18 }
  0xbd   : > { %s5923_s9 = smul.u32 (!%p8464_p10), 4608, %s393_s18 }
  0xbf   : > { %s6686_s29 = scalar_lea.vmem (!%p8464_p10), [#allocation5], %s5923_s9 }
  0xc0   : > { %p8466_p3 = scmp.ne.s32.totalorder (!%p8464_p10), %s8465_s14, 0 }
  0xc3   : > { %6239 = dma.done.wait (%p8466_p3), %s394_s13, 73728  }
  0xc4   : > { %6241 = vsyncadd (%p8466_p3), %s394_s13, 4294893568  ;;  %s8467_s25 = sadd.s32 4294967295, %s6296_s12   ;;  %s4254_s23 = sshll.u32 %s393_s18, 2 }
  0xc5   : > { %s402_s28 = sand.u32 1, %s8467_s25   ;;  %s6694_s16 = scalar_lea.vmem [#allocation7], %s4254_s23 }
  0xc6   : > { %s403_s8 = scalar_lea.sflag [#allocation8], %s402_s28 }
  0xc7   : > { %6243 = dma.done.wait (%p8466_p3), %s403_s8, 64  }
  0xc8   : > { %6245 = vsyncadd (%p8466_p3), %s403_s8, 4294967232  ;;  %s8468_s19 = sld [smem:[#allocation27_spill]]  ;;  %s413_s6 = sand.u32 1, %s6260_s27  }
  0xc9   : > { %s4255_s22 = sshll.u32 %s413_s6, 13 }
  0xca   : > { %s6701_s24 = scalar_lea.vmem [#allocation9], %s4255_s22 }
  0xce   : > { %p8469_p6 = scmp.ne.s32.totalorder %s8468_s19, 0 }
  0xd0   : > { %6247 = dma.done.wait (%p8469_p6), %s403_s8, 131072  }
  0xd1   : > { %6249 = vsyncadd (%p8469_p6), %s403_s8, 4294836224  ;;  %s6707_s17 = sshll.u32 %s413_s6, 2  ;;  %s421_s10 = scalar_lea.sflag [#allocation11], %s402_s28 }
  0xd2   : > { %s424_s0 = scalar_lea.vmem [#allocation10], %s6707_s17 }
  0xd3   : > { %6251 = dma.done.wait (%p8469_p6), %s421_s10, 128  }
  0xd4   : > { %6253 = vsyncadd (%p8469_p6), %s421_s10, 4294967168  ;;  %s8470_s7 = sld [smem:[#allocation19_spill]]  ;;  %s8471_s2 = sld [smem:[#allocation20_spill]] }
  0xd5   : > { %s433_s20 = scalar_lea.vmem [#allocation12], %s6707_s17 }
  0xda   : > { %s4258_s11 = sshll.u32 %s8470_s7, 9  ;;  %p496_p13 = scmp.eq.s32.totalorder %s8471_s2, 0 }
  0xdb   : > { %p497_p12 = scmp.eq.s32.totalorder %s8470_s7, 0 }
  0xdd   : > { %p498_p0 = pnand %p497_p12, %p496_p13 }
  0xde   : > { %vm502_vm0 = vcmask (!%p498_p0), 7168   ;;  %v6306_v1 = vmov (!%p498_p0), 0.0  }
  0xdf   : > { %501 = sbr.rel (%p498_p0) target bundleno = 230 (0xe6), region = 72  ;;  %503 = vst.msk [vmem:[#allocation3] sm:$0xff] (!%p498_p0), %vm502_vm0, %v6306_v1 }
  0xe6 PF: > { %s8472_s15 = sld [smem:[#allocation20_spill]] }
  0xec   : > { %p4259_p4 = scmp.ne.s32.totalorder %s8472_s15, 0 }
  0xed   : > { %v517_v2 = vld [vmem:[%s6686_s29 + $0x8] sm:$0xff] (!%p4259_p4)  ;;  %v519_v4 = vld [vmem:[%s6686_s29 + $0x18] sm:$0xff] (!%p4259_p4)  ;;  %v516_v7 = vld [vmem:[%s6686_s29] sm:$0xff] (!%p4259_p4)  ;;  %s8473_s4 = sld [smem:[#allocation29_spill]] (!%p4259_p4) }
  0xee   : > { %506 = sbr.rel (%p4259_p4) target bundleno = 748 (0x2ec), region = 76  ;;  %v521_v3 = vld [vmem:[%s6686_s29 + $0x28] sm:$0xff] (!%p4259_p4)  ;;  %v523_v6 = vld [vmem:[%s6686_s29 + $0x38] sm:$0xff] (!%p4259_p4)  ;;  %v520_v8 = vld [vmem:[%s6686_s29 + $0x20] sm:$0xff] (!%p4259_p4) }
  0xef   : > { %v4270_v5 = vpack.c.bf16 (!%p4259_p4), %v521_v3, %v517_v2  ;;  %v4558_v9 = vpack.c.bf16 (!%p4259_p4), %v523_v6, %v519_v4  ;;  %v4272_v10 = vpack.c.bf16 (!%p4259_p4), %v520_v8, %v516_v7  ;;  %v518_v11 = vld [vmem:[%s6686_s29 + $0x10] sm:$0xff] (!%p4259_p4)  ;;  %v525_v13 = vld [vmem:[%s6686_s29 + $0x48] sm:$0xff] (!%p4259_p4)  ;;  %v527_v16 = vld [vmem:[%s6686_s29 + $0x58] sm:$0xff] (!%p4259_p4) }
  0xf0   : > { %v522_v12 = vld [vmem:[%s6686_s29 + $0x30] sm:$0xff] (!%p4259_p4)  ;;  %v529_v15 = vld [vmem:[%s6686_s29 + $0x68] sm:$0xff] (!%p4259_p4)  ;;  %v531_v17 = vld [vmem:[%s6686_s29 + $0x78] sm:$0xff] (!%p4259_p4) }
  0xf1   : > { %4271 = vmatprep.subr.bf16.mxu0 (!%p4259_p4), %v4270_v5  ;;  %v4560_v14 = vpack.c.bf16 (!%p4259_p4), %v522_v12, %v518_v11  ;;  %4559 = vmatprep.subr.bf16.mxu1 (!%p4259_p4), %v4558_v9  ;;  %v4274_v18 = vpack.c.bf16 (!%p4259_p4), %v529_v15, %v525_v13  ;;  %v4562_v19 = vpack.c.bf16 (!%p4259_p4), %v531_v17, %v527_v16  ;;  %v524_v20 = vld [vmem:[%s6686_s29 + $0x40] sm:$0xff] (!%p4259_p4)  ;;  %v526_v22 = vld [vmem:[%s6686_s29 + $0x50] sm:$0xff] (!%p4259_p4)  ;;  %v533_v25 = vld [vmem:[%s6686_s29 + $0x88] sm:$0xff] (!%p4259_p4) }
  0xf2   : > { %4273 = vmatpush1.bf16.msra.mxu0 (!%p4259_p4), %v4272_v10  ;;  %v528_v21 = vld [vmem:[%s6686_s29 + $0x60] sm:$0xff] (!%p4259_p4)  ;;  %v530_v24 = vld [vmem:[%s6686_s29 + $0x70] sm:$0xff] (!%p4259_p4)  ;;  %v537_v26 = vld [vmem:[%s6686_s29 + $0xa8] sm:$0xff] (!%p4259_p4) }
  0xf3   : > { %4561 = vmatpush1.bf16.msra.mxu1 (!%p4259_p4), %v4560_v14  ;;  %v4276_v23 = vpack.c.bf16 (!%p4259_p4), %v528_v21, %v524_v20  ;;  %4275 = vmatprep.subr.bf16.mxu0 (!%p4259_p4), %v4274_v18  ;;  %v4564_v27 = vpack.c.bf16 (!%p4259_p4), %v530_v24, %v526_v22  ;;  %v4278_v28 = vpack.c.bf16 (!%p4259_p4), %v537_v26, %v533_v25  ;;  %v535_v29 = vld [vmem:[%s6686_s29 + $0x98] sm:$0xff] (!%p4259_p4)  ;;  %v532_v31 = vld [vmem:[%s6686_s29 + $0x80] sm:$0xff] (!%p4259_p4)  ;;  %v534_v34 = vld [vmem:[%s6686_s29 + $0x90] sm:$0xff] (!%p4259_p4) }
  0xf4   : > { %4563 = vmatprep.subr.bf16.mxu1 (!%p4259_p4), %v4562_v19  ;;  %v539_v30 = vld [vmem:[%s6686_s29 + $0xb8] sm:$0xff] (!%p4259_p4)  ;;  %v536_v33 = vld [vmem:[%s6686_s29 + $0xa0] sm:$0xff] (!%p4259_p4)  ;;  %v538_v35 = vld [vmem:[%s6686_s29 + $0xb0] sm:$0xff] (!%p4259_p4) }
  0xf5   : > { %v4566_v32 = vpack.c.bf16 %v539_v30, %v535_v29  ;;  %v4280_v36 = vpack.c.bf16 %v536_v33, %v532_v31  ;;  %v541_v37 = vld [vmem:[%s6686_s29 + $0xc8] sm:$0xff]  ;;  %v543_v39 = vld [vmem:[%s6686_s29 + $0xd8] sm:$0xff]  ;;  %v4568_v40 = vpack.c.bf16 %v538_v35, %v534_v34  ;;  %v540_v43 = vld [vmem:[%s6686_s29 + $0xc0] sm:$0xff] }
  0xf6   : > { %4277 = vmatpush1.bf16.msra.mxu0 %v4276_v23  ;;  %v545_v38 = vld [vmem:[%s6686_s29 + $0xe8] sm:$0xff]  ;;  %v547_v42 = vld [vmem:[%s6686_s29 + $0xf8] sm:$0xff]  ;;  %v544_v44 = vld [vmem:[%s6686_s29 + $0xe0] sm:$0xff] }
  0xf7   : > { %4565 = vmatpush1.bf16.msra.mxu1 %v4564_v27  ;;  %4279 = vmatprep.subr.bf16.mxu0 %v4278_v28  ;;  %v4282_v41 = vpack.c.bf16 %v545_v38, %v541_v37  ;;  %v4570_v45 = vpack.c.bf16 %v547_v42, %v543_v39  ;;  %v542_v46 = vld [vmem:[%s6686_s29 + $0xd0] sm:$0xff]  ;;  %v549_v48 = vld [vmem:[%s6686_s29 + $0x108] sm:$0xff]  ;;  %v551_v50 = vld [vmem:[%s6686_s29 + $0x118] sm:$0xff]  ;;  %v4284_v52 = vpack.c.bf16 %v544_v44, %v540_v43 }
  0xf8   : > { %4567 = vmatprep.subr.bf16.mxu1 %v4566_v32  ;;  %v546_v47 = vld [vmem:[%s6686_s29 + $0xf0] sm:$0xff]  ;;  %v553_v49 = vld [vmem:[%s6686_s29 + $0x128] sm:$0xff]  ;;  %v555_v51 = vld [vmem:[%s6686_s29 + $0x138] sm:$0xff] }
  0xf9   : > { %v4572_v53 = vpack.c.bf16 %v546_v47, %v542_v46  ;;  %v4286_v54 = vpack.c.bf16 %v553_v49, %v549_v48  ;;  %v548_v55 = vld [vmem:[%s6686_s29 + $0x100] sm:$0xff]  ;;  %v550_v57 = vld [vmem:[%s6686_s29 + $0x110] sm:$0xff]  ;;  %v4574_v58 = vpack.c.bf16 %v555_v51, %v551_v50  ;;  %v557_v60 = vld [vmem:[%s6686_s29 + $0x148] sm:$0xff] }
  0xfa   : > { %4281 = vmatpush1.bf16.msra.mxu0 %v4280_v36  ;;  %v552_v56 = vld [vmem:[%s6686_s29 + $0x120] sm:$0xff]  ;;  %v554_v59 = vld [vmem:[%s6686_s29 + $0x130] sm:$0xff]  ;;  %v561_v61 = vld [vmem:[%s6686_s29 + $0x168] sm:$0xff] }
  0xfb   : > { %4569 = vmatpush1.bf16.msra.mxu1 %v4568_v40  ;;  %4283 = vmatprep.subr.bf16.mxu0 %v4282_v41  ;;  %v559_v62 = vld [vmem:[%s6686_s29 + $0x158] sm:$0xff]  ;;  %v4288_v0 = vpack.c.bf16 %v552_v56, %v548_v55  ;;  %v4576_v1 = vpack.c.bf16 %v554_v59, %v550_v57  ;;  %v4290_v2 = vpack.c.bf16 %v561_v61, %v557_v60  ;;  %v556_v3 = vld [vmem:[%s6686_s29 + $0x140] sm:$0xff]  ;;  %v558_v5 = vld [vmem:[%s6686_s29 + $0x150] sm:$0xff] }
  0xfc   : > { %4571 = vmatprep.subr.bf16.mxu1 %v4570_v45  ;;  %v563_v63 = vld [vmem:[%s6686_s29 + $0x178] sm:$0xff]  ;;  %v560_v4 = vld [vmem:[%s6686_s29 + $0x160] sm:$0xff]  ;;  %v562_v7 = vld [vmem:[%s6686_s29 + $0x170] sm:$0xff] }
  0xfd   : > { %v4578_v6 = vpack.c.bf16 %v563_v63, %v559_v62  ;;  %v565_v8 = vld [vmem:[%s6686_s29 + $0x188] sm:$0xff]  ;;  %v567_v10 = vld [vmem:[%s6686_s29 + $0x198] sm:$0xff]  ;;  %v4292_v12 = vpack.c.bf16 %v560_v4, %v556_v3  ;;  %v4580_v13 = vpack.c.bf16 %v562_v7, %v558_v5  ;;  %v564_v15 = vld [vmem:[%s6686_s29 + $0x180] sm:$0xff] }
  0xfe   : > { %4285 = vmatpush1.bf16.msra.mxu0 %v4284_v52  ;;  %v569_v9 = vld [vmem:[%s6686_s29 + $0x1a8] sm:$0xff]  ;;  %v571_v11 = vld [vmem:[%s6686_s29 + $0x1b8] sm:$0xff]  ;;  %v568_v16 = vld [vmem:[%s6686_s29 + $0x1a0] sm:$0xff] }
  0xff   : > { %4573 = vmatpush1.bf16.msra.mxu1 %v4572_v53  ;;  %4287 = vmatprep.subr.bf16.mxu0 %v4286_v54  ;;  %v4294_v14 = vpack.c.bf16 %v569_v9, %v565_v8  ;;  %v566_v17 = vld [vmem:[%s6686_s29 + $0x190] sm:$0xff]  ;;  %v4582_v18 = vpack.c.bf16 %v571_v11, %v567_v10  ;;  %v573_v20 = vld [vmem:[%s6686_s29 + $0x1c8] sm:$0xff]  ;;  %v575_v22 = vld [vmem:[%s6686_s29 + $0x1d8] sm:$0xff]  ;;  %v4296_v24 = vpack.c.bf16 %v568_v16, %v564_v15 }
 0x100   : > { %4575 = vmatprep.subr.bf16.mxu1 %v4574_v58  ;;  %v570_v19 = vld [vmem:[%s6686_s29 + $0x1b0] sm:$0xff]  ;;  %v577_v21 = vld [vmem:[%s6686_s29 + $0x1e8] sm:$0xff]  ;;  %v579_v23 = vld [vmem:[%s6686_s29 + $0x1f8] sm:$0xff] }
 0x101   : > { %v4584_v25 = vpack.c.bf16 %v570_v19, %v566_v17  ;;  %v4298_v26 = vpack.c.bf16 %v577_v21, %v573_v20  ;;  %v572_v27 = vld [vmem:[%s6686_s29 + $0x1c0] sm:$0xff]  ;;  %v574_v29 = vld [vmem:[%s6686_s29 + $0x1d0] sm:$0xff]  ;;  %v4586_v30 = vpack.c.bf16 %v579_v23, %v575_v22  ;;  %v581_v32 = vld [vmem:[%s6686_s29 + $0x208] sm:$0xff] }
 0x102   : > { %4289 = vmatpush1.bf16.msra.mxu0 %v4288_v0  ;;  %v576_v28 = vld [vmem:[%s6686_s29 + $0x1e0] sm:$0xff]  ;;  %v578_v31 = vld [vmem:[%s6686_s29 + $0x1f0] sm:$0xff]  ;;  %v585_v33 = vld [vmem:[%s6686_s29 + $0x228] sm:$0xff] }
 0x103   : > { %4577 = vmatpush1.bf16.msra.mxu1 %v4576_v1  ;;  %4291 = vmatprep.subr.bf16.mxu0 %v4290_v2  ;;  %v583_v34 = vld [vmem:[%s6686_s29 + $0x218] sm:$0xff]  ;;  %v4300_v36 = vpack.c.bf16 %v576_v28, %v572_v27  ;;  %v4588_v37 = vpack.c.bf16 %v578_v31, %v574_v29  ;;  %v4302_v38 = vpack.c.bf16 %v585_v33, %v581_v32  ;;  %v580_v39 = vld [vmem:[%s6686_s29 + $0x200] sm:$0xff]  ;;  %v582_v41 = vld [vmem:[%s6686_s29 + $0x210] sm:$0xff] }
 0x104   : > { %4579 = vmatprep.subr.bf16.mxu1 %v4578_v6  ;;  %v587_v35 = vld [vmem:[%s6686_s29 + $0x238] sm:$0xff]  ;;  %v584_v40 = vld [vmem:[%s6686_s29 + $0x220] sm:$0xff]  ;;  %v586_v43 = vld [vmem:[%s6686_s29 + $0x230] sm:$0xff] }
 0x105   : > { %v4590_v42 = vpack.c.bf16 %v587_v35, %v583_v34  ;;  %v589_v44 = vld [vmem:[%s6686_s29 + $0x248] sm:$0xff]  ;;  %v591_v46 = vld [vmem:[%s6686_s29 + $0x258] sm:$0xff]  ;;  %v4304_v48 = vpack.c.bf16 %v584_v40, %v580_v39  ;;  %v4592_v49 = vpack.c.bf16 %v586_v43, %v582_v41  ;;  %v588_v51 = vld [vmem:[%s6686_s29 + $0x240] sm:$0xff] }
 0x106   : > { %4293 = vmatpush1.bf16.msra.mxu0 %v4292_v12  ;;  %v593_v45 = vld [vmem:[%s6686_s29 + $0x268] sm:$0xff]  ;;  %v595_v47 = vld [vmem:[%s6686_s29 + $0x278] sm:$0xff]  ;;  %v592_v52 = vld [vmem:[%s6686_s29 + $0x260] sm:$0xff] }
 0x107   : > { %4581 = vmatpush1.bf16.msra.mxu1 %v4580_v13  ;;  %4295 = vmatprep.subr.bf16.mxu0 %v4294_v14  ;;  %v4306_v50 = vpack.c.bf16 %v593_v45, %v589_v44  ;;  %v590_v53 = vld [vmem:[%s6686_s29 + $0x250] sm:$0xff]  ;;  %v4594_v54 = vpack.c.bf16 %v595_v47, %v591_v46  ;;  %v597_v56 = vld [vmem:[%s6686_s29 + $0x288] sm:$0xff]  ;;  %v599_v58 = vld [vmem:[%s6686_s29 + $0x298] sm:$0xff]  ;;  %v4308_v60 = vpack.c.bf16 %v592_v52, %v588_v51 }
 0x108   : > { %4583 = vmatprep.subr.bf16.mxu1 %v4582_v18  ;;  %v594_v55 = vld [vmem:[%s6686_s29 + $0x270] sm:$0xff]  ;;  %v601_v57 = vld [vmem:[%s6686_s29 + $0x2a8] sm:$0xff]  ;;  %v603_v59 = vld [vmem:[%s6686_s29 + $0x2b8] sm:$0xff] }
 0x109   : > { %v4596_v61 = vpack.c.bf16 %v594_v55, %v590_v53  ;;  %v4310_v62 = vpack.c.bf16 %v601_v57, %v597_v56  ;;  %v596_v63 = vld [vmem:[%s6686_s29 + $0x280] sm:$0xff]  ;;  %v598_v1 = vld [vmem:[%s6686_s29 + $0x290] sm:$0xff]  ;;  %v4598_v2 = vpack.c.bf16 %v603_v59, %v599_v58  ;;  %v605_v4 = vld [vmem:[%s6686_s29 + $0x2c8] sm:$0xff] }
 0x10a   : > { %4297 = vmatpush1.bf16.msra.mxu0 %v4296_v24  ;;  %v600_v0 = vld [vmem:[%s6686_s29 + $0x2a0] sm:$0xff]  ;;  %v602_v3 = vld [vmem:[%s6686_s29 + $0x2b0] sm:$0xff]  ;;  %v609_v5 = vld [vmem:[%s6686_s29 + $0x2e8] sm:$0xff] }
 0x10b   : > { %4585 = vmatpush1.bf16.msra.mxu1 %v4584_v25  ;;  %4299 = vmatprep.subr.bf16.mxu0 %v4298_v26  ;;  %v607_v6 = vld [vmem:[%s6686_s29 + $0x2d8] sm:$0xff]  ;;  %v4312_v8 = vpack.c.bf16 %v600_v0, %v596_v63  ;;  %v604_v9 = vld [vmem:[%s6686_s29 + $0x2c0] sm:$0xff]  ;;  %v4600_v10 = vpack.c.bf16 %v602_v3, %v598_v1  ;;  %v4314_v11 = vpack.c.bf16 %v609_v5, %v605_v4  ;;  %v606_v13 = vld [vmem:[%s6686_s29 + $0x2d0] sm:$0xff] }
 0x10c   : > { %4587 = vmatprep.subr.bf16.mxu1 %v4586_v30  ;;  %v611_v7 = vld [vmem:[%s6686_s29 + $0x2f8] sm:$0xff]  ;;  %v608_v12 = vld [vmem:[%s6686_s29 + $0x2e0] sm:$0xff]  ;;  %v610_v14 = vld [vmem:[%s6686_s29 + $0x2f0] sm:$0xff] }
 0x10d   : > { %v4602_v15 = vpack.c.bf16 %v611_v7, %v607_v6  ;;  %v613_v16 = vld [vmem:[%s6686_s29 + $0x308] sm:$0xff]  ;;  %v508_v18 = vld [vmem:[%s8473_s4 + $0x8] sm:$0xff]  ;;  %v4316_v21 = vpack.c.bf16 %v608_v12, %v604_v9  ;;  %v4604_v22 = vpack.c.bf16 %v610_v14, %v606_v13  ;;  %v614_v26 = vld [vmem:[%s6686_s29 + $0x310] sm:$0xff] }
 0x10e   : > { %4301 = vmatpush1.bf16.msra.mxu0 %v4300_v36  ;;  %v617_v17 = vld [vmem:[%s6686_s29 + $0x328] sm:$0xff]  ;;  %v615_v19 = vld [vmem:[%s6686_s29 + $0x318] sm:$0xff]  ;;  %1178 = vmatprep.mubr.f32.mxu0 %v508_v18  ;;  %v612_v24 = vld [vmem:[%s6686_s29 + $0x300] sm:$0xff] }
 0x10f   : > { %4589 = vmatpush1.bf16.msra.mxu1 %v4588_v37  ;;  %4303 = vmatprep.subr.bf16.mxu0 %v4302_v38  ;;  %v619_v20 = vld [vmem:[%s6686_s29 + $0x338] sm:$0xff]  ;;  %v4318_v23 = vpack.c.bf16 %v617_v17, %v613_v16  ;;  %v616_v25 = vld [vmem:[%s6686_s29 + $0x320] sm:$0xff]  ;;  %v618_v28 = vld [vmem:[%s6686_s29 + $0x330] sm:$0xff] }
 0x110   : > { %4591 = vmatprep.subr.bf16.mxu1 %v4590_v42  ;;  %1533 = vmatprep.mubr.f32.mxu1 %v508_v18  ;;  %v4606_v27 = vpack.c.bf16 %v619_v20, %v615_v19  ;;  %v621_v29 = vld [vmem:[%s6686_s29 + $0x348] sm:$0xff]  ;;  %v623_v31 = vld [vmem:[%s6686_s29 + $0x358] sm:$0xff]  ;;  %v4320_v33 = vpack.c.bf16 %v616_v25, %v612_v24  ;;  %v4608_v34 = vpack.c.bf16 %v618_v28, %v614_v26  ;;  %v620_v36 = vld [vmem:[%s6686_s29 + $0x340] sm:$0xff] }
 0x111   : > { %v625_v30 = vld [vmem:[%s6686_s29 + $0x368] sm:$0xff]  ;;  %v627_v32 = vld [vmem:[%s6686_s29 + $0x378] sm:$0xff]  ;;  %v624_v37 = vld [vmem:[%s6686_s29 + $0x360] sm:$0xff] }
 0x112   : > { %4305 = vmatpush1.bf16.msra.mxu0 %v4304_v48  ;;  %v4322_v35 = vpack.c.bf16 %v625_v30, %v621_v29  ;;  %v622_v38 = vld [vmem:[%s6686_s29 + $0x350] sm:$0xff]  ;;  %v4610_v39 = vpack.c.bf16 %v627_v32, %v623_v31  ;;  %v629_v41 = vld [vmem:[%s6686_s29 + $0x388] sm:$0xff]  ;;  %v631_v43 = vld [vmem:[%s6686_s29 + $0x398] sm:$0xff]  ;;  %v4324_v45 = vpack.c.bf16 %v624_v37, %v620_v36 }
 0x113   : > { %4593 = vmatpush1.bf16.msra.mxu1 %v4592_v49  ;;  %4307 = vmatprep.subr.bf16.mxu0 %v4306_v50  ;;  %v626_v40 = vld [vmem:[%s6686_s29 + $0x370] sm:$0xff]  ;;  %v633_v42 = vld [vmem:[%s6686_s29 + $0x3a8] sm:$0xff]  ;;  %v635_v44 = vld [vmem:[%s6686_s29 + $0x3b8] sm:$0xff] }
 0x114   : > { %4595 = vmatprep.subr.bf16.mxu1 %v4594_v54  ;;  %v4612_v46 = vpack.c.bf16 %v626_v40, %v622_v38  ;;  %v4326_v47 = vpack.c.bf16 %v633_v42, %v629_v41  ;;  %v628_v48 = vld [vmem:[%s6686_s29 + $0x380] sm:$0xff]  ;;  %v630_v50 = vld [vmem:[%s6686_s29 + $0x390] sm:$0xff]  ;;  %v4614_v51 = vpack.c.bf16 %v635_v44, %v631_v43  ;;  %v637_v53 = vld [vmem:[%s6686_s29 + $0x3c8] sm:$0xff] }
 0x115   : > { %v632_v49 = vld [vmem:[%s6686_s29 + $0x3a0] sm:$0xff]  ;;  %v634_v52 = vld [vmem:[%s6686_s29 + $0x3b0] sm:$0xff]  ;;  %v641_v54 = vld [vmem:[%s6686_s29 + $0x3e8] sm:$0xff] }
 0x116   : > { %4309 = vmatpush1.bf16.msra.mxu0 %v4308_v60  ;;  %v639_v55 = vld [vmem:[%s6686_s29 + $0x3d8] sm:$0xff]  ;;  %v4328_v57 = vpack.c.bf16 %v632_v49, %v628_v48  ;;  %v4616_v58 = vpack.c.bf16 %v634_v52, %v630_v50  ;;  %v4330_v59 = vpack.c.bf16 %v641_v54, %v637_v53  ;;  %v636_v60 = vld [vmem:[%s6686_s29 + $0x3c0] sm:$0xff]  ;;  %v642_v0 = vld [vmem:[%s6686_s29 + $0x3f0] sm:$0xff] }
 0x117   : > { %4597 = vmatpush1.bf16.msra.mxu1 %v4596_v61  ;;  %4311 = vmatprep.subr.bf16.mxu0 %v4310_v62  ;;  %v643_v56 = vld [vmem:[%s6686_s29 + $0x3f8] sm:$0xff]  ;;  %v640_v61 = vld [vmem:[%s6686_s29 + $0x3e0] sm:$0xff]  ;;  %v638_v62 = vld [vmem:[%s6686_s29 + $0x3d0] sm:$0xff] }
 0x118   : > { %4599 = vmatprep.subr.bf16.mxu1 %v4598_v2  ;;  %v4618_v63 = vpack.c.bf16 %v643_v56, %v639_v55  ;;  %v645_v1 = vld [vmem:[%s6686_s29 + $0x408] sm:$0xff]  ;;  %v647_v3 = vld [vmem:[%s6686_s29 + $0x418] sm:$0xff]  ;;  %v4332_v5 = vpack.c.bf16 %v640_v61, %v636_v60  ;;  %v4620_v6 = vpack.c.bf16 %v642_v0, %v638_v62  ;;  %v648_v9 = vld [vmem:[%s6686_s29 + $0x420] sm:$0xff] }
 0x119   : > { %v649_v2 = vld [vmem:[%s6686_s29 + $0x428] sm:$0xff]  ;;  %v651_v4 = vld [vmem:[%s6686_s29 + $0x438] sm:$0xff]  ;;  %v650_v12 = vld [vmem:[%s6686_s29 + $0x430] sm:$0xff] }
 0x11a   : > { %4313 = vmatpush1.bf16.msra.mxu0 %v4312_v8  ;;  %v4334_v7 = vpack.c.bf16 %v649_v2, %v645_v1  ;;  %v644_v8 = vld [vmem:[%s6686_s29 + $0x400] sm:$0xff]  ;;  %v653_v13 = vld [vmem:[%s6686_s29 + $0x448] sm:$0xff]  ;;  %v659_v16 = vld [vmem:[%s6686_s29 + $0x478] sm:$0xff] }
 0x11b   : > { %4601 = vmatpush1.bf16.msra.mxu1 %v4600_v10  ;;  %4315 = vmatprep.subr.bf16.mxu0 %v4314_v11  ;;  %v646_v10 = vld [vmem:[%s6686_s29 + $0x410] sm:$0xff]  ;;  %v4622_v11 = vpack.c.bf16 %v651_v4, %v647_v3  ;;  %v657_v14 = vld [vmem:[%s6686_s29 + $0x468] sm:$0xff]  ;;  %v4336_v18 = vpack.c.bf16 %v648_v9, %v644_v8  ;;  %v663_v28 = vld [vmem:[%s6686_s29 + $0x498] sm:$0xff] }
 0x11c   : > { %4603 = vmatprep.subr.bf16.mxu1 %v4602_v15  ;;  %v655_v15 = vld [vmem:[%s6686_s29 + $0x458] sm:$0xff]  ;;  %v4624_v19 = vpack.c.bf16 %v650_v12, %v646_v10  ;;  %v4338_v20 = vpack.c.bf16 %v657_v14, %v653_v13  ;;  %v658_v25 = vld [vmem:[%s6686_s29 + $0x470] sm:$0xff]  ;;  %v661_v26 = vld [vmem:[%s6686_s29 + $0x488] sm:$0xff] }
 0x11d   : > { %v507_v17 = vld [vmem:[%s8473_s4] sm:$0xff]  ;;  %v4626_v24 = vpack.c.bf16 %v659_v16, %v655_v15  ;;  %v669_v38 = vld [vmem:[%s6686_s29 + $0x4c8] sm:$0xff]  ;;  %v692_v15 = vld [vmem:[%s6686_s29 + $0x580] sm:$0xff] }
 0x11e   : > { %4317 = vmatpush1.bf16.msra.mxu0 %v4316_v21  ;;  %v652_v21 = vld [vmem:[%s6686_s29 + $0x440] sm:$0xff]  ;;  %v667_v29 = vld [vmem:[%s6686_s29 + $0x4b8] sm:$0xff]  ;;  %v666_v37 = vld [vmem:[%s6686_s29 + $0x4b0] sm:$0xff] }
 0x11f   : > { %4605 = vmatpush1.bf16.msra.mxu1 %v4604_v22  ;;  %4319 = vmatprep.subr.bf16.mxu0 %v4318_v23  ;;  %v656_v22 = vld [vmem:[%s6686_s29 + $0x460] sm:$0xff]  ;;  %v654_v23 = vld [vmem:[%s6686_s29 + $0x450] sm:$0xff]  ;;  %v4630_v36 = vpack.c.bf16 %v667_v29, %v663_v28  ;;  %v671_v40 = vld [vmem:[%s6686_s29 + $0x4d8] sm:$0xff] }
 0x120   : > { %4607 = vmatprep.subr.bf16.mxu1 %v4606_v27  ;;  %v665_v27 = vld [vmem:[%s6686_s29 + $0x4a8] sm:$0xff]  ;;  %v4340_v30 = vpack.c.bf16 %v656_v22, %v652_v21  ;;  %v4628_v31 = vpack.c.bf16 %v658_v25, %v654_v23  ;;  %v675_v41 = vld [vmem:[%s6686_s29 + $0x4f8] sm:$0xff]  ;;  %v674_v49 = vld [vmem:[%s6686_s29 + $0x4f0] sm:$0xff] }
 0x121   : > { %v4342_v32 = vpack.c.bf16 %v665_v27, %v661_v26  ;;  %v4634_v48 = vpack.c.bf16 %v675_v41, %v671_v40  ;;  %v677_v50 = vld [vmem:[%s6686_s29 + $0x508] sm:$0xff]  ;;  %v679_v52 = vld [vmem:[%s6686_s29 + $0x518] sm:$0xff]  ;;  %v682_v61 = vld [vmem:[%s6686_s29 + $0x530] sm:$0xff] }
 0x122   : > { %4321 = vmatpush1.bf16.msra.mxu0 %v4320_v33  ;;  %v660_v33 = vld [vmem:[%s6686_s29 + $0x480] sm:$0xff]  ;;  %v683_v53 = vld [vmem:[%s6686_s29 + $0x538] sm:$0xff]  ;;  %v685_v62 = vld [vmem:[%s6686_s29 + $0x548] sm:$0xff] }
 0x123   : > { %4609 = vmatpush1.bf16.msra.mxu1 %v4608_v34  ;;  %4323 = vmatprep.subr.bf16.mxu0 %v4322_v35  ;;  %v664_v34 = vld [vmem:[%s6686_s29 + $0x4a0] sm:$0xff]  ;;  %v662_v35 = vld [vmem:[%s6686_s29 + $0x490] sm:$0xff]  ;;  %v4638_v60 = vpack.c.bf16 %v683_v53, %v679_v52  ;;  %v687_v0 = vld [vmem:[%s6686_s29 + $0x558] sm:$0xff] }
 0x124   : > { %4611 = vmatprep.subr.bf16.mxu1 %v4610_v39  ;;  %v673_v39 = vld [vmem:[%s6686_s29 + $0x4e8] sm:$0xff]  ;;  %v4344_v42 = vpack.c.bf16 %v664_v34, %v660_v33  ;;  %v4632_v43 = vpack.c.bf16 %v666_v37, %v662_v35  ;;  %v691_v1 = vld [vmem:[%s6686_s29 + $0x578] sm:$0xff]  ;;  %v690_v9 = vld [vmem:[%s6686_s29 + $0x570] sm:$0xff] }
 0x125   : > { %v4346_v44 = vpack.c.bf16 %v673_v39, %v669_v38  ;;  %v4642_v8 = vpack.c.bf16 %v691_v1, %v687_v0  ;;  %v693_v10 = vld [vmem:[%s6686_s29 + $0x588] sm:$0xff]  ;;  %v695_v12 = vld [vmem:[%s6686_s29 + $0x598] sm:$0xff]  ;;  %v706_v34 = vld [vmem:[%s6686_s29 + $0x5f0] sm:$0xff] }
 0x126   : > { %4325 = vmatpush1.bf16.msra.mxu0 %v4324_v45  ;;  %v668_v45 = vld [vmem:[%s6686_s29 + $0x4c0] sm:$0xff]  ;;  %v699_v13 = vld [vmem:[%s6686_s29 + $0x5b8] sm:$0xff]  ;;  %v701_v22 = vld [vmem:[%s6686_s29 + $0x5c8] sm:$0xff] }
 0x127   : > { %4613 = vmatpush1.bf16.msra.mxu1 %v4612_v46  ;;  %4327 = vmatprep.subr.bf16.mxu0 %v4326_v47  ;;  %v672_v46 = vld [vmem:[%s6686_s29 + $0x4e0] sm:$0xff]  ;;  %v670_v47 = vld [vmem:[%s6686_s29 + $0x4d0] sm:$0xff]  ;;  %v4646_v21 = vpack.c.bf16 %v699_v13, %v695_v12  ;;  %v705_v23 = vld [vmem:[%s6686_s29 + $0x5e8] sm:$0xff] }
 0x128   : > { %4615 = vmatprep.subr.bf16.mxu1 %v4614_v51  ;;  %v681_v51 = vld [vmem:[%s6686_s29 + $0x528] sm:$0xff]  ;;  %v4348_v54 = vpack.c.bf16 %v672_v46, %v668_v45  ;;  %v4636_v55 = vpack.c.bf16 %v674_v49, %v670_v47  ;;  %v703_v25 = vld [vmem:[%s6686_s29 + $0x5d8] sm:$0xff]  ;;  %v4362_v29 = vpack.c.bf16 %v705_v23, %v701_v22  ;;  %v714_v46 = vld [vmem:[%s6686_s29 + $0x630] sm:$0xff] }
 0x129   : > { %v4350_v56 = vpack.c.bf16 %v681_v51, %v677_v50  ;;  %v707_v26 = vld [vmem:[%s6686_s29 + $0x5f8] sm:$0xff]  ;;  %v709_v35 = vld [vmem:[%s6686_s29 + $0x608] sm:$0xff] }
 0x12a   : > { %4329 = vmatpush1.bf16.msra.mxu0 %v4328_v57  ;;  %v676_v57 = vld [vmem:[%s6686_s29 + $0x500] sm:$0xff]  ;;  %v4650_v33 = vpack.c.bf16 %v707_v26, %v703_v25  ;;  %v711_v37 = vld [vmem:[%s6686_s29 + $0x618] sm:$0xff]  ;;  %v717_v47 = vld [vmem:[%s6686_s29 + $0x648] sm:$0xff] }
 0x12b   : > { %4617 = vmatpush1.bf16.msra.mxu1 %v4616_v58  ;;  %4331 = vmatprep.subr.bf16.mxu0 %v4330_v59  ;;  %v680_v58 = vld [vmem:[%s6686_s29 + $0x520] sm:$0xff]  ;;  %v678_v59 = vld [vmem:[%s6686_s29 + $0x510] sm:$0xff]  ;;  %v715_v38 = vld [vmem:[%s6686_s29 + $0x638] sm:$0xff] }
 0x12c   : > { %4619 = vmatprep.subr.bf16.mxu1 %v4618_v63  ;;  %v689_v63 = vld [vmem:[%s6686_s29 + $0x568] sm:$0xff]  ;;  %v4352_v2 = vpack.c.bf16 %v680_v58, %v676_v57  ;;  %v4640_v3 = vpack.c.bf16 %v682_v61, %v678_v59  ;;  %v4654_v45 = vpack.c.bf16 %v715_v38, %v711_v37  ;;  %v719_v49 = vld [vmem:[%s6686_s29 + $0x658] sm:$0xff]  ;;  %v722_v58 = vld [vmem:[%s6686_s29 + $0x670] sm:$0xff] }
 0x12d   : > { %v4354_v4 = vpack.c.bf16 %v689_v63, %v685_v62  ;;  %v723_v50 = vld [vmem:[%s6686_s29 + $0x678] sm:$0xff]  ;;  %v725_v59 = vld [vmem:[%s6686_s29 + $0x688] sm:$0xff]  ;;  %v740_v26 = vld [vmem:[%s6686_s29 + $0x700] sm:$0xff] }
 0x12e   : > { %4333 = vmatpush1.bf16.msra.mxu0 %v4332_v5  ;;  %v684_v5 = vld [vmem:[%s6686_s29 + $0x540] sm:$0xff]  ;;  %v4658_v57 = vpack.c.bf16 %v723_v50, %v719_v49  ;;  %v727_v61 = vld [vmem:[%s6686_s29 + $0x698] sm:$0xff] }
 0x12f   : > { %4621 = vmatpush1.bf16.msra.mxu1 %v4620_v6  ;;  %4335 = vmatprep.subr.bf16.mxu0 %v4334_v7  ;;  %v688_v6 = vld [vmem:[%s6686_s29 + $0x560] sm:$0xff]  ;;  %v686_v7 = vld [vmem:[%s6686_s29 + $0x550] sm:$0xff]  ;;  %v731_v62 = vld [vmem:[%s6686_s29 + $0x6b8] sm:$0xff] }
 0x130   : > { %4623 = vmatprep.subr.bf16.mxu1 %v4622_v11  ;;  %v697_v11 = vld [vmem:[%s6686_s29 + $0x5a8] sm:$0xff]  ;;  %v4356_v14 = vpack.c.bf16 %v688_v6, %v684_v5  ;;  %v4644_v16 = vpack.c.bf16 %v690_v9, %v686_v7  ;;  %v4662_v5 = vpack.c.bf16 %v731_v62, %v727_v61  ;;  %v730_v6 = vld [vmem:[%s6686_s29 + $0x6b0] sm:$0xff]  ;;  %v735_v9 = vld [vmem:[%s6686_s29 + $0x6d8] sm:$0xff] }
 0x131   : > { %1179 = vmatmul.mubr.f32.vlgmr.msra.gmra.mrb[0].mxu0 %v507_v17  ;;  %v733_v7 = vld [vmem:[%s6686_s29 + $0x6c8] sm:$0xff]  ;;  %v747_v22 = vld [vmem:[%s6686_s29 + $0x738] sm:$0xff]  ;;  %v748_v38 = vld [vmem:[%s6686_s29 + $0x740] sm:$0xff] }
 0x132   : > { %4337 = vmatpush1.bf16.msra.mxu0 %v4336_v18  ;;  %1534 = vmatmul.mubr.f32.vlgmr.msra.gmra.mrb[0].mxu1 %v507_v17  ;;  %v4358_v17 = vpack.c.bf16 %v697_v11, %v693_v10  ;;  %v696_v18 = vld [vmem:[%s6686_s29 + $0x5a0] sm:$0xff]  ;;  %v739_v10 = vld [vmem:[%s6686_s29 + $0x6f8] sm:$0xff] }
 0x133   : > { %4625 = vmatpush1.bf16.msra.mxu1 %v4624_v19  ;;  %4339 = vmatprep.subr.bf16.mxu0 %v4338_v20  ;;  %v694_v19 = vld [vmem:[%s6686_s29 + $0x590] sm:$0xff]  ;;  %v4360_v27 = vpack.c.bf16 %v696_v18, %v692_v15  ;;  %v736_v15 = vld [vmem:[%s6686_s29 + $0x6e0] sm:$0xff] }
 0x134   : > { %4627 = vmatprep.subr.bf16.mxu1 %v4626_v24  ;;  %v698_v20 = vld [vmem:[%s6686_s29 + $0x5b0] sm:$0xff]  ;;  %v756_v50 = vld [vmem:[%s6686_s29 + $0x780] sm:$0xff] }
 0x135   : > { %v510_v24 = vld [vmem:[%s8473_s4 + $0x18] sm:$0xff]  ;;  %v4648_v28 = vpack.c.bf16 %v698_v20, %v694_v19  ;;  %v764_v62 = vld [vmem:[%s6686_s29 + $0x7c0] sm:$0xff] }
 0x136   : > { %4341 = vmatpush1.bf16.msra.mxu0 %v4340_v30  ;;  %1249 = vmatprep.mubr.f32.mxu0 %v510_v24  ;;  %v700_v30 = vld [vmem:[%s6686_s29 + $0x5c0] sm:$0xff]  ;;  %v738_v18 = vld [vmem:[%s6686_s29 + $0x6f0] sm:$0xff]  ;;  %v741_v19 = vld [vmem:[%s6686_s29 + $0x708] sm:$0xff] }
 0x137   : > { %4629 = vmatpush1.bf16.msra.mxu1 %v4628_v31  ;;  %4343 = vmatprep.subr.bf16.mxu0 %v4342_v32  ;;  %v704_v31 = vld [vmem:[%s6686_s29 + $0x5e0] sm:$0xff]  ;;  %v702_v32 = vld [vmem:[%s6686_s29 + $0x5d0] sm:$0xff]  ;;  %v745_v20 = vld [vmem:[%s6686_s29 + $0x728] sm:$0xff] }
 0x138   : > { %4631 = vmatprep.subr.bf16.mxu1 %v4630_v36  ;;  %1604 = vmatprep.mubr.f32.mxu1 %v510_v24  ;;  %v713_v36 = vld [vmem:[%s6686_s29 + $0x628] sm:$0xff]  ;;  %v4364_v39 = vpack.c.bf16 %v704_v31, %v700_v30  ;;  %v4652_v40 = vpack.c.bf16 %v706_v34, %v702_v32  ;;  %v4382_v25 = vpack.c.bf16 %v745_v20, %v741_v19  ;;  %v746_v30 = vld [vmem:[%s6686_s29 + $0x730] sm:$0xff]  ;;  %v755_v34 = vld [vmem:[%s6686_s29 + $0x778] sm:$0xff] }
 0x139   : > { %v4366_v41 = vpack.c.bf16 %v713_v36, %v709_v35  ;;  %v749_v31 = vld [vmem:[%s6686_s29 + $0x748] sm:$0xff] }
 0x13a   : > { %4345 = vmatpush1.bf16.msra.mxu0 %v4344_v42  ;;  %v708_v42 = vld [vmem:[%s6686_s29 + $0x600] sm:$0xff]  ;;  %v753_v32 = vld [vmem:[%s6686_s29 + $0x768] sm:$0xff] }
 0x13b   : > { %4633 = vmatpush1.bf16.msra.mxu1 %v4632_v43  ;;  %4347 = vmatprep.subr.bf16.mxu0 %v4346_v44  ;;  %v712_v43 = vld [vmem:[%s6686_s29 + $0x620] sm:$0xff]  ;;  %v710_v44 = vld [vmem:[%s6686_s29 + $0x610] sm:$0xff]  ;;  %v4386_v37 = vpack.c.bf16 %v753_v32, %v749_v31  ;;  %v795_v31 = vld [vmem:[%s6686_s29 + $0x8b8] sm:$0xff] }
 0x13c   : > { %4635 = vmatprep.subr.bf16.mxu1 %v4634_v48  ;;  %v721_v48 = vld [vmem:[%s6686_s29 + $0x668] sm:$0xff]  ;;  %v4368_v51 = vpack.c.bf16 %v712_v43, %v708_v42  ;;  %v4656_v52 = vpack.c.bf16 %v714_v46, %v710_v44  ;;  %v754_v42 = vld [vmem:[%s6686_s29 + $0x770] sm:$0xff]  ;;  %v763_v46 = vld [vmem:[%s6686_s29 + $0x7b8] sm:$0xff] }
 0x13d   : > { %v4370_v53 = vpack.c.bf16 %v721_v48, %v717_v47  ;;  %v757_v43 = vld [vmem:[%s6686_s29 + $0x788] sm:$0xff]  ;;  %v512_v32 = vld [vmem:[%s8473_s4 + $0x28] sm:$0xff] }
 0x13e   : > { %4349 = vmatpush1.bf16.msra.mxu0 %v4348_v54  ;;  %v716_v54 = vld [vmem:[%s6686_s29 + $0x640] sm:$0xff]  ;;  %v761_v44 = vld [vmem:[%s6686_s29 + $0x7a8] sm:$0xff] }
 0x13f   : > { %4637 = vmatpush1.bf16.msra.mxu1 %v4636_v55  ;;  %4351 = vmatprep.subr.bf16.mxu0 %v4350_v56  ;;  %v720_v55 = vld [vmem:[%s6686_s29 + $0x660] sm:$0xff]  ;;  %v718_v56 = vld [vmem:[%s6686_s29 + $0x650] sm:$0xff]  ;;  %v4390_v49 = vpack.c.bf16 %v761_v44, %v757_v43  ;;  %v799_v43 = vld [vmem:[%s6686_s29 + $0x8d8] sm:$0xff] }
 0x140   : > { %4639 = vmatprep.subr.bf16.mxu1 %v4638_v60  ;;  %v729_v60 = vld [vmem:[%s6686_s29 + $0x6a8] sm:$0xff]  ;;  %v4372_v63 = vpack.c.bf16 %v720_v55, %v716_v54  ;;  %v4660_v0 = vpack.c.bf16 %v722_v58, %v718_v56  ;;  %v762_v54 = vld [vmem:[%s6686_s29 + $0x7b0] sm:$0xff]  ;;  %v771_v58 = vld [vmem:[%s6686_s29 + $0x7f8] sm:$0xff] }
 0x141   : > { %v4374_v1 = vpack.c.bf16 %v729_v60, %v725_v59  ;;  %v765_v55 = vld [vmem:[%s6686_s29 + $0x7c8] sm:$0xff]  ;;  %v803_v44 = vld [vmem:[%s6686_s29 + $0x8f8] sm:$0xff] }
 0x142   : > { %4353 = vmatpush1.bf16.msra.mxu0 %v4352_v2  ;;  %v724_v2 = vld [vmem:[%s6686_s29 + $0x680] sm:$0xff]  ;;  %v769_v56 = vld [vmem:[%s6686_s29 + $0x7e8] sm:$0xff] }
 0x143   : > { %4641 = vmatpush1.bf16.msra.mxu1 %v4640_v3  ;;  %4355 = vmatprep.subr.bf16.mxu0 %v4354_v4  ;;  %v728_v3 = vld [vmem:[%s6686_s29 + $0x6a0] sm:$0xff]  ;;  %v726_v4 = vld [vmem:[%s6686_s29 + $0x690] sm:$0xff]  ;;  %v4394_v61 = vpack.c.bf16 %v769_v56, %v765_v55  ;;  %v807_v55 = vld [vmem:[%s6686_s29 + $0x918] sm:$0xff] }
 0x144   : > { %4643 = vmatprep.subr.bf16.mxu1 %v4642_v8  ;;  %v737_v8 = vld [vmem:[%s6686_s29 + $0x6e8] sm:$0xff]  ;;  %v4376_v11 = vpack.c.bf16 %v728_v3, %v724_v2  ;;  %v4664_v12 = vpack.c.bf16 %v730_v6, %v726_v4  ;;  %v770_v2 = vld [vmem:[%s6686_s29 + $0x7f0] sm:$0xff]  ;;  %v779_v6 = vld [vmem:[%s6686_s29 + $0x838] sm:$0xff] }
 0x145   : > { %v4378_v13 = vpack.c.bf16 %v737_v8, %v733_v7  ;;  %v773_v3 = vld [vmem:[%s6686_s29 + $0x808] sm:$0xff]  ;;  %v811_v56 = vld [vmem:[%s6686_s29 + $0x938] sm:$0xff] }
 0x146   : > { %4357 = vmatpush1.bf16.msra.mxu0 %v4356_v14  ;;  %v732_v14 = vld [vmem:[%s6686_s29 + $0x6c0] sm:$0xff]  ;;  %v777_v4 = vld [vmem:[%s6686_s29 + $0x828] sm:$0xff] }
 0x147   : > { %4645 = vmatpush1.bf16.msra.mxu1 %v4644_v16  ;;  %4359 = vmatprep.subr.bf16.mxu0 %v4358_v17  ;;  %v734_v16 = vld [vmem:[%s6686_s29 + $0x6d0] sm:$0xff]  ;;  %v4666_v17 = vpack.c.bf16 %v739_v10, %v735_v9  ;;  %v4380_v23 = vpack.c.bf16 %v736_v15, %v732_v14  ;;  %v4398_v9 = vpack.c.bf16 %v777_v4, %v773_v3  ;;  %v772_v10 = vld [vmem:[%s6686_s29 + $0x800] sm:$0xff]  ;;  %v781_v15 = vld [vmem:[%s6686_s29 + $0x848] sm:$0xff] }
 0x148   : > { %4647 = vmatprep.subr.bf16.mxu1 %v4646_v21  ;;  %v743_v21 = vld [vmem:[%s6686_s29 + $0x718] sm:$0xff]  ;;  %v4668_v24 = vpack.c.bf16 %v738_v18, %v734_v16  ;;  %v778_v14 = vld [vmem:[%s6686_s29 + $0x830] sm:$0xff]  ;;  %v785_v16 = vld [vmem:[%s6686_s29 + $0x868] sm:$0xff] }
 0x149   : > { %v787_v18 = vld [vmem:[%s6686_s29 + $0x878] sm:$0xff]  ;;  %v509_v19 = vld [vmem:[%s8473_s4 + $0x10] sm:$0xff] }
 0x14a   : > { %4361 = vmatpush1.bf16.msra.mxu0 %v4360_v27  ;;  %v744_v27 = vld [vmem:[%s6686_s29 + $0x720] sm:$0xff]  ;;  %v815_v3 = vld [vmem:[%s6686_s29 + $0x958] sm:$0xff] }
 0x14b   : > { %4649 = vmatpush1.bf16.msra.mxu1 %v4648_v28  ;;  %4363 = vmatprep.subr.bf16.mxu0 %v4362_v29  ;;  %v742_v28 = vld [vmem:[%s6686_s29 + $0x710] sm:$0xff]  ;;  %v4670_v29 = vpack.c.bf16 %v747_v22, %v743_v21  ;;  %v4384_v35 = vpack.c.bf16 %v744_v27, %v740_v26  ;;  %v4402_v22 = vpack.c.bf16 %v785_v16, %v781_v15  ;;  %v819_v4 = vld [vmem:[%s6686_s29 + $0x978] sm:$0xff] }
 0x14c   : > { %4651 = vmatprep.subr.bf16.mxu1 %v4650_v33  ;;  %v751_v33 = vld [vmem:[%s6686_s29 + $0x758] sm:$0xff]  ;;  %v4672_v36 = vpack.c.bf16 %v746_v30, %v742_v28  ;;  %v786_v27 = vld [vmem:[%s6686_s29 + $0x870] sm:$0xff]  ;;  %v789_v28 = vld [vmem:[%s6686_s29 + $0x888] sm:$0xff] }
 0x14d   : > { %v791_v30 = vld [vmem:[%s6686_s29 + $0x898] sm:$0xff] }
 0x14e   : > { %4365 = vmatpush1.bf16.msra.mxu0 %v4364_v39  ;;  %v752_v39 = vld [vmem:[%s6686_s29 + $0x760] sm:$0xff]  ;;  %v823_v15 = vld [vmem:[%s6686_s29 + $0x998] sm:$0xff] }
 0x14f   : > { %4653 = vmatpush1.bf16.msra.mxu1 %v4652_v40  ;;  %4367 = vmatprep.subr.bf16.mxu0 %v4366_v41  ;;  %v750_v40 = vld [vmem:[%s6686_s29 + $0x750] sm:$0xff]  ;;  %v4674_v41 = vpack.c.bf16 %v755_v34, %v751_v33  ;;  %v4388_v47 = vpack.c.bf16 %v752_v39, %v748_v38  ;;  %v4694_v39 = vpack.c.bf16 %v795_v31, %v791_v30  ;;  %v827_v16 = vld [vmem:[%s6686_s29 + $0x9b8] sm:$0xff] }
 0x150   : > { %4655 = vmatprep.subr.bf16.mxu1 %v4654_v45  ;;  %v759_v45 = vld [vmem:[%s6686_s29 + $0x798] sm:$0xff]  ;;  %v4676_v48 = vpack.c.bf16 %v754_v42, %v750_v40  ;;  %v790_v38 = vld [vmem:[%s6686_s29 + $0x890] sm:$0xff]  ;;  %v801_v42 = vld [vmem:[%s6686_s29 + $0x8e8] sm:$0xff] }
 0x151   : > { %v794_v40 = vld [vmem:[%s6686_s29 + $0x8b0] sm:$0xff] }
 0x152   : > { %4369 = vmatpush1.bf16.msra.mxu0 %v4368_v51  ;;  %v760_v51 = vld [vmem:[%s6686_s29 + $0x7a0] sm:$0xff] }
 0x153   : > { %4657 = vmatpush1.bf16.msra.mxu1 %v4656_v52  ;;  %4371 = vmatprep.subr.bf16.mxu0 %v4370_v53  ;;  %v758_v52 = vld [vmem:[%s6686_s29 + $0x790] sm:$0xff]  ;;  %v4678_v53 = vpack.c.bf16 %v763_v46, %v759_v45  ;;  %v4392_v59 = vpack.c.bf16 %v760_v51, %v756_v50  ;;  %v4696_v46 = vpack.c.bf16 %v794_v40, %v790_v38  ;;  %v841_v38 = vld [vmem:[%s6686_s29 + $0xa28] sm:$0xff]  ;;  %v843_v40 = vld [vmem:[%s6686_s29 + $0xa38] sm:$0xff] }
 0x154   : > { %4659 = vmatprep.subr.bf16.mxu1 %v4658_v57  ;;  %v767_v57 = vld [vmem:[%s6686_s29 + $0x7d8] sm:$0xff]  ;;  %v4680_v60 = vpack.c.bf16 %v762_v54, %v758_v52  ;;  %v798_v50 = vld [vmem:[%s6686_s29 + $0x8d0] sm:$0xff]  ;;  %v4698_v51 = vpack.c.bf16 %v803_v44, %v799_v43  ;;  %v809_v54 = vld [vmem:[%s6686_s29 + $0x928] sm:$0xff] }
 0x155   : > { %v802_v52 = vld [vmem:[%s6686_s29 + $0x8f0] sm:$0xff]  ;;  %v836_v44 = vld [vmem:[%s6686_s29 + $0xa00] sm:$0xff] }
 0x156   : > { %4373 = vmatpush1.bf16.msra.mxu0 %v4372_v63  ;;  %v768_v63 = vld [vmem:[%s6686_s29 + $0x7e0] sm:$0xff] }
 0x157   : > { %4661 = vmatpush1.bf16.msra.mxu1 %v4660_v0  ;;  %4375 = vmatprep.subr.bf16.mxu0 %v4374_v1  ;;  %v766_v0 = vld [vmem:[%s6686_s29 + $0x7d0] sm:$0xff]  ;;  %v4682_v1 = vpack.c.bf16 %v771_v58, %v767_v57  ;;  %v4396_v7 = vpack.c.bf16 %v768_v63, %v764_v62  ;;  %v4700_v58 = vpack.c.bf16 %v802_v52, %v798_v50  ;;  %v849_v50 = vld [vmem:[%s6686_s29 + $0xa68] sm:$0xff]  ;;  %v851_v52 = vld [vmem:[%s6686_s29 + $0xa78] sm:$0xff] }
 0x158   : > { %4663 = vmatprep.subr.bf16.mxu1 %v4662_v5  ;;  %v775_v5 = vld [vmem:[%s6686_s29 + $0x818] sm:$0xff]  ;;  %v4684_v8 = vpack.c.bf16 %v770_v2, %v766_v0  ;;  %v806_v62 = vld [vmem:[%s6686_s29 + $0x910] sm:$0xff]  ;;  %v4702_v63 = vpack.c.bf16 %v811_v56, %v807_v55  ;;  %v817_v2 = vld [vmem:[%s6686_s29 + $0x968] sm:$0xff] }
 0x159   : > { %v810_v0 = vld [vmem:[%s6686_s29 + $0x930] sm:$0xff]  ;;  %v844_v56 = vld [vmem:[%s6686_s29 + $0xa40] sm:$0xff] }
 0x15a   : > { %4377 = vmatpush1.bf16.msra.mxu0 %v4376_v11  ;;  %v776_v11 = vld [vmem:[%s6686_s29 + $0x820] sm:$0xff] }
 0x15b   : > { %4665 = vmatpush1.bf16.msra.mxu1 %v4664_v12  ;;  %4379 = vmatprep.subr.bf16.mxu0 %v4378_v13  ;;  %v774_v12 = vld [vmem:[%s6686_s29 + $0x810] sm:$0xff]  ;;  %v4686_v13 = vpack.c.bf16 %v779_v6, %v775_v5  ;;  %v4400_v20 = vpack.c.bf16 %v776_v11, %v772_v10  ;;  %v4704_v6 = vpack.c.bf16 %v810_v0, %v806_v62  ;;  %v857_v62 = vld [vmem:[%s6686_s29 + $0xaa8] sm:$0xff]  ;;  %v859_v0 = vld [vmem:[%s6686_s29 + $0xab8] sm:$0xff] }
 0x15c   : > { %4667 = vmatprep.subr.bf16.mxu1 %v4666_v17  ;;  %v783_v17 = vld [vmem:[%s6686_s29 + $0x858] sm:$0xff]  ;;  %v4688_v21 = vpack.c.bf16 %v778_v14, %v774_v12  ;;  %v814_v10 = vld [vmem:[%s6686_s29 + $0x950] sm:$0xff]  ;;  %v4706_v11 = vpack.c.bf16 %v819_v4, %v815_v3  ;;  %v825_v14 = vld [vmem:[%s6686_s29 + $0x9a8] sm:$0xff] }
 0x15d   : > { %v4690_v26 = vpack.c.bf16 %v787_v18, %v783_v17  ;;  %v818_v12 = vld [vmem:[%s6686_s29 + $0x970] sm:$0xff]  ;;  %v852_v4 = vld [vmem:[%s6686_s29 + $0xa80] sm:$0xff] }
 0x15e   : > { %4381 = vmatpush1.bf16.msra.mxu0 %v4380_v23  ;;  %v780_v23 = vld [vmem:[%s6686_s29 + $0x840] sm:$0xff]  ;;  %v4708_v18 = vpack.c.bf16 %v818_v12, %v814_v10  ;;  %v865_v10 = vld [vmem:[%s6686_s29 + $0xae8] sm:$0xff]  ;;  %v867_v12 = vld [vmem:[%s6686_s29 + $0xaf8] sm:$0xff] }
 0x15f   : > { %4669 = vmatpush1.bf16.msra.mxu1 %v4668_v24  ;;  %4383 = vmatprep.subr.bf16.mxu0 %v4382_v25  ;;  %v784_v24 = vld [vmem:[%s6686_s29 + $0x860] sm:$0xff]  ;;  %v782_v25 = vld [vmem:[%s6686_s29 + $0x850] sm:$0xff] }
 0x160   : > { %4671 = vmatprep.subr.bf16.mxu1 %v4670_v29  ;;  %v793_v29 = vld [vmem:[%s6686_s29 + $0x8a8] sm:$0xff]  ;;  %v4404_v33 = vpack.c.bf16 %v784_v24, %v780_v23  ;;  %v4692_v34 = vpack.c.bf16 %v786_v27, %v782_v25  ;;  %v4710_v23 = vpack.c.bf16 %v827_v16, %v823_v15  ;;  %v826_v24 = vld [vmem:[%s6686_s29 + $0x9b0] sm:$0xff]  ;;  %v831_v27 = vld [vmem:[%s6686_s29 + $0x9d8] sm:$0xff] }
 0x161   : > { %v829_v25 = vld [vmem:[%s6686_s29 + $0x9c8] sm:$0xff]  ;;  %v860_v16 = vld [vmem:[%s6686_s29 + $0xac0] sm:$0xff] }
 0x162   : > { %4385 = vmatpush1.bf16.msra.mxu0 %v4384_v35  ;;  %v4406_v35 = vpack.c.bf16 %v793_v29, %v789_v28  ;;  %v835_v28 = vld [vmem:[%s6686_s29 + $0x9f8] sm:$0xff] }
 0x163   : > { %4673 = vmatpush1.bf16.msra.mxu1 %v4672_v36  ;;  %4387 = vmatprep.subr.bf16.mxu0 %v4386_v37  ;;  %v788_v36 = vld [vmem:[%s6686_s29 + $0x880] sm:$0xff] }
 0x164   : > { %4675 = vmatprep.subr.bf16.mxu1 %v4674_v41  ;;  %v792_v37 = vld [vmem:[%s6686_s29 + $0x8a0] sm:$0xff]  ;;  %v797_v41 = vld [vmem:[%s6686_s29 + $0x8c8] sm:$0xff] }
 0x165   : > { %v4408_v45 = vpack.c.bf16 %v792_v37, %v788_v36  ;;  %v834_v36 = vld [vmem:[%s6686_s29 + $0x9f0] sm:$0xff]  ;;  %v837_v37 = vld [vmem:[%s6686_s29 + $0xa08] sm:$0xff] }
 0x166   : > { %4389 = vmatpush1.bf16.msra.mxu0 %v4388_v47  ;;  %v4410_v47 = vpack.c.bf16 %v801_v42, %v797_v41  ;;  %v4430_v43 = vpack.c.bf16 %v841_v38, %v837_v37 }
 0x167   : > { %4677 = vmatpush1.bf16.msra.mxu1 %v4676_v48  ;;  %4391 = vmatprep.subr.bf16.mxu0 %v4390_v49  ;;  %v796_v48 = vld [vmem:[%s6686_s29 + $0x8c0] sm:$0xff] }
 0x168   : > { %4679 = vmatprep.subr.bf16.mxu1 %v4678_v53  ;;  %v800_v49 = vld [vmem:[%s6686_s29 + $0x8e0] sm:$0xff]  ;;  %v805_v53 = vld [vmem:[%s6686_s29 + $0x908] sm:$0xff] }
 0x169   : > { %v4412_v57 = vpack.c.bf16 %v800_v49, %v796_v48  ;;  %v842_v48 = vld [vmem:[%s6686_s29 + $0xa30] sm:$0xff]  ;;  %v845_v49 = vld [vmem:[%s6686_s29 + $0xa48] sm:$0xff] }
 0x16a   : > { %4393 = vmatpush1.bf16.msra.mxu0 %v4392_v59  ;;  %v4414_v59 = vpack.c.bf16 %v809_v54, %v805_v53  ;;  %v4434_v55 = vpack.c.bf16 %v849_v50, %v845_v49 }
 0x16b   : > { %4681 = vmatpush1.bf16.msra.mxu1 %v4680_v60  ;;  %4395 = vmatprep.subr.bf16.mxu0 %v4394_v61  ;;  %v804_v60 = vld [vmem:[%s6686_s29 + $0x900] sm:$0xff] }
 0x16c   : > { %4683 = vmatprep.subr.bf16.mxu1 %v4682_v1  ;;  %v808_v61 = vld [vmem:[%s6686_s29 + $0x920] sm:$0xff]  ;;  %v813_v1 = vld [vmem:[%s6686_s29 + $0x948] sm:$0xff] }
 0x16d   : > { %v4416_v5 = vpack.c.bf16 %v808_v61, %v804_v60  ;;  %v850_v60 = vld [vmem:[%s6686_s29 + $0xa70] sm:$0xff]  ;;  %v853_v61 = vld [vmem:[%s6686_s29 + $0xa88] sm:$0xff] }
 0x16e   : > { %4397 = vmatpush1.bf16.msra.mxu0 %v4396_v7  ;;  %v4418_v7 = vpack.c.bf16 %v817_v2, %v813_v1  ;;  %v4438_v3 = vpack.c.bf16 %v857_v62, %v853_v61 }
 0x16f   : > { %4685 = vmatpush1.bf16.msra.mxu1 %v4684_v8  ;;  %4399 = vmatprep.subr.bf16.mxu0 %v4398_v9  ;;  %v812_v8 = vld [vmem:[%s6686_s29 + $0x940] sm:$0xff] }
 0x170   : > { %4687 = vmatprep.subr.bf16.mxu1 %v4686_v13  ;;  %v816_v9 = vld [vmem:[%s6686_s29 + $0x960] sm:$0xff]  ;;  %v821_v13 = vld [vmem:[%s6686_s29 + $0x988] sm:$0xff] }
 0x171   : > { %1250 = vmatmul.mubr.f32.vlgmr.msra.gmra.mrb[0].mxu0 %v509_v19  ;;  %v4420_v17 = vpack.c.bf16 %v816_v9, %v812_v8  ;;  %v858_v8 = vld [vmem:[%s6686_s29 + $0xab0] sm:$0xff]  ;;  %v861_v9 = vld [vmem:[%s6686_s29 + $0xac8] sm:$0xff] }
 0x172   : > { %4401 = vmatpush1.bf16.msra.mxu0 %v4400_v20  ;;  %1605 = vmatmul.mubr.f32.vlgmr.msra.gmra.mrb[0].mxu1 %v509_v19  ;;  %v4422_v19 = vpack.c.bf16 %v825_v14, %v821_v13  ;;  %v820_v20 = vld [vmem:[%s6686_s29 + $0x980] sm:$0xff]  ;;  %v4442_v15 = vpack.c.bf16 %v865_v10, %v861_v9 }
 0x173   : > { %4689 = vmatpush1.bf16.msra.mxu1 %v4688_v21  ;;  %4403 = vmatprep.subr.bf16.mxu0 %v4402_v22  ;;  %v824_v21 = vld [vmem:[%s6686_s29 + $0x9a0] sm:$0xff]  ;;  %v822_v22 = vld [vmem:[%s6686_s29 + $0x990] sm:$0xff] }
 0x174   : > { %4691 = vmatprep.subr.bf16.mxu1 %v4690_v26  ;;  %1320 = vmatprep.mubr.f32.mxu0 %v512_v32  ;;  %v833_v26 = vld [vmem:[%s6686_s29 + $0x9e8] sm:$0xff]  ;;  %v4424_v29 = vpack.c.bf16 %v824_v21, %v820_v20  ;;  %v4712_v30 = vpack.c.bf16 %v826_v24, %v822_v22  ;;  %v866_v20 = vld [vmem:[%s6686_s29 + $0xaf0] sm:$0xff]  ;;  %v875_v24 = vld [vmem:[%s6686_s29 + $0xb38] sm:$0xff] }
 0x175   : > { %1675 = vmatprep.mubr.f32.mxu1 %v512_v32  ;;  %v4426_v31 = vpack.c.bf16 %v833_v26, %v829_v25  ;;  %v828_v32 = vld [vmem:[%s6686_s29 + $0x9c0] sm:$0xff]  ;;  %v869_v21 = vld [vmem:[%s6686_s29 + $0xb08] sm:$0xff] }
 0x176   : > { %4405 = vmatpush1.bf16.msra.mxu0 %v4404_v33  ;;  %v832_v33 = vld [vmem:[%s6686_s29 + $0x9e0] sm:$0xff]  ;;  %v873_v22 = vld [vmem:[%s6686_s29 + $0xb28] sm:$0xff] }
 0x177   : > { %4693 = vmatpush1.bf16.msra.mxu1 %v4692_v34  ;;  %4407 = vmatprep.subr.bf16.mxu0 %v4406_v35  ;;  %v830_v34 = vld [vmem:[%s6686_s29 + $0x9d0] sm:$0xff]  ;;  %v4714_v35 = vpack.c.bf16 %v835_v28, %v831_v27  ;;  %v4428_v41 = vpack.c.bf16 %v832_v33, %v828_v32  ;;  %v4446_v27 = vpack.c.bf16 %v873_v22, %v869_v21  ;;  %v868_v28 = vld [vmem:[%s6686_s29 + $0xb00] sm:$0xff]  ;;  %v877_v33 = vld [vmem:[%s6686_s29 + $0xb48] sm:$0xff] }
 0x178   : > { %4695 = vmatprep.subr.bf16.mxu1 %v4694_v39  ;;  %v839_v39 = vld [vmem:[%s6686_s29 + $0xa18] sm:$0xff]  ;;  %v4716_v42 = vpack.c.bf16 %v834_v36, %v830_v34  ;;  %v874_v32 = vld [vmem:[%s6686_s29 + $0xb30] sm:$0xff]  ;;  %v881_v34 = vld [vmem:[%s6686_s29 + $0xb68] sm:$0xff] }
 0x179   : > { %v883_v36 = vld [vmem:[%s6686_s29 + $0xb78] sm:$0xff] }
 0x17a   : > { %4409 = vmatpush1.bf16.msra.mxu0 %v4408_v45  ;;  %v840_v45 = vld [vmem:[%s6686_s29 + $0xa20] sm:$0xff]  ;;  %v511_v21 = vld [vmem:[%s8473_s4 + $0x20] sm:$0xff] }
 0x17b   : > { %4697 = vmatpush1.bf16.msra.mxu1 %v4696_v46  ;;  %4411 = vmatprep.subr.bf16.mxu0 %v4410_v47  ;;  %v838_v46 = vld [vmem:[%s6686_s29 + $0xa10] sm:$0xff]  ;;  %v4718_v47 = vpack.c.bf16 %v843_v40, %v839_v39  ;;  %v4432_v53 = vpack.c.bf16 %v840_v45, %v836_v44  ;;  %v4450_v39 = vpack.c.bf16 %v881_v34, %v877_v33  ;;  %v876_v40 = vld [vmem:[%s6686_s29 + $0xb40] sm:$0xff]  ;;  %v885_v45 = vld [vmem:[%s6686_s29 + $0xb88] sm:$0xff] }
 0x17c   : > { %4699 = vmatprep.subr.bf16.mxu1 %v4698_v51  ;;  %v847_v51 = vld [vmem:[%s6686_s29 + $0xa58] sm:$0xff]  ;;  %v4720_v54 = vpack.c.bf16 %v842_v48, %v838_v46  ;;  %v882_v44 = vld [vmem:[%s6686_s29 + $0xb70] sm:$0xff]  ;;  %v889_v46 = vld [vmem:[%s6686_s29 + $0xba8] sm:$0xff] }
 0x17d   : > { %v891_v48 = vld [vmem:[%s6686_s29 + $0xbb8] sm:$0xff]  ;;  %v514_v34 = vld [vmem:[%s8473_s4 + $0x38] sm:$0xff] }
 0x17e   : > { %4413 = vmatpush1.bf16.msra.mxu0 %v4412_v57  ;;  %v848_v57 = vld [vmem:[%s6686_s29 + $0xa60] sm:$0xff]  ;;  %v923_v33 = vld [vmem:[%s6686_s29 + $0xcb8] sm:$0xff] }
 0x17f   : > { %4701 = vmatpush1.bf16.msra.mxu1 %v4700_v58  ;;  %4415 = vmatprep.subr.bf16.mxu0 %v4414_v59  ;;  %v846_v58 = vld [vmem:[%s6686_s29 + $0xa50] sm:$0xff]  ;;  %v4722_v59 = vpack.c.bf16 %v851_v52, %v847_v51  ;;  %v4436_v1 = vpack.c.bf16 %v848_v57, %v844_v56  ;;  %v4454_v51 = vpack.c.bf16 %v889_v46, %v885_v45  ;;  %v884_v52 = vld [vmem:[%s6686_s29 + $0xb80] sm:$0xff]  ;;  %v893_v57 = vld [vmem:[%s6686_s29 + $0xbc8] sm:$0xff] }
 0x180   : > { %4703 = vmatprep.subr.bf16.mxu1 %v4702_v63  ;;  %v855_v63 = vld [vmem:[%s6686_s29 + $0xa98] sm:$0xff]  ;;  %v4724_v2 = vpack.c.bf16 %v850_v60, %v846_v58  ;;  %v890_v56 = vld [vmem:[%s6686_s29 + $0xbb0] sm:$0xff]  ;;  %v897_v58 = vld [vmem:[%s6686_s29 + $0xbe8] sm:$0xff] }
 0x181   : > { %v899_v60 = vld [vmem:[%s6686_s29 + $0xbf8] sm:$0xff] }
 0x182   : > { %4417 = vmatpush1.bf16.msra.mxu0 %v4416_v5  ;;  %v856_v5 = vld [vmem:[%s6686_s29 + $0xaa0] sm:$0xff]  ;;  %v927_v45 = vld [vmem:[%s6686_s29 + $0xcd8] sm:$0xff] }
 0x183   : > { %4705 = vmatpush1.bf16.msra.mxu1 %v4704_v6  ;;  %4419 = vmatprep.subr.bf16.mxu0 %v4418_v7  ;;  %v854_v6 = vld [vmem:[%s6686_s29 + $0xa90] sm:$0xff]  ;;  %v4726_v7 = vpack.c.bf16 %v859_v0, %v855_v63  ;;  %v4440_v13 = vpack.c.bf16 %v856_v5, %v852_v4  ;;  %v4458_v63 = vpack.c.bf16 %v897_v58, %v893_v57  ;;  %v892_v0 = vld [vmem:[%s6686_s29 + $0xbc0] sm:$0xff]  ;;  %v901_v5 = vld [vmem:[%s6686_s29 + $0xc08] sm:$0xff] }
 0x184   : > { %4707 = vmatprep.subr.bf16.mxu1 %v4706_v11  ;;  %v863_v11 = vld [vmem:[%s6686_s29 + $0xad8] sm:$0xff]  ;;  %v4728_v14 = vpack.c.bf16 %v858_v8, %v854_v6  ;;  %v898_v4 = vld [vmem:[%s6686_s29 + $0xbf0] sm:$0xff]  ;;  %v905_v6 = vld [vmem:[%s6686_s29 + $0xc28] sm:$0xff] }
 0x185   : > { %v907_v8 = vld [vmem:[%s6686_s29 + $0xc38] sm:$0xff] }
 0x186   : > { %4421 = vmatpush1.bf16.msra.mxu0 %v4420_v17  ;;  %v864_v17 = vld [vmem:[%s6686_s29 + $0xae0] sm:$0xff]  ;;  %v931_v46 = vld [vmem:[%s6686_s29 + $0xcf8] sm:$0xff] }
 0x187   : > { %4709 = vmatpush1.bf16.msra.mxu1 %v4708_v18  ;;  %4423 = vmatprep.subr.bf16.mxu0 %v4422_v19  ;;  %v862_v18 = vld [vmem:[%s6686_s29 + $0xad0] sm:$0xff]  ;;  %v4730_v19 = vpack.c.bf16 %v867_v12, %v863_v11  ;;  %v4444_v25 = vpack.c.bf16 %v864_v17, %v860_v16  ;;  %v4462_v11 = vpack.c.bf16 %v905_v6, %v901_v5  ;;  %v900_v12 = vld [vmem:[%s6686_s29 + $0xc00] sm:$0xff]  ;;  %v909_v17 = vld [vmem:[%s6686_s29 + $0xc48] sm:$0xff] }
 0x188   : > { %4711 = vmatprep.subr.bf16.mxu1 %v4710_v23  ;;  %v871_v23 = vld [vmem:[%s6686_s29 + $0xb18] sm:$0xff]  ;;  %v4732_v26 = vpack.c.bf16 %v866_v20, %v862_v18  ;;  %v906_v16 = vld [vmem:[%s6686_s29 + $0xc30] sm:$0xff]  ;;  %v913_v18 = vld [vmem:[%s6686_s29 + $0xc68] sm:$0xff] }
 0x189   : > { %v915_v20 = vld [vmem:[%s6686_s29 + $0xc78] sm:$0xff] }
 0x18a   : > { %4425 = vmatpush1.bf16.msra.mxu0 %v4424_v29  ;;  %v872_v29 = vld [vmem:[%s6686_s29 + $0xb20] sm:$0xff]  ;;  %v935_v57 = vld [vmem:[%s6686_s29 + $0xd18] sm:$0xff] }
 0x18b   : > { %4713 = vmatpush1.bf16.msra.mxu1 %v4712_v30  ;;  %4427 = vmatprep.subr.bf16.mxu0 %v4426_v31  ;;  %v870_v30 = vld [vmem:[%s6686_s29 + $0xb10] sm:$0xff]  ;;  %v4734_v31 = vpack.c.bf16 %v875_v24, %v871_v23  ;;  %v4448_v37 = vpack.c.bf16 %v872_v29, %v868_v28  ;;  %v4466_v24 = vpack.c.bf16 %v913_v18, %v909_v17  ;;  %v939_v58 = vld [vmem:[%s6686_s29 + $0xd38] sm:$0xff] }
 0x18c   : > { %4715 = vmatprep.subr.bf16.mxu1 %v4714_v35  ;;  %v879_v35 = vld [vmem:[%s6686_s29 + $0xb58] sm:$0xff]  ;;  %v4736_v38 = vpack.c.bf16 %v874_v32, %v870_v30  ;;  %v914_v29 = vld [vmem:[%s6686_s29 + $0xc70] sm:$0xff]  ;;  %v917_v30 = vld [vmem:[%s6686_s29 + $0xc88] sm:$0xff] }
 0x18d   : > { %v919_v32 = vld [vmem:[%s6686_s29 + $0xc98] sm:$0xff] }
 0x18e   : > { %4429 = vmatpush1.bf16.msra.mxu0 %v4428_v41  ;;  %v880_v41 = vld [vmem:[%s6686_s29 + $0xb60] sm:$0xff]  ;;  %v943_v5 = vld [vmem:[%s6686_s29 + $0xd58] sm:$0xff] }
 0x18f   : > { %4717 = vmatpush1.bf16.msra.mxu1 %v4716_v42  ;;  %4431 = vmatprep.subr.bf16.mxu0 %v4430_v43  ;;  %v878_v42 = vld [vmem:[%s6686_s29 + $0xb50] sm:$0xff]  ;;  %v4738_v43 = vpack.c.bf16 %v883_v36, %v879_v35  ;;  %v4452_v49 = vpack.c.bf16 %v880_v41, %v876_v40  ;;  %v4758_v41 = vpack.c.bf16 %v923_v33, %v919_v32  ;;  %v947_v6 = vld [vmem:[%s6686_s29 + $0xd78] sm:$0xff] }
 0x190   : > { %4719 = vmatprep.subr.bf16.mxu1 %v4718_v47  ;;  %v887_v47 = vld [vmem:[%s6686_s29 + $0xb98] sm:$0xff]  ;;  %v4740_v50 = vpack.c.bf16 %v882_v44, %v878_v42  ;;  %v918_v40 = vld [vmem:[%s6686_s29 + $0xc90] sm:$0xff]  ;;  %v929_v44 = vld [vmem:[%s6686_s29 + $0xce8] sm:$0xff] }
 0x191   : > { %v922_v42 = vld [vmem:[%s6686_s29 + $0xcb0] sm:$0xff]  ;;  %v951_v17 = vld [vmem:[%s6686_s29 + $0xd98] sm:$0xff] }
 0x192   : > { %4433 = vmatpush1.bf16.msra.mxu0 %v4432_v53  ;;  %v888_v53 = vld [vmem:[%s6686_s29 + $0xba0] sm:$0xff]  ;;  %v955_v18 = vld [vmem:[%s6686_s29 + $0xdb8] sm:$0xff] }
 0x193   : > { %4721 = vmatpush1.bf16.msra.mxu1 %v4720_v54  ;;  %4435 = vmatprep.subr.bf16.mxu0 %v4434_v55  ;;  %v886_v54 = vld [vmem:[%s6686_s29 + $0xb90] sm:$0xff]  ;;  %v4742_v55 = vpack.c.bf16 %v891_v48, %v887_v47  ;;  %v4456_v61 = vpack.c.bf16 %v888_v53, %v884_v52  ;;  %v4760_v48 = vpack.c.bf16 %v922_v42, %v918_v40  ;;  %v969_v40 = vld [vmem:[%s6686_s29 + $0xe28] sm:$0xff]  ;;  %v971_v42 = vld [vmem:[%s6686_s29 + $0xe38] sm:$0xff] }
 0x194   : > { %4723 = vmatprep.subr.bf16.mxu1 %v4722_v59  ;;  %v895_v59 = vld [vmem:[%s6686_s29 + $0xbd8] sm:$0xff]  ;;  %v4744_v62 = vpack.c.bf16 %v890_v56, %v886_v54  ;;  %v926_v52 = vld [vmem:[%s6686_s29 + $0xcd0] sm:$0xff]  ;;  %v4762_v53 = vpack.c.bf16 %v931_v46, %v927_v45  ;;  %v937_v56 = vld [vmem:[%s6686_s29 + $0xd28] sm:$0xff] }
 0x195   : > { %v930_v54 = vld [vmem:[%s6686_s29 + $0xcf0] sm:$0xff]  ;;  %v964_v46 = vld [vmem:[%s6686_s29 + $0xe00] sm:$0xff] }
 0x196   : > { %4437 = vmatpush1.bf16.msra.mxu0 %v4436_v1  ;;  %v896_v1 = vld [vmem:[%s6686_s29 + $0xbe0] sm:$0xff] }
 0x197   : > { %4725 = vmatpush1.bf16.msra.mxu1 %v4724_v2  ;;  %4439 = vmatprep.subr.bf16.mxu0 %v4438_v3  ;;  %v894_v2 = vld [vmem:[%s6686_s29 + $0xbd0] sm:$0xff]  ;;  %v4746_v3 = vpack.c.bf16 %v899_v60, %v895_v59  ;;  %v4460_v9 = vpack.c.bf16 %v896_v1, %v892_v0  ;;  %v4764_v60 = vpack.c.bf16 %v930_v54, %v926_v52  ;;  %v977_v52 = vld [vmem:[%s6686_s29 + $0xe68] sm:$0xff]  ;;  %v979_v54 = vld [vmem:[%s6686_s29 + $0xe78] sm:$0xff] }
 0x198   : > { %4727 = vmatprep.subr.bf16.mxu1 %v4726_v7  ;;  %v903_v7 = vld [vmem:[%s6686_s29 + $0xc18] sm:$0xff]  ;;  %v4748_v10 = vpack.c.bf16 %v898_v4, %v894_v2  ;;  %v934_v0 = vld [vmem:[%s6686_s29 + $0xd10] sm:$0xff]  ;;  %v4766_v1 = vpack.c.bf16 %v939_v58, %v935_v57  ;;  %v945_v4 = vld [vmem:[%s6686_s29 + $0xd68] sm:$0xff] }
 0x199   : > { %v938_v2 = vld [vmem:[%s6686_s29 + $0xd30] sm:$0xff]  ;;  %v972_v58 = vld [vmem:[%s6686_s29 + $0xe40] sm:$0xff] }
 0x19a   : > { %4441 = vmatpush1.bf16.msra.mxu0 %v4440_v13  ;;  %v904_v13 = vld [vmem:[%s6686_s29 + $0xc20] sm:$0xff] }
 0x19b   : > { %4729 = vmatpush1.bf16.msra.mxu1 %v4728_v14  ;;  %4443 = vmatprep.subr.bf16.mxu0 %v4442_v15  ;;  %v902_v14 = vld [vmem:[%s6686_s29 + $0xc10] sm:$0xff]  ;;  %v4750_v15 = vpack.c.bf16 %v907_v8, %v903_v7  ;;  %v4464_v22 = vpack.c.bf16 %v904_v13, %v900_v12  ;;  %v4768_v8 = vpack.c.bf16 %v938_v2, %v934_v0  ;;  %v985_v0 = vld [vmem:[%s6686_s29 + $0xea8] sm:$0xff]  ;;  %v987_v2 = vld [vmem:[%s6686_s29 + $0xeb8] sm:$0xff] }
 0x19c   : > { %4731 = vmatprep.subr.bf16.mxu1 %v4730_v19  ;;  %v911_v19 = vld [vmem:[%s6686_s29 + $0xc58] sm:$0xff]  ;;  %v4752_v23 = vpack.c.bf16 %v906_v16, %v902_v14  ;;  %v942_v12 = vld [vmem:[%s6686_s29 + $0xd50] sm:$0xff]  ;;  %v4770_v13 = vpack.c.bf16 %v947_v6, %v943_v5  ;;  %v953_v16 = vld [vmem:[%s6686_s29 + $0xda8] sm:$0xff] }
 0x19d   : > { %v4754_v28 = vpack.c.bf16 %v915_v20, %v911_v19  ;;  %v946_v14 = vld [vmem:[%s6686_s29 + $0xd70] sm:$0xff]  ;;  %v980_v6 = vld [vmem:[%s6686_s29 + $0xe80] sm:$0xff] }
 0x19e   : > { %4445 = vmatpush1.bf16.msra.mxu0 %v4444_v25  ;;  %v908_v25 = vld [vmem:[%s6686_s29 + $0xc40] sm:$0xff]  ;;  %v4772_v20 = vpack.c.bf16 %v946_v14, %v942_v12  ;;  %v993_v12 = vld [vmem:[%s6686_s29 + $0xee8] sm:$0xff]  ;;  %v995_v14 = vld [vmem:[%s6686_s29 + $0xef8] sm:$0xff] }
 0x19f   : > { %4733 = vmatpush1.bf16.msra.mxu1 %v4732_v26  ;;  %4447 = vmatprep.subr.bf16.mxu0 %v4446_v27  ;;  %v912_v26 = vld [vmem:[%s6686_s29 + $0xc60] sm:$0xff]  ;;  %v910_v27 = vld [vmem:[%s6686_s29 + $0xc50] sm:$0xff] }
 0x1a0   : > { %4735 = vmatprep.subr.bf16.mxu1 %v4734_v31  ;;  %v921_v31 = vld [vmem:[%s6686_s29 + $0xca8] sm:$0xff]  ;;  %v4468_v35 = vpack.c.bf16 %v912_v26, %v908_v25  ;;  %v4756_v36 = vpack.c.bf16 %v914_v29, %v910_v27  ;;  %v4774_v25 = vpack.c.bf16 %v955_v18, %v951_v17  ;;  %v954_v26 = vld [vmem:[%s6686_s29 + $0xdb0] sm:$0xff]  ;;  %v959_v29 = vld [vmem:[%s6686_s29 + $0xdd8] sm:$0xff] }
 0x1a1   : > { %v957_v27 = vld [vmem:[%s6686_s29 + $0xdc8] sm:$0xff]  ;;  %v988_v18 = vld [vmem:[%s6686_s29 + $0xec0] sm:$0xff] }
 0x1a2   : > { %4449 = vmatpush1.bf16.msra.mxu0 %v4448_v37  ;;  %v4470_v37 = vpack.c.bf16 %v921_v31, %v917_v30  ;;  %v963_v30 = vld [vmem:[%s6686_s29 + $0xdf8] sm:$0xff] }
 0x1a3   : > { %4737 = vmatpush1.bf16.msra.mxu1 %v4736_v38  ;;  %4451 = vmatprep.subr.bf16.mxu0 %v4450_v39  ;;  %v916_v38 = vld [vmem:[%s6686_s29 + $0xc80] sm:$0xff] }
 0x1a4   : > { %4739 = vmatprep.subr.bf16.mxu1 %v4738_v43  ;;  %v920_v39 = vld [vmem:[%s6686_s29 + $0xca0] sm:$0xff]  ;;  %v925_v43 = vld [vmem:[%s6686_s29 + $0xcc8] sm:$0xff] }
 0x1a5   : > { %v4472_v47 = vpack.c.bf16 %v920_v39, %v916_v38  ;;  %v962_v38 = vld [vmem:[%s6686_s29 + $0xdf0] sm:$0xff]  ;;  %v965_v39 = vld [vmem:[%s6686_s29 + $0xe08] sm:$0xff] }
 0x1a6   : > { %4453 = vmatpush1.bf16.msra.mxu0 %v4452_v49  ;;  %v4474_v49 = vpack.c.bf16 %v929_v44, %v925_v43  ;;  %v4494_v45 = vpack.c.bf16 %v969_v40, %v965_v39 }
 0x1a7   : > { %4741 = vmatpush1.bf16.msra.mxu1 %v4740_v50  ;;  %4455 = vmatprep.subr.bf16.mxu0 %v4454_v51  ;;  %v924_v50 = vld [vmem:[%s6686_s29 + $0xcc0] sm:$0xff] }
 0x1a8   : > { %4743 = vmatprep.subr.bf16.mxu1 %v4742_v55  ;;  %v928_v51 = vld [vmem:[%s6686_s29 + $0xce0] sm:$0xff]  ;;  %v933_v55 = vld [vmem:[%s6686_s29 + $0xd08] sm:$0xff] }
 0x1a9   : > { %v4476_v59 = vpack.c.bf16 %v928_v51, %v924_v50  ;;  %v970_v50 = vld [vmem:[%s6686_s29 + $0xe30] sm:$0xff]  ;;  %v973_v51 = vld [vmem:[%s6686_s29 + $0xe48] sm:$0xff] }
 0x1aa   : > { %4457 = vmatpush1.bf16.msra.mxu0 %v4456_v61  ;;  %v4478_v61 = vpack.c.bf16 %v937_v56, %v933_v55  ;;  %v4498_v57 = vpack.c.bf16 %v977_v52, %v973_v51 }
 0x1ab   : > { %4745 = vmatpush1.bf16.msra.mxu1 %v4744_v62  ;;  %4459 = vmatprep.subr.bf16.mxu0 %v4458_v63  ;;  %v932_v62 = vld [vmem:[%s6686_s29 + $0xd00] sm:$0xff] }
 0x1ac   : > { %4747 = vmatprep.subr.bf16.mxu1 %v4746_v3  ;;  %v936_v63 = vld [vmem:[%s6686_s29 + $0xd20] sm:$0xff]  ;;  %v941_v3 = vld [vmem:[%s6686_s29 + $0xd48] sm:$0xff] }
 0x1ad   : > { %v4480_v7 = vpack.c.bf16 %v936_v63, %v932_v62  ;;  %v978_v62 = vld [vmem:[%s6686_s29 + $0xe70] sm:$0xff]  ;;  %v981_v63 = vld [vmem:[%s6686_s29 + $0xe88] sm:$0xff] }
 0x1ae   : > { %4461 = vmatpush1.bf16.msra.mxu0 %v4460_v9  ;;  %v4482_v9 = vpack.c.bf16 %v945_v4, %v941_v3  ;;  %v4502_v5 = vpack.c.bf16 %v985_v0, %v981_v63 }
 0x1af   : > { %4749 = vmatpush1.bf16.msra.mxu1 %v4748_v10  ;;  %4463 = vmatprep.subr.bf16.mxu0 %v4462_v11  ;;  %v940_v10 = vld [vmem:[%s6686_s29 + $0xd40] sm:$0xff] }
 0x1b0   : > { %4751 = vmatprep.subr.bf16.mxu1 %v4750_v15  ;;  %v944_v11 = vld [vmem:[%s6686_s29 + $0xd60] sm:$0xff]  ;;  %v949_v15 = vld [vmem:[%s6686_s29 + $0xd88] sm:$0xff] }
 0x1b1   : > { %1321 = vmatmul.mubr.f32.vlgmr.msra.gmra.mrb[0].mxu0 %v511_v21  ;;  %v4484_v19 = vpack.c.bf16 %v944_v11, %v940_v10  ;;  %v986_v10 = vld [vmem:[%s6686_s29 + $0xeb0] sm:$0xff]  ;;  %v989_v11 = vld [vmem:[%s6686_s29 + $0xec8] sm:$0xff] }
 0x1b2   : > { %4465 = vmatpush1.bf16.msra.mxu0 %v4464_v22  ;;  %1676 = vmatmul.mubr.f32.vlgmr.msra.gmra.mrb[0].mxu1 %v511_v21  ;;  %v4486_v21 = vpack.c.bf16 %v953_v16, %v949_v15  ;;  %v948_v22 = vld [vmem:[%s6686_s29 + $0xd80] sm:$0xff]  ;;  %v4506_v17 = vpack.c.bf16 %v993_v12, %v989_v11 }
 0x1b3   : > { %4753 = vmatpush1.bf16.msra.mxu1 %v4752_v23  ;;  %4467 = vmatprep.subr.bf16.mxu0 %v4466_v24  ;;  %v952_v23 = vld [vmem:[%s6686_s29 + $0xda0] sm:$0xff]  ;;  %v950_v24 = vld [vmem:[%s6686_s29 + $0xd90] sm:$0xff] }
 0x1b4   : > { %4755 = vmatprep.subr.bf16.mxu1 %v4754_v28  ;;  %1391 = vmatprep.mubr.f32.mxu0 %v514_v34  ;;  %v961_v28 = vld [vmem:[%s6686_s29 + $0xde8] sm:$0xff]  ;;  %v4488_v31 = vpack.c.bf16 %v952_v23, %v948_v22  ;;  %v4776_v32 = vpack.c.bf16 %v954_v26, %v950_v24  ;;  %v994_v22 = vld [vmem:[%s6686_s29 + $0xef0] sm:$0xff]  ;;  %v1003_v26 = vld [vmem:[%s6686_s29 + $0xf38] sm:$0xff] }
 0x1b5   : > { %1746 = vmatprep.mubr.f32.mxu1 %v514_v34  ;;  %v4490_v33 = vpack.c.bf16 %v961_v28, %v957_v27  ;;  %v956_v34 = vld [vmem:[%s6686_s29 + $0xdc0] sm:$0xff]  ;;  %v997_v23 = vld [vmem:[%s6686_s29 + $0xf08] sm:$0xff] }
 0x1b6   : > { %4469 = vmatpush1.bf16.msra.mxu0 %v4468_v35  ;;  %v960_v35 = vld [vmem:[%s6686_s29 + $0xde0] sm:$0xff]  ;;  %v1001_v24 = vld [vmem:[%s6686_s29 + $0xf28] sm:$0xff] }
 0x1b7   : > { %4757 = vmatpush1.bf16.msra.mxu1 %v4756_v36  ;;  %4471 = vmatprep.subr.bf16.mxu0 %v4470_v37  ;;  %v958_v36 = vld [vmem:[%s6686_s29 + $0xdd0] sm:$0xff]  ;;  %v4778_v37 = vpack.c.bf16 %v963_v30, %v959_v29  ;;  %v4492_v43 = vpack.c.bf16 %v960_v35, %v956_v34  ;;  %v4510_v29 = vpack.c.bf16 %v1001_v24, %v997_v23  ;;  %v996_v30 = vld [vmem:[%s6686_s29 + $0xf00] sm:$0xff]  ;;  %v1005_v35 = vld [vmem:[%s6686_s29 + $0xf48] sm:$0xff] }
 0x1b8   : > { %4759 = vmatprep.subr.bf16.mxu1 %v4758_v41  ;;  %v967_v41 = vld [vmem:[%s6686_s29 + $0xe18] sm:$0xff]  ;;  %v4780_v44 = vpack.c.bf16 %v962_v38, %v958_v36  ;;  %v1002_v34 = vld [vmem:[%s6686_s29 + $0xf30] sm:$0xff]  ;;  %v1009_v36 = vld [vmem:[%s6686_s29 + $0xf68] sm:$0xff] }
 0x1b9   : > { %v1011_v38 = vld [vmem:[%s6686_s29 + $0xf78] sm:$0xff]  ;;  %v513_v23 = vld [vmem:[%s8473_s4 + $0x30] sm:$0xff] }
 0x1ba   : > { %4473 = vmatpush1.bf16.msra.mxu0 %v4472_v47  ;;  %v968_v47 = vld [vmem:[%s6686_s29 + $0xe20] sm:$0xff] }
 0x1bb   : > { %4761 = vmatpush1.bf16.msra.mxu1 %v4760_v48  ;;  %4475 = vmatprep.subr.bf16.mxu0 %v4474_v49  ;;  %v966_v48 = vld [vmem:[%s6686_s29 + $0xe10] sm:$0xff]  ;;  %v4782_v49 = vpack.c.bf16 %v971_v42, %v967_v41  ;;  %v4496_v55 = vpack.c.bf16 %v968_v47, %v964_v46  ;;  %v4514_v41 = vpack.c.bf16 %v1009_v36, %v1005_v35  ;;  %v1004_v42 = vld [vmem:[%s6686_s29 + $0xf40] sm:$0xff]  ;;  %v1013_v47 = vld [vmem:[%s6686_s29 + $0xf88] sm:$0xff] }
 0x1bc   : > { %4763 = vmatprep.subr.bf16.mxu1 %v4762_v53  ;;  %v975_v53 = vld [vmem:[%s6686_s29 + $0xe58] sm:$0xff]  ;;  %v4784_v56 = vpack.c.bf16 %v970_v50, %v966_v48  ;;  %v1010_v46 = vld [vmem:[%s6686_s29 + $0xf70] sm:$0xff]  ;;  %v1017_v48 = vld [vmem:[%s6686_s29 + $0xfa8] sm:$0xff] }
 0x1bd   : > { %v1019_v50 = vld [vmem:[%s6686_s29 + $0xfb8] sm:$0xff] }
 0x1be   : > { %4477 = vmatpush1.bf16.msra.mxu0 %v4476_v59  ;;  %v976_v59 = vld [vmem:[%s6686_s29 + $0xe60] sm:$0xff]  ;;  %v1051_v35 = vld [vmem:[%s6686_s29 + $0x10b8] sm:$0xff] }
 0x1bf   : > { %4765 = vmatpush1.bf16.msra.mxu1 %v4764_v60  ;;  %4479 = vmatprep.subr.bf16.mxu0 %v4478_v61  ;;  %v974_v60 = vld [vmem:[%s6686_s29 + $0xe50] sm:$0xff]  ;;  %v4786_v61 = vpack.c.bf16 %v979_v54, %v975_v53  ;;  %v4500_v3 = vpack.c.bf16 %v976_v59, %v972_v58  ;;  %v4518_v53 = vpack.c.bf16 %v1017_v48, %v1013_v47  ;;  %v1012_v54 = vld [vmem:[%s6686_s29 + $0xf80] sm:$0xff]  ;;  %v1021_v59 = vld [vmem:[%s6686_s29 + $0xfc8] sm:$0xff] }
 0x1c0   : > { %4767 = vmatprep.subr.bf16.mxu1 %v4766_v1  ;;  %v983_v1 = vld [vmem:[%s6686_s29 + $0xe98] sm:$0xff]  ;;  %v4788_v4 = vpack.c.bf16 %v978_v62, %v974_v60  ;;  %v1018_v58 = vld [vmem:[%s6686_s29 + $0xfb0] sm:$0xff]  ;;  %v1025_v60 = vld [vmem:[%s6686_s29 + $0xfe8] sm:$0xff] }
 0x1c1   : > { %v1027_v62 = vld [vmem:[%s6686_s29 + $0xff8] sm:$0xff] }
 0x1c2   : > { %4481 = vmatpush1.bf16.msra.mxu0 %v4480_v7  ;;  %v984_v7 = vld [vmem:[%s6686_s29 + $0xea0] sm:$0xff]  ;;  %v1055_v47 = vld [vmem:[%s6686_s29 + $0x10d8] sm:$0xff] }
 0x1c3   : > { %4769 = vmatpush1.bf16.msra.mxu1 %v4768_v8  ;;  %4483 = vmatprep.subr.bf16.mxu0 %v4482_v9  ;;  %v982_v8 = vld [vmem:[%s6686_s29 + $0xe90] sm:$0xff]  ;;  %v4790_v9 = vpack.c.bf16 %v987_v2, %v983_v1  ;;  %v4504_v15 = vpack.c.bf16 %v984_v7, %v980_v6  ;;  %v4522_v1 = vpack.c.bf16 %v1025_v60, %v1021_v59  ;;  %v1020_v2 = vld [vmem:[%s6686_s29 + $0xfc0] sm:$0xff]  ;;  %v1029_v7 = vld [vmem:[%s6686_s29 + $0x1008] sm:$0xff] }
 0x1c4   : > { %4771 = vmatprep.subr.bf16.mxu1 %v4770_v13  ;;  %v991_v13 = vld [vmem:[%s6686_s29 + $0xed8] sm:$0xff]  ;;  %v4792_v16 = vpack.c.bf16 %v986_v10, %v982_v8  ;;  %v1026_v6 = vld [vmem:[%s6686_s29 + $0xff0] sm:$0xff]  ;;  %v1033_v8 = vld [vmem:[%s6686_s29 + $0x1028] sm:$0xff] }
 0x1c5   : > { %v1035_v10 = vld [vmem:[%s6686_s29 + $0x1038] sm:$0xff] }
 0x1c6   : > { %4485 = vmatpush1.bf16.msra.mxu0 %v4484_v19  ;;  %v992_v19 = vld [vmem:[%s6686_s29 + $0xee0] sm:$0xff]  ;;  %v1059_v48 = vld [vmem:[%s6686_s29 + $0x10f8] sm:$0xff] }
 0x1c7   : > { %4773 = vmatpush1.bf16.msra.mxu1 %v4772_v20  ;;  %4487 = vmatprep.subr.bf16.mxu0 %v4486_v21  ;;  %v990_v20 = vld [vmem:[%s6686_s29 + $0xed0] sm:$0xff]  ;;  %v4794_v21 = vpack.c.bf16 %v995_v14, %v991_v13  ;;  %v4508_v27 = vpack.c.bf16 %v992_v19, %v988_v18  ;;  %v4526_v13 = vpack.c.bf16 %v1033_v8, %v1029_v7  ;;  %v1028_v14 = vld [vmem:[%s6686_s29 + $0x1000] sm:$0xff]  ;;  %v1037_v19 = vld [vmem:[%s6686_s29 + $0x1048] sm:$0xff] }
 0x1c8   : > { %4775 = vmatprep.subr.bf16.mxu1 %v4774_v25  ;;  %v999_v25 = vld [vmem:[%s6686_s29 + $0xf18] sm:$0xff]  ;;  %v4796_v28 = vpack.c.bf16 %v994_v22, %v990_v20  ;;  %v1034_v18 = vld [vmem:[%s6686_s29 + $0x1030] sm:$0xff]  ;;  %v1041_v20 = vld [vmem:[%s6686_s29 + $0x1068] sm:$0xff] }
 0x1c9   : > { %v1043_v22 = vld [vmem:[%s6686_s29 + $0x1078] sm:$0xff] }
 0x1ca   : > { %4489 = vmatpush1.bf16.msra.mxu0 %v4488_v31  ;;  %v1000_v31 = vld [vmem:[%s6686_s29 + $0xf20] sm:$0xff]  ;;  %v1063_v59 = vld [vmem:[%s6686_s29 + $0x1118] sm:$0xff] }
 0x1cb   : > { %4777 = vmatpush1.bf16.msra.mxu1 %v4776_v32  ;;  %4491 = vmatprep.subr.bf16.mxu0 %v4490_v33  ;;  %v998_v32 = vld [vmem:[%s6686_s29 + $0xf10] sm:$0xff]  ;;  %v4798_v33 = vpack.c.bf16 %v1003_v26, %v999_v25  ;;  %v4512_v39 = vpack.c.bf16 %v1000_v31, %v996_v30  ;;  %v4530_v26 = vpack.c.bf16 %v1041_v20, %v1037_v19  ;;  %v1067_v60 = vld [vmem:[%s6686_s29 + $0x1138] sm:$0xff] }
 0x1cc   : > { %4779 = vmatprep.subr.bf16.mxu1 %v4778_v37  ;;  %v1007_v37 = vld [vmem:[%s6686_s29 + $0xf58] sm:$0xff]  ;;  %v4800_v40 = vpack.c.bf16 %v1002_v34, %v998_v32  ;;  %v1042_v31 = vld [vmem:[%s6686_s29 + $0x1070] sm:$0xff]  ;;  %v1045_v32 = vld [vmem:[%s6686_s29 + $0x1088] sm:$0xff] }
 0x1cd   : > { %v1047_v34 = vld [vmem:[%s6686_s29 + $0x1098] sm:$0xff] }
 0x1ce   : > { %4493 = vmatpush1.bf16.msra.mxu0 %v4492_v43  ;;  %v1008_v43 = vld [vmem:[%s6686_s29 + $0xf60] sm:$0xff]  ;;  %v1071_v7 = vld [vmem:[%s6686_s29 + $0x1158] sm:$0xff] }
 0x1cf   : > { %4781 = vmatpush1.bf16.msra.mxu1 %v4780_v44  ;;  %4495 = vmatprep.subr.bf16.mxu0 %v4494_v45  ;;  %v1006_v44 = vld [vmem:[%s6686_s29 + $0xf50] sm:$0xff]  ;;  %v4802_v45 = vpack.c.bf16 %v1011_v38, %v1007_v37  ;;  %v4516_v51 = vpack.c.bf16 %v1008_v43, %v1004_v42  ;;  %v4822_v42 = vpack.c.bf16 %v1051_v35, %v1047_v34  ;;  %v1075_v8 = vld [vmem:[%s6686_s29 + $0x1178] sm:$0xff] }
 0x1d0   : > { %4783 = vmatprep.subr.bf16.mxu1 %v4782_v49  ;;  %v1015_v49 = vld [vmem:[%s6686_s29 + $0xf98] sm:$0xff]  ;;  %v4804_v52 = vpack.c.bf16 %v1010_v46, %v1006_v44  ;;  %v1050_v43 = vld [vmem:[%s6686_s29 + $0x10b0] sm:$0xff]  ;;  %v1053_v44 = vld [vmem:[%s6686_s29 + $0x10c8] sm:$0xff]  ;;  %v6307_v46 = vmov 0.0  }
 0x1d1   : > { %v1079_v19 = vld [vmem:[%s6686_s29 + $0x1198] sm:$0xff] }
 0x1d2   : > { %4497 = vmatpush1.bf16.msra.mxu0 %v4496_v55  ;;  %v1016_v55 = vld [vmem:[%s6686_s29 + $0xfa0] sm:$0xff]  ;;  %v1083_v20 = vld [vmem:[%s6686_s29 + $0x11b8] sm:$0xff] }
 0x1d3   : > { %4785 = vmatpush1.bf16.msra.mxu1 %v4784_v56  ;;  %4499 = vmatprep.subr.bf16.mxu0 %v4498_v57  ;;  %v1014_v56 = vld [vmem:[%s6686_s29 + $0xf90] sm:$0xff]  ;;  %v4806_v57 = vpack.c.bf16 %v1019_v50, %v1015_v49  ;;  %v4520_v63 = vpack.c.bf16 %v1016_v55, %v1012_v54  ;;  %v4826_v55 = vpack.c.bf16 %v1059_v48, %v1055_v47  ;;  %v1092_v47 = vld [vmem:[%s6694_s16] sm:$0xf] }
 0x1d4   : > { %4787 = vmatprep.subr.bf16.mxu1 %v4786_v61  ;;  %v1023_v61 = vld [vmem:[%s6686_s29 + $0xfd8] sm:$0xff]  ;;  %v4808_v0 = vpack.c.bf16 %v1018_v58, %v1014_v56  ;;  %v1054_v54 = vld [vmem:[%s6686_s29 + $0x10d0] sm:$0xff]  ;;  %v1065_v58 = vld [vmem:[%s6686_s29 + $0x1128] sm:$0xff] }
 0x1d5   : > { %v1058_v56 = vld [vmem:[%s6686_s29 + $0x10f0] sm:$0xff] }
 0x1d6   : > { %4501 = vmatpush1.bf16.msra.mxu0 %v4500_v3  ;;  %v1024_v3 = vld [vmem:[%s6686_s29 + $0xfe0] sm:$0xff] }
 0x1d7   : > { %4789 = vmatpush1.bf16.msra.mxu1 %v4788_v4  ;;  %4503 = vmatprep.subr.bf16.mxu0 %v4502_v5  ;;  %v1022_v4 = vld [vmem:[%s6686_s29 + $0xfd0] sm:$0xff]  ;;  %v4810_v5 = vpack.c.bf16 %v1027_v62, %v1023_v61  ;;  %v4524_v11 = vpack.c.bf16 %v1024_v3, %v1020_v2  ;;  %v4828_v62 = vpack.c.bf16 %v1058_v56, %v1054_v54 }
 0x1d8   : > { %4791 = vmatprep.subr.bf16.mxu1 %v4790_v9  ;;  %v1031_v9 = vld [vmem:[%s6686_s29 + $0x1018] sm:$0xff]  ;;  %v4812_v12 = vpack.c.bf16 %v1026_v6, %v1022_v4  ;;  %v1062_v2 = vld [vmem:[%s6686_s29 + $0x1110] sm:$0xff]  ;;  %v4830_v3 = vpack.c.bf16 %v1067_v60, %v1063_v59  ;;  %v1073_v6 = vld [vmem:[%s6686_s29 + $0x1168] sm:$0xff] }
 0x1d9   : > { %v1066_v4 = vld [vmem:[%s6686_s29 + $0x1130] sm:$0xff] }
 0x1da   : > { %4505 = vmatpush1.bf16.msra.mxu0 %v4504_v15  ;;  %v1032_v15 = vld [vmem:[%s6686_s29 + $0x1020] sm:$0xff] }
 0x1db   : > { %4793 = vmatpush1.bf16.msra.mxu1 %v4792_v16  ;;  %4507 = vmatprep.subr.bf16.mxu0 %v4506_v17  ;;  %v1030_v16 = vld [vmem:[%s6686_s29 + $0x1010] sm:$0xff]  ;;  %v4814_v17 = vpack.c.bf16 %v1035_v10, %v1031_v9  ;;  %v4528_v24 = vpack.c.bf16 %v1032_v15, %v1028_v14  ;;  %v4832_v10 = vpack.c.bf16 %v1066_v4, %v1062_v2 }
 0x1dc   : > { %4795 = vmatprep.subr.bf16.mxu1 %v4794_v21  ;;  %v1039_v21 = vld [vmem:[%s6686_s29 + $0x1058] sm:$0xff]  ;;  %v4816_v25 = vpack.c.bf16 %v1034_v18, %v1030_v16  ;;  %v1070_v14 = vld [vmem:[%s6686_s29 + $0x1150] sm:$0xff]  ;;  %v4834_v15 = vpack.c.bf16 %v1075_v8, %v1071_v7  ;;  %v1081_v18 = vld [vmem:[%s6686_s29 + $0x11a8] sm:$0xff] }
 0x1dd   : > { %v4818_v30 = vpack.c.bf16 %v1043_v22, %v1039_v21  ;;  %v1074_v16 = vld [vmem:[%s6686_s29 + $0x1170] sm:$0xff] }
 0x1de   : > { %4509 = vmatpush1.bf16.msra.mxu0 %v4508_v27  ;;  %v1036_v27 = vld [vmem:[%s6686_s29 + $0x1040] sm:$0xff]  ;;  %v4836_v22 = vpack.c.bf16 %v1074_v16, %v1070_v14 }
 0x1df   : > { %4797 = vmatpush1.bf16.msra.mxu1 %v4796_v28  ;;  %4511 = vmatprep.subr.bf16.mxu0 %v4510_v29  ;;  %v1040_v28 = vld [vmem:[%s6686_s29 + $0x1060] sm:$0xff]  ;;  %v1038_v29 = vld [vmem:[%s6686_s29 + $0x1050] sm:$0xff] }
 0x1e0   : > { %4799 = vmatprep.subr.bf16.mxu1 %v4798_v33  ;;  %v1049_v33 = vld [vmem:[%s6686_s29 + $0x10a8] sm:$0xff]  ;;  %v4532_v36 = vpack.c.bf16 %v1040_v28, %v1036_v27  ;;  %v4820_v37 = vpack.c.bf16 %v1042_v31, %v1038_v29  ;;  %v4838_v27 = vpack.c.bf16 %v1083_v20, %v1079_v19  ;;  %v1082_v28 = vld [vmem:[%s6686_s29 + $0x11b0] sm:$0xff]  ;;  %v1087_v31 = vld [vmem:[%s6686_s29 + $0x11d8] sm:$0xff] }
 0x1e1   : > { %v4534_v38 = vpack.c.bf16 %v1049_v33, %v1045_v32  ;;  %v1085_v29 = vld [vmem:[%s6686_s29 + $0x11c8] sm:$0xff]  ;;  %v1091_v32 = vld [vmem:[%s6686_s29 + $0x11f8] sm:$0xff] }
 0x1e2   : > { %4513 = vmatpush1.bf16.msra.mxu0 %v4512_v39  ;;  %v1044_v39 = vld [vmem:[%s6686_s29 + $0x1080] sm:$0xff] }
 0x1e3   : > { %4801 = vmatpush1.bf16.msra.mxu1 %v4800_v40  ;;  %4515 = vmatprep.subr.bf16.mxu0 %v4514_v41  ;;  %v1048_v40 = vld [vmem:[%s6686_s29 + $0x10a0] sm:$0xff]  ;;  %v1046_v41 = vld [vmem:[%s6686_s29 + $0x1090] sm:$0xff] }
 0x1e4   : > { %4803 = vmatprep.subr.bf16.mxu1 %v4802_v45  ;;  %v1057_v45 = vld [vmem:[%s6686_s29 + $0x10e8] sm:$0xff]  ;;  %v4536_v49 = vpack.c.bf16 %v1048_v40, %v1044_v39  ;;  %v4824_v50 = vpack.c.bf16 %v1050_v43, %v1046_v41  ;;  %v1086_v39 = vld [vmem:[%s6686_s29 + $0x11d0] sm:$0xff] }
 0x1e5   : > { %v1090_v40 = vld [vmem:[%s6686_s29 + $0x11f0] sm:$0xff] }
 0x1e6   : > { %4517 = vmatpush1.bf16.msra.mxu0 %v4516_v51  ;;  %v4538_v51 = vpack.c.bf16 %v1057_v45, %v1053_v44  ;;  %v515_v43 = vld [vmem:[%s8473_s4 + $0x40] sm:$0xff]  ;;  %v1094_v44 = vlaneseq }
 0x1e7   : > { %4805 = vmatpush1.bf16.msra.mxu1 %v4804_v52  ;;  %4519 = vmatprep.subr.bf16.mxu0 %v4518_v53  ;;  %v1052_v52 = vld [vmem:[%s6686_s29 + $0x10c0] sm:$0xff] }
 0x1e8   : > { %4807 = vmatprep.subr.bf16.mxu1 %v4806_v57  ;;  %v1056_v53 = vld [vmem:[%s6686_s29 + $0x10e0] sm:$0xff]  ;;  %v1061_v57 = vld [vmem:[%s6686_s29 + $0x1108] sm:$0xff]  ;;  %v1095_v45 = vshrl.u32 %v1094_v44, 7 }
 0x1e9   : > { %v4540_v61 = vpack.c.bf16 %v1056_v53, %v1052_v52 }
 0x1ea   : > { %4521 = vmatpush1.bf16.msra.mxu0 %v4520_v63  ;;  %v4542_v63 = vpack.c.bf16 %v1065_v58, %v1061_v57  ;;  %v1104_v48 = vsub.s32 2, %v1095_v45 }
 0x1eb   : > { %4809 = vmatpush1.bf16.msra.mxu1 %v4808_v0  ;;  %4523 = vmatprep.subr.bf16.mxu0 %v4522_v1  ;;  %v1060_v0 = vld [vmem:[%s6686_s29 + $0x1100] sm:$0xff] }
 0x1ec   : > { %4811 = vmatprep.subr.bf16.mxu1 %v4810_v5  ;;  %v1064_v1 = vld [vmem:[%s6686_s29 + $0x1120] sm:$0xff]  ;;  %v1069_v5 = vld [vmem:[%s6686_s29 + $0x1148] sm:$0xff]  ;;  %v1105_v52 = vrot.slane %v1092_v47, %v1104_v48 }
 0x1ed   : > { %v4544_v9 = vpack.c.bf16 %v1064_v1, %v1060_v0 }
 0x1ee   : > { %4525 = vmatpush1.bf16.msra.mxu0 %v4524_v11  ;;  %v4546_v11 = vpack.c.bf16 %v1073_v6, %v1069_v5 }
 0x1ef   : > { %4813 = vmatpush1.bf16.msra.mxu1 %v4812_v12  ;;  %4527 = vmatprep.subr.bf16.mxu0 %v4526_v13  ;;  %v1068_v12 = vld [vmem:[%s6686_s29 + $0x1140] sm:$0xff] }
 0x1f0   : > { %4815 = vmatprep.subr.bf16.mxu1 %v4814_v17  ;;  %v1072_v13 = vld [vmem:[%s6686_s29 + $0x1160] sm:$0xff]  ;;  %v1077_v17 = vld [vmem:[%s6686_s29 + $0x1188] sm:$0xff] }
 0x1f1   : > { %1392 = vmatmul.mubr.f32.vlgmr.msra.gmra.mrb[0].mxu0 %v513_v23  ;;  %v4548_v21 = vpack.c.bf16 %v1072_v13, %v1068_v12 }
 0x1f2   : > { %4529 = vmatpush1.bf16.msra.mxu0 %v4528_v24  ;;  %1747 = vmatmul.mubr.f32.vlgmr.msra.gmra.mrb[0].mxu1 %v513_v23  ;;  %v4550_v23 = vpack.c.bf16 %v1081_v18, %v1077_v17  ;;  %v1076_v24 = vld [vmem:[%s6686_s29 + $0x1180] sm:$0xff] }
 0x1f3   : > { %4817 = vmatpush1.bf16.msra.mxu1 %v4816_v25  ;;  %4531 = vmatprep.subr.bf16.mxu0 %v4530_v26  ;;  %v1080_v25 = vld [vmem:[%s6686_s29 + $0x11a0] sm:$0xff]  ;;  %v1078_v26 = vld [vmem:[%s6686_s29 + $0x1190] sm:$0xff] }
 0x1f4   : > { %4819 = vmatprep.subr.bf16.mxu1 %v4818_v30  ;;  %1462 = vmatprep.mubr.f32.mxu0 %v6307_v46  ;;  %v1089_v30 = vld [vmem:[%s6686_s29 + $0x11e8] sm:$0xff]  ;;  %v4552_v33 = vpack.c.bf16 %v1080_v25, %v1076_v24  ;;  %v4840_v34 = vpack.c.bf16 %v1082_v28, %v1078_v26 }
 0x1f5   : > { %1817 = vmatprep.mubr.f32.mxu1 %v6307_v46  ;;  %v4554_v35 = vpack.c.bf16 %v1089_v30, %v1085_v29  ;;  %v1096_v46 = vsub.s32 0, %v1095_v45 }
 0x1f6   : > { %4533 = vmatpush1.bf16.msra.mxu0 %v4532_v36  ;;  %v1084_v36 = vld [vmem:[%s6686_s29 + $0x11c0] sm:$0xff] }
 0x1f7   : > { %4821 = vmatpush1.bf16.msra.mxu1 %v4820_v37  ;;  %4535 = vmatprep.subr.bf16.mxu0 %v4534_v38  ;;  %v1088_v37 = vld [vmem:[%s6686_s29 + $0x11e0] sm:$0xff]  ;;  %v4842_v38 = vpack.c.bf16 %v1091_v32, %v1087_v31  ;;  %s1828_s29 = sshra.s32 %s4258_s11, 7 }
 0x1f8   : > { %4823 = vmatprep.subr.bf16.mxu1 %v4822_v42  ;;  %v4556_v41 = vpack.c.bf16 %v1088_v37, %v1084_v36  ;;  %v4844_v42 = vpack.c.bf16 %v1090_v40, %v1086_v39  ;;  %s4260_s14 = sshll.u32 %s1828_s29, 3 }
 0x1f9   : > { %s1831_s16 = scalar_lea.vmem [#allocation2], %s4260_s14 }
 0x1fa   : > { %4537 = vmatpush1.bf16.msra.mxu0 %v4536_v49  ;;  %v1100_v49 = vsub.s32 1, %v1095_v45 }
 0x1fb   : > { %4825 = vmatpush1.bf16.msra.mxu1 %v4824_v50  ;;  %4539 = vmatprep.subr.bf16.mxu0 %v4538_v51  ;;  %v1108_v50 = vsub.s32 3, %v1095_v45  ;;  %v1097_v51 = vrot.slane %v1092_v47, %v1096_v46 }
 0x1fc   : > { %4827 = vmatprep.subr.bf16.mxu1 %v4826_v55  ;;  %v1101_v53 = vrot.slane %v1092_v47, %v1100_v49 }
 0x1fd   : > { %v1109_v54 = vrot.slane %v1092_v47, %v1108_v50 }
 0x1fe   : > { %4541 = vmatpush1.bf16.msra.mxu0 %v4540_v61 }
 0x1ff   : > { %4829 = vmatpush1.bf16.msra.mxu1 %v4828_v62  ;;  %4543 = vmatprep.subr.bf16.mxu0 %v4542_v63 }
 0x200   : > { %4831 = vmatprep.subr.bf16.mxu1 %v4830_v3 }
 0x202   : > { %4545 = vmatpush1.bf16.msra.mxu0 %v4544_v9 }
 0x203   : > { %4833 = vmatpush1.bf16.msra.mxu1 %v4832_v10  ;;  %4547 = vmatprep.subr.bf16.mxu0 %v4546_v11 }
 0x204   : > { %4835 = vmatprep.subr.bf16.mxu1 %v4834_v15 }
 0x206   : > { %4549 = vmatpush1.bf16.msra.mxu0 %v4548_v21 }
 0x207   : > { %4837 = vmatpush1.bf16.msra.mxu1 %v4836_v22  ;;  %4551 = vmatprep.subr.bf16.mxu0 %v4550_v23 }
 0x208   : > { %4839 = vmatprep.subr.bf16.mxu1 %v4838_v27 }
 0x20a   : > { %4553 = vmatpush1.bf16.msra.mxu0 %v4552_v33 }
 0x20b   : > { %4841 = vmatpush1.bf16.msra.mxu1 %v4840_v34  ;;  %4555 = vmatprep.subr.bf16.mxu0 %v4554_v35 }
 0x20c   : > { %4843 = vmatprep.subr.bf16.mxu1 %v4842_v38 }
 0x20e   : > { %4557 = vmatpush1.bf16.msra.mxu0 %v4556_v41 }
 0x20f   : > { %4845 = vmatpush1.bf16.msra.mxu1 %v4844_v42 }
 0x211   : > { %1463 = vmatmul.mubr.f32.vlgmr.msra.gmra.mrb[0].mxu0 %v515_v43 }
 0x212   : > { %1818 = vmatmul.mubr.f32.vlgmr.msra.gmra.mrb[0].mxu1 %v515_v43 }
 0x2e4   : > { %v1464_v55 = vpop.f32.mrb[0].mxu0 }
 0x2e5   : > { %v5870_v56 = vadd.f32 %v1464_v55, %v1097_v51  ;;  %v1819_v57 = vpop.f32.mrb[0].mxu1  ;;  %v1466_v58 = vpop.f32.mrb[1].mxu0 }
 0x2e6   : > { %v5872_v59 = vadd.f32 %v1819_v57, %v1105_v52  ;;  %v5871_v60 = vadd.f32 %v1466_v58, %v1101_v53  ;;  %v1821_v61 = vpop.f32.mrb[1].mxu1 }
 0x2e7   : > { %v1824_v62 = vmax.f32 %v5870_v56, 0.0  ;;  %v5873_v63 = vadd.f32 %v1821_v61, %v1109_v54 }
 0x2e8   : > { %v1826_v0 = vmax.f32 %v5872_v59, 0.0  ;;  %v1825_v1 = vmax.f32 %v5871_v60, 0.0 }
 0x2e9   : > { %1832 = vst [vmem:[%s1831_s16] sm:$0xff] %v1824_v62  ;;  %v1827_v2 = vmax.f32 %v5873_v63, 0.0 }
 0x2ea   : > { %1834 = vst [vmem:[%s1831_s16 + $0x10] sm:$0xff] %v1826_v0  ;;  %1833 = vst [vmem:[%s1831_s16 + $0x8] sm:$0xff] %v1825_v1 }
 0x2eb   : > { %1835 = vst [vmem:[%s1831_s16 + $0x18] sm:$0xff] %v1827_v2 }
 0x2ec PF: > { %s8475_s11 = sld [smem:[#allocation20_spill]] }
 0x2f2   : > { %p1836_p5 = scmp.eq.s32.totalorder %s8475_s11, 1  ;;  %p4261_p11 = scmp.ne.s32.totalorder %s8475_s11, 1 }
 0x2f3   : > { %v1857_v3 = vld [vmem:[%s6701_s24 + $0x8] sm:$0xff] (!%p4261_p11)  ;;  %v1859_v5 = vld [vmem:[%s6701_s24 + $0x18] sm:$0xff] (!%p4261_p11)  ;;  %v1856_v8 = vld [vmem:[%s6701_s24] sm:$0xff] (!%p4261_p11)  ;;  %vm4075_vm1 = vcmask (!%p4261_p11), 7168  }
 0x2f4   : > { %1839 = sbr.rel (%p4261_p11) target bundleno = 1641 (0x669), region = 80  ;;  %v1861_v4 = vld [vmem:[%s6701_s24 + $0x28] sm:$0xff] (!%p4261_p11)  ;;  %v1863_v7 = vld [vmem:[%s6701_s24 + $0x38] sm:$0xff] (!%p4261_p11)  ;;  %v1860_v9 = vld [vmem:[%s6701_s24 + $0x20] sm:$0xff] (!%p4261_p11) }
 0x2f5   : > { %v4846_v6 = vpack.c.bf16 (!%p4261_p11), %v1861_v4, %v1857_v3  ;;  %v5358_v10 = vpack.c.bf16 (!%p4261_p11), %v1863_v7, %v1859_v5  ;;  %v4848_v11 = vpack.c.bf16 (!%p4261_p11), %v1860_v9, %v1856_v8  ;;  %v1858_v12 = vld [vmem:[%s6701_s24 + $0x10] sm:$0xff] (!%p4261_p11)  ;;  %v1865_v14 = vld [vmem:[%s6701_s24 + $0x48] sm:$0xff] (!%p4261_p11)  ;;  %v1867_v17 = vld [vmem:[%s6701_s24 + $0x58] sm:$0xff] (!%p4261_p11) }
 0x2f6   : > { %v1862_v13 = vld [vmem:[%s6701_s24 + $0x30] sm:$0xff] (!%p4261_p11)  ;;  %v1869_v16 = vld [vmem:[%s6701_s24 + $0x68] sm:$0xff] (!%p4261_p11)  ;;  %v1871_v18 = vld [vmem:[%s6701_s24 + $0x78] sm:$0xff] (!%p4261_p11) }
 0x2f7   : > { %4847 = vmatprep.subr.bf16.mxu0 (!%p4261_p11), %v4846_v6  ;;  %v5360_v15 = vpack.c.bf16 (!%p4261_p11), %v1862_v13, %v1858_v12  ;;  %5359 = vmatprep.subr.bf16.mxu1 (!%p4261_p11), %v5358_v10  ;;  %v4850_v19 = vpack.c.bf16 (!%p4261_p11), %v1869_v16, %v1865_v14  ;;  %v5362_v20 = vpack.c.bf16 (!%p4261_p11), %v1871_v18, %v1867_v17  ;;  %v1864_v21 = vld [vmem:[%s6701_s24 + $0x40] sm:$0xff] (!%p4261_p11)  ;;  %v1866_v23 = vld [vmem:[%s6701_s24 + $0x50] sm:$0xff] (!%p4261_p11)  ;;  %v1873_v26 = vld [vmem:[%s6701_s24 + $0x88] sm:$0xff] (!%p4261_p11) }
 0x2f8   : > { %4849 = vmatpush1.bf16.msra.mxu0 (!%p4261_p11), %v4848_v11  ;;  %v1868_v22 = vld [vmem:[%s6701_s24 + $0x60] sm:$0xff] (!%p4261_p11)  ;;  %v1870_v25 = vld [vmem:[%s6701_s24 + $0x70] sm:$0xff] (!%p4261_p11)  ;;  %v1877_v27 = vld [vmem:[%s6701_s24 + $0xa8] sm:$0xff] (!%p4261_p11) }
 0x2f9   : > { %5361 = vmatpush1.bf16.msra.mxu1 (!%p4261_p11), %v5360_v15  ;;  %v4852_v24 = vpack.c.bf16 (!%p4261_p11), %v1868_v22, %v1864_v21  ;;  %4851 = vmatprep.subr.bf16.mxu0 (!%p4261_p11), %v4850_v19  ;;  %v5364_v28 = vpack.c.bf16 (!%p4261_p11), %v1870_v25, %v1866_v23  ;;  %v4854_v29 = vpack.c.bf16 (!%p4261_p11), %v1877_v27, %v1873_v26  ;;  %v1875_v30 = vld [vmem:[%s6701_s24 + $0x98] sm:$0xff] (!%p4261_p11)  ;;  %v1872_v32 = vld [vmem:[%s6701_s24 + $0x80] sm:$0xff] (!%p4261_p11)  ;;  %v1874_v35 = vld [vmem:[%s6701_s24 + $0x90] sm:$0xff] (!%p4261_p11) }
 0x2fa   : > { %5363 = vmatprep.subr.bf16.mxu1 (!%p4261_p11), %v5362_v20  ;;  %v1879_v31 = vld [vmem:[%s6701_s24 + $0xb8] sm:$0xff] (!%p4261_p11)  ;;  %v1876_v34 = vld [vmem:[%s6701_s24 + $0xa0] sm:$0xff] (!%p4261_p11)  ;;  %v1878_v36 = vld [vmem:[%s6701_s24 + $0xb0] sm:$0xff] (!%p4261_p11) }
 0x2fb   : > { %v5366_v33 = vpack.c.bf16 %v1879_v31, %v1875_v30  ;;  %v4856_v37 = vpack.c.bf16 %v1876_v34, %v1872_v32  ;;  %v1881_v38 = vld [vmem:[%s6701_s24 + $0xc8] sm:$0xff]  ;;  %v1883_v40 = vld [vmem:[%s6701_s24 + $0xd8] sm:$0xff]  ;;  %v5368_v41 = vpack.c.bf16 %v1878_v36, %v1874_v35  ;;  %v1880_v44 = vld [vmem:[%s6701_s24 + $0xc0] sm:$0xff] }
 0x2fc   : > { %4853 = vmatpush1.bf16.msra.mxu0 %v4852_v24  ;;  %v1885_v39 = vld [vmem:[%s6701_s24 + $0xe8] sm:$0xff]  ;;  %v1887_v43 = vld [vmem:[%s6701_s24 + $0xf8] sm:$0xff]  ;;  %v1884_v45 = vld [vmem:[%s6701_s24 + $0xe0] sm:$0xff] }
 0x2fd   : > { %5365 = vmatpush1.bf16.msra.mxu1 %v5364_v28  ;;  %4855 = vmatprep.subr.bf16.mxu0 %v4854_v29  ;;  %v4858_v42 = vpack.c.bf16 %v1885_v39, %v1881_v38  ;;  %v5370_v46 = vpack.c.bf16 %v1887_v43, %v1883_v40  ;;  %v1882_v47 = vld [vmem:[%s6701_s24 + $0xd0] sm:$0xff]  ;;  %v1889_v49 = vld [vmem:[%s6701_s24 + $0x108] sm:$0xff]  ;;  %v1891_v51 = vld [vmem:[%s6701_s24 + $0x118] sm:$0xff]  ;;  %v4860_v53 = vpack.c.bf16 %v1884_v45, %v1880_v44 }
 0x2fe   : > { %5367 = vmatprep.subr.bf16.mxu1 %v5366_v33  ;;  %v1886_v48 = vld [vmem:[%s6701_s24 + $0xf0] sm:$0xff]  ;;  %v1893_v50 = vld [vmem:[%s6701_s24 + $0x128] sm:$0xff]  ;;  %v1895_v52 = vld [vmem:[%s6701_s24 + $0x138] sm:$0xff] }
 0x2ff   : > { %v5372_v54 = vpack.c.bf16 %v1886_v48, %v1882_v47  ;;  %v4862_v55 = vpack.c.bf16 %v1893_v50, %v1889_v49  ;;  %v1888_v56 = vld [vmem:[%s6701_s24 + $0x100] sm:$0xff]  ;;  %v1890_v58 = vld [vmem:[%s6701_s24 + $0x110] sm:$0xff]  ;;  %v5374_v59 = vpack.c.bf16 %v1895_v52, %v1891_v51  ;;  %v1897_v61 = vld [vmem:[%s6701_s24 + $0x148] sm:$0xff] }
 0x300   : > { %4857 = vmatpush1.bf16.msra.mxu0 %v4856_v37  ;;  %v1892_v57 = vld [vmem:[%s6701_s24 + $0x120] sm:$0xff]  ;;  %v1894_v60 = vld [vmem:[%s6701_s24 + $0x130] sm:$0xff]  ;;  %v1901_v62 = vld [vmem:[%s6701_s24 + $0x168] sm:$0xff] }
 0x301   : > { %5369 = vmatpush1.bf16.msra.mxu1 %v5368_v41  ;;  %4859 = vmatprep.subr.bf16.mxu0 %v4858_v42  ;;  %v1899_v63 = vld [vmem:[%s6701_s24 + $0x158] sm:$0xff]  ;;  %v4864_v1 = vpack.c.bf16 %v1892_v57, %v1888_v56  ;;  %v5376_v2 = vpack.c.bf16 %v1894_v60, %v1890_v58  ;;  %v4866_v3 = vpack.c.bf16 %v1901_v62, %v1897_v61  ;;  %v1896_v4 = vld [vmem:[%s6701_s24 + $0x140] sm:$0xff]  ;;  %v1898_v6 = vld [vmem:[%s6701_s24 + $0x150] sm:$0xff] }
 0x302   : > { %5371 = vmatprep.subr.bf16.mxu1 %v5370_v46  ;;  %v1903_v0 = vld [vmem:[%s6701_s24 + $0x178] sm:$0xff]  ;;  %v1900_v5 = vld [vmem:[%s6701_s24 + $0x160] sm:$0xff]  ;;  %v1902_v8 = vld [vmem:[%s6701_s24 + $0x170] sm:$0xff] }
 0x303   : > { %v5378_v7 = vpack.c.bf16 %v1903_v0, %v1899_v63  ;;  %v1905_v9 = vld [vmem:[%s6701_s24 + $0x188] sm:$0xff]  ;;  %v1907_v11 = vld [vmem:[%s6701_s24 + $0x198] sm:$0xff]  ;;  %v4868_v13 = vpack.c.bf16 %v1900_v5, %v1896_v4  ;;  %v5380_v14 = vpack.c.bf16 %v1902_v8, %v1898_v6  ;;  %v1904_v16 = vld [vmem:[%s6701_s24 + $0x180] sm:$0xff] }
 0x304   : > { %4861 = vmatpush1.bf16.msra.mxu0 %v4860_v53  ;;  %v1909_v10 = vld [vmem:[%s6701_s24 + $0x1a8] sm:$0xff]  ;;  %v1911_v12 = vld [vmem:[%s6701_s24 + $0x1b8] sm:$0xff]  ;;  %v1908_v17 = vld [vmem:[%s6701_s24 + $0x1a0] sm:$0xff] }
 0x305   : > { %5373 = vmatpush1.bf16.msra.mxu1 %v5372_v54  ;;  %4863 = vmatprep.subr.bf16.mxu0 %v4862_v55  ;;  %v4870_v15 = vpack.c.bf16 %v1909_v10, %v1905_v9  ;;  %v1906_v18 = vld [vmem:[%s6701_s24 + $0x190] sm:$0xff]  ;;  %v5382_v19 = vpack.c.bf16 %v1911_v12, %v1907_v11  ;;  %v1913_v21 = vld [vmem:[%s6701_s24 + $0x1c8] sm:$0xff]  ;;  %v1915_v23 = vld [vmem:[%s6701_s24 + $0x1d8] sm:$0xff]  ;;  %v4872_v25 = vpack.c.bf16 %v1908_v17, %v1904_v16 }
 0x306   : > { %5375 = vmatprep.subr.bf16.mxu1 %v5374_v59  ;;  %v1910_v20 = vld [vmem:[%s6701_s24 + $0x1b0] sm:$0xff]  ;;  %v1917_v22 = vld [vmem:[%s6701_s24 + $0x1e8] sm:$0xff]  ;;  %v1919_v24 = vld [vmem:[%s6701_s24 + $0x1f8] sm:$0xff] }
 0x307   : > { %v5384_v26 = vpack.c.bf16 %v1910_v20, %v1906_v18  ;;  %v4874_v27 = vpack.c.bf16 %v1917_v22, %v1913_v21  ;;  %v1912_v28 = vld [vmem:[%s6701_s24 + $0x1c0] sm:$0xff]  ;;  %v1914_v30 = vld [vmem:[%s6701_s24 + $0x1d0] sm:$0xff]  ;;  %v5386_v31 = vpack.c.bf16 %v1919_v24, %v1915_v23  ;;  %v1921_v33 = vld [vmem:[%s6701_s24 + $0x208] sm:$0xff] }
 0x308   : > { %4865 = vmatpush1.bf16.msra.mxu0 %v4864_v1  ;;  %v1916_v29 = vld [vmem:[%s6701_s24 + $0x1e0] sm:$0xff]  ;;  %v1918_v32 = vld [vmem:[%s6701_s24 + $0x1f0] sm:$0xff]  ;;  %v1925_v34 = vld [vmem:[%s6701_s24 + $0x228] sm:$0xff] }
 0x309   : > { %5377 = vmatpush1.bf16.msra.mxu1 %v5376_v2  ;;  %4867 = vmatprep.subr.bf16.mxu0 %v4866_v3  ;;  %v1923_v35 = vld [vmem:[%s6701_s24 + $0x218] sm:$0xff]  ;;  %v4876_v37 = vpack.c.bf16 %v1916_v29, %v1912_v28  ;;  %v5388_v38 = vpack.c.bf16 %v1918_v32, %v1914_v30  ;;  %v4878_v39 = vpack.c.bf16 %v1925_v34, %v1921_v33  ;;  %v1920_v40 = vld [vmem:[%s6701_s24 + $0x200] sm:$0xff]  ;;  %v1922_v42 = vld [vmem:[%s6701_s24 + $0x210] sm:$0xff] }
 0x30a   : > { %5379 = vmatprep.subr.bf16.mxu1 %v5378_v7  ;;  %v1927_v36 = vld [vmem:[%s6701_s24 + $0x238] sm:$0xff]  ;;  %v1924_v41 = vld [vmem:[%s6701_s24 + $0x220] sm:$0xff]  ;;  %v1926_v44 = vld [vmem:[%s6701_s24 + $0x230] sm:$0xff] }
 0x30b   : > { %v5390_v43 = vpack.c.bf16 %v1927_v36, %v1923_v35  ;;  %v1929_v45 = vld [vmem:[%s6701_s24 + $0x248] sm:$0xff]  ;;  %v1931_v47 = vld [vmem:[%s6701_s24 + $0x258] sm:$0xff]  ;;  %v4880_v49 = vpack.c.bf16 %v1924_v41, %v1920_v40  ;;  %v5392_v50 = vpack.c.bf16 %v1926_v44, %v1922_v42  ;;  %v1928_v52 = vld [vmem:[%s6701_s24 + $0x240] sm:$0xff] }
 0x30c   : > { %4869 = vmatpush1.bf16.msra.mxu0 %v4868_v13  ;;  %v1933_v46 = vld [vmem:[%s6701_s24 + $0x268] sm:$0xff]  ;;  %v1935_v48 = vld [vmem:[%s6701_s24 + $0x278] sm:$0xff]  ;;  %v1932_v53 = vld [vmem:[%s6701_s24 + $0x260] sm:$0xff] }
 0x30d   : > { %5381 = vmatpush1.bf16.msra.mxu1 %v5380_v14  ;;  %4871 = vmatprep.subr.bf16.mxu0 %v4870_v15  ;;  %v4882_v51 = vpack.c.bf16 %v1933_v46, %v1929_v45  ;;  %v1930_v54 = vld [vmem:[%s6701_s24 + $0x250] sm:$0xff]  ;;  %v5394_v55 = vpack.c.bf16 %v1935_v48, %v1931_v47  ;;  %v1937_v57 = vld [vmem:[%s6701_s24 + $0x288] sm:$0xff]  ;;  %v1939_v59 = vld [vmem:[%s6701_s24 + $0x298] sm:$0xff]  ;;  %v4884_v61 = vpack.c.bf16 %v1932_v53, %v1928_v52 }
 0x30e   : > { %5383 = vmatprep.subr.bf16.mxu1 %v5382_v19  ;;  %v1934_v56 = vld [vmem:[%s6701_s24 + $0x270] sm:$0xff]  ;;  %v1941_v58 = vld [vmem:[%s6701_s24 + $0x2a8] sm:$0xff]  ;;  %v1943_v60 = vld [vmem:[%s6701_s24 + $0x2b8] sm:$0xff] }
 0x30f   : > { %v5396_v62 = vpack.c.bf16 %v1934_v56, %v1930_v54  ;;  %v4886_v63 = vpack.c.bf16 %v1941_v58, %v1937_v57  ;;  %v1936_v0 = vld [vmem:[%s6701_s24 + $0x280] sm:$0xff]  ;;  %v1938_v2 = vld [vmem:[%s6701_s24 + $0x290] sm:$0xff]  ;;  %v5398_v3 = vpack.c.bf16 %v1943_v60, %v1939_v59  ;;  %v1945_v5 = vld [vmem:[%s6701_s24 + $0x2c8] sm:$0xff] }
 0x310   : > { %4873 = vmatpush1.bf16.msra.mxu0 %v4872_v25  ;;  %v1940_v1 = vld [vmem:[%s6701_s24 + $0x2a0] sm:$0xff]  ;;  %v1942_v4 = vld [vmem:[%s6701_s24 + $0x2b0] sm:$0xff]  ;;  %v1949_v6 = vld [vmem:[%s6701_s24 + $0x2e8] sm:$0xff] }
 0x311   : > { %5385 = vmatpush1.bf16.msra.mxu1 %v5384_v26  ;;  %4875 = vmatprep.subr.bf16.mxu0 %v4874_v27  ;;  %v1947_v7 = vld [vmem:[%s6701_s24 + $0x2d8] sm:$0xff]  ;;  %v4888_v9 = vpack.c.bf16 %v1940_v1, %v1936_v0  ;;  %v1944_v10 = vld [vmem:[%s6701_s24 + $0x2c0] sm:$0xff]  ;;  %v5400_v11 = vpack.c.bf16 %v1942_v4, %v1938_v2  ;;  %v4890_v12 = vpack.c.bf16 %v1949_v6, %v1945_v5  ;;  %v1946_v14 = vld [vmem:[%s6701_s24 + $0x2d0] sm:$0xff] }
 0x312   : > { %5387 = vmatprep.subr.bf16.mxu1 %v5386_v31  ;;  %v1951_v8 = vld [vmem:[%s6701_s24 + $0x2f8] sm:$0xff]  ;;  %v1948_v13 = vld [vmem:[%s6701_s24 + $0x2e0] sm:$0xff]  ;;  %v1950_v15 = vld [vmem:[%s6701_s24 + $0x2f0] sm:$0xff] }
 0x313   : > { %v5402_v16 = vpack.c.bf16 %v1951_v8, %v1947_v7  ;;  %v1953_v17 = vld [vmem:[%s6701_s24 + $0x308] sm:$0xff]  ;;  %v1841_v19 = vld [vmem:[#allocation2 + $0x8] sm:$0xff]  ;;  %v4892_v22 = vpack.c.bf16 %v1948_v13, %v1944_v10  ;;  %v5404_v23 = vpack.c.bf16 %v1950_v15, %v1946_v14  ;;  %v1952_v25 = vld [vmem:[%s6701_s24 + $0x300] sm:$0xff] }
 0x314   : > { %4877 = vmatpush1.bf16.msra.mxu0 %v4876_v37  ;;  %v1957_v18 = vld [vmem:[%s6701_s24 + $0x328] sm:$0xff]  ;;  %v1955_v20 = vld [vmem:[%s6701_s24 + $0x318] sm:$0xff]  ;;  %2966 = vmatprep.mubr.f32.mxu0 %v1841_v19  ;;  %v1956_v26 = vld [vmem:[%s6701_s24 + $0x320] sm:$0xff] }
 0x315   : > { %5389 = vmatpush1.bf16.msra.mxu1 %v5388_v38  ;;  %4879 = vmatprep.subr.bf16.mxu0 %v4878_v39  ;;  %v1959_v21 = vld [vmem:[%s6701_s24 + $0x338] sm:$0xff]  ;;  %v4894_v24 = vpack.c.bf16 %v1957_v18, %v1953_v17  ;;  %v1954_v27 = vld [vmem:[%s6701_s24 + $0x310] sm:$0xff]  ;;  %v1961_v30 = vld [vmem:[%s6701_s24 + $0x348] sm:$0xff]  ;;  %v4896_v34 = vpack.c.bf16 %v1956_v26, %v1952_v25 }
 0x316   : > { %5391 = vmatprep.subr.bf16.mxu1 %v5390_v43  ;;  %3534 = vmatprep.mubr.f32.mxu1 %v1841_v19  ;;  %v5406_v28 = vpack.c.bf16 %v1959_v21, %v1955_v20  ;;  %v1958_v29 = vld [vmem:[%s6701_s24 + $0x330] sm:$0xff]  ;;  %v1965_v31 = vld [vmem:[%s6701_s24 + $0x368] sm:$0xff]  ;;  %v1963_v32 = vld [vmem:[%s6701_s24 + $0x358] sm:$0xff] }
 0x317   : > { %v1967_v33 = vld [vmem:[%s6701_s24 + $0x378] sm:$0xff]  ;;  %v5408_v35 = vpack.c.bf16 %v1958_v29, %v1954_v27  ;;  %v4898_v36 = vpack.c.bf16 %v1965_v31, %v1961_v30  ;;  %v1960_v37 = vld [vmem:[%s6701_s24 + $0x340] sm:$0xff]  ;;  %v1962_v39 = vld [vmem:[%s6701_s24 + $0x350] sm:$0xff] }
 0x318   : > { %4881 = vmatpush1.bf16.msra.mxu0 %v4880_v49  ;;  %v1964_v38 = vld [vmem:[%s6701_s24 + $0x360] sm:$0xff]  ;;  %v5410_v40 = vpack.c.bf16 %v1967_v33, %v1963_v32  ;;  %v1966_v41 = vld [vmem:[%s6701_s24 + $0x370] sm:$0xff]  ;;  %v1969_v42 = vld [vmem:[%s6701_s24 + $0x388] sm:$0xff] }
 0x319   : > { %5393 = vmatpush1.bf16.msra.mxu1 %v5392_v50  ;;  %4883 = vmatprep.subr.bf16.mxu0 %v4882_v51  ;;  %v1973_v43 = vld [vmem:[%s6701_s24 + $0x3a8] sm:$0xff]  ;;  %v1971_v44 = vld [vmem:[%s6701_s24 + $0x398] sm:$0xff]  ;;  %v4900_v46 = vpack.c.bf16 %v1964_v38, %v1960_v37  ;;  %v5412_v47 = vpack.c.bf16 %v1966_v41, %v1962_v39  ;;  %v1968_v49 = vld [vmem:[%s6701_s24 + $0x380] sm:$0xff] }
 0x31a   : > { %5395 = vmatprep.subr.bf16.mxu1 %v5394_v55  ;;  %v1975_v45 = vld [vmem:[%s6701_s24 + $0x3b8] sm:$0xff]  ;;  %v4902_v48 = vpack.c.bf16 %v1973_v43, %v1969_v42  ;;  %v1972_v50 = vld [vmem:[%s6701_s24 + $0x3a0] sm:$0xff]  ;;  %v1970_v51 = vld [vmem:[%s6701_s24 + $0x390] sm:$0xff] }
 0x31b   : > { %v5414_v52 = vpack.c.bf16 %v1975_v45, %v1971_v44  ;;  %v1974_v53 = vld [vmem:[%s6701_s24 + $0x3b0] sm:$0xff]  ;;  %v1977_v54 = vld [vmem:[%s6701_s24 + $0x3c8] sm:$0xff]  ;;  %v1979_v56 = vld [vmem:[%s6701_s24 + $0x3d8] sm:$0xff]  ;;  %v4904_v58 = vpack.c.bf16 %v1972_v50, %v1968_v49 }
 0x31c   : > { %4885 = vmatpush1.bf16.msra.mxu0 %v4884_v61  ;;  %v1981_v55 = vld [vmem:[%s6701_s24 + $0x3e8] sm:$0xff]  ;;  %v1983_v57 = vld [vmem:[%s6701_s24 + $0x3f8] sm:$0xff]  ;;  %v5416_v59 = vpack.c.bf16 %v1974_v53, %v1970_v51  ;;  %v1976_v61 = vld [vmem:[%s6701_s24 + $0x3c0] sm:$0xff] }
 0x31d   : > { %5397 = vmatpush1.bf16.msra.mxu1 %v5396_v62  ;;  %4887 = vmatprep.subr.bf16.mxu0 %v4886_v63  ;;  %v4906_v60 = vpack.c.bf16 %v1981_v55, %v1977_v54  ;;  %v1980_v62 = vld [vmem:[%s6701_s24 + $0x3e0] sm:$0xff]  ;;  %v1978_v63 = vld [vmem:[%s6701_s24 + $0x3d0] sm:$0xff]  ;;  %v5418_v0 = vpack.c.bf16 %v1983_v57, %v1979_v56  ;;  %v1985_v2 = vld [vmem:[%s6701_s24 + $0x408] sm:$0xff] }
 0x31e   : > { %5399 = vmatprep.subr.bf16.mxu1 %v5398_v3  ;;  %v1982_v1 = vld [vmem:[%s6701_s24 + $0x3f0] sm:$0xff]  ;;  %v1989_v3 = vld [vmem:[%s6701_s24 + $0x428] sm:$0xff]  ;;  %v1987_v4 = vld [vmem:[%s6701_s24 + $0x418] sm:$0xff]  ;;  %v4908_v6 = vpack.c.bf16 %v1980_v62, %v1976_v61 }
 0x31f   : > { %v1991_v5 = vld [vmem:[%s6701_s24 + $0x438] sm:$0xff]  ;;  %v5420_v7 = vpack.c.bf16 %v1982_v1, %v1978_v63  ;;  %v4910_v8 = vpack.c.bf16 %v1989_v3, %v1985_v2  ;;  %v1988_v10 = vld [vmem:[%s6701_s24 + $0x420] sm:$0xff]  ;;  %v1990_v13 = vld [vmem:[%s6701_s24 + $0x430] sm:$0xff] }
 0x320   : > { %4889 = vmatpush1.bf16.msra.mxu0 %v4888_v9  ;;  %v1984_v9 = vld [vmem:[%s6701_s24 + $0x400] sm:$0xff]  ;;  %v1993_v14 = vld [vmem:[%s6701_s24 + $0x448] sm:$0xff]  ;;  %v1999_v17 = vld [vmem:[%s6701_s24 + $0x478] sm:$0xff] }
 0x321   : > { %5401 = vmatpush1.bf16.msra.mxu1 %v5400_v11  ;;  %4891 = vmatprep.subr.bf16.mxu0 %v4890_v12  ;;  %v1986_v11 = vld [vmem:[%s6701_s24 + $0x410] sm:$0xff]  ;;  %v5422_v12 = vpack.c.bf16 %v1991_v5, %v1987_v4  ;;  %v1997_v15 = vld [vmem:[%s6701_s24 + $0x468] sm:$0xff]  ;;  %v4912_v19 = vpack.c.bf16 %v1988_v10, %v1984_v9  ;;  %v2003_v29 = vld [vmem:[%s6701_s24 + $0x498] sm:$0xff] }
 0x322   : > { %5403 = vmatprep.subr.bf16.mxu1 %v5402_v16  ;;  %v1995_v16 = vld [vmem:[%s6701_s24 + $0x458] sm:$0xff]  ;;  %v1840_v18 = vld [vmem:[#allocation2] sm:$0xff]  ;;  %v5424_v20 = vpack.c.bf16 %v1990_v13, %v1986_v11  ;;  %v4914_v21 = vpack.c.bf16 %v1997_v15, %v1993_v14 }
 0x323   : > { %v5426_v25 = vpack.c.bf16 %v1999_v17, %v1995_v16  ;;  %v1998_v26 = vld [vmem:[%s6701_s24 + $0x470] sm:$0xff]  ;;  %v2001_v27 = vld [vmem:[%s6701_s24 + $0x488] sm:$0xff]  ;;  %v2007_v30 = vld [vmem:[%s6701_s24 + $0x4b8] sm:$0xff] }
 0x324   : > { %4893 = vmatpush1.bf16.msra.mxu0 %v4892_v22  ;;  %v1992_v22 = vld [vmem:[%s6701_s24 + $0x440] sm:$0xff]  ;;  %v5430_v37 = vpack.c.bf16 %v2007_v30, %v2003_v29  ;;  %v2006_v38 = vld [vmem:[%s6701_s24 + $0x4b0] sm:$0xff]  ;;  %v2009_v39 = vld [vmem:[%s6701_s24 + $0x4c8] sm:$0xff] }
 0x325   : > { %5405 = vmatpush1.bf16.msra.mxu1 %v5404_v23  ;;  %4895 = vmatprep.subr.bf16.mxu0 %v4894_v24  ;;  %v1996_v23 = vld [vmem:[%s6701_s24 + $0x460] sm:$0xff]  ;;  %v1994_v24 = vld [vmem:[%s6701_s24 + $0x450] sm:$0xff]  ;;  %v2011_v41 = vld [vmem:[%s6701_s24 + $0x4d8] sm:$0xff] }
 0x326   : > { %5407 = vmatprep.subr.bf16.mxu1 %v5406_v28  ;;  %v2005_v28 = vld [vmem:[%s6701_s24 + $0x4a8] sm:$0xff]  ;;  %v4916_v31 = vpack.c.bf16 %v1996_v23, %v1992_v22  ;;  %v5428_v32 = vpack.c.bf16 %v1998_v26, %v1994_v24  ;;  %v2015_v42 = vld [vmem:[%s6701_s24 + $0x4f8] sm:$0xff]  ;;  %v2014_v50 = vld [vmem:[%s6701_s24 + $0x4f0] sm:$0xff] }
 0x327   : > { %v4918_v33 = vpack.c.bf16 %v2005_v28, %v2001_v27  ;;  %v5434_v49 = vpack.c.bf16 %v2015_v42, %v2011_v41  ;;  %v2017_v51 = vld [vmem:[%s6701_s24 + $0x508] sm:$0xff]  ;;  %v2019_v53 = vld [vmem:[%s6701_s24 + $0x518] sm:$0xff]  ;;  %v2022_v62 = vld [vmem:[%s6701_s24 + $0x530] sm:$0xff] }
 0x328   : > { %4897 = vmatpush1.bf16.msra.mxu0 %v4896_v34  ;;  %v2000_v34 = vld [vmem:[%s6701_s24 + $0x480] sm:$0xff]  ;;  %v2023_v54 = vld [vmem:[%s6701_s24 + $0x538] sm:$0xff]  ;;  %v2025_v63 = vld [vmem:[%s6701_s24 + $0x548] sm:$0xff] }
 0x329   : > { %5409 = vmatpush1.bf16.msra.mxu1 %v5408_v35  ;;  %4899 = vmatprep.subr.bf16.mxu0 %v4898_v36  ;;  %v2004_v35 = vld [vmem:[%s6701_s24 + $0x4a0] sm:$0xff]  ;;  %v2002_v36 = vld [vmem:[%s6701_s24 + $0x490] sm:$0xff]  ;;  %v5438_v61 = vpack.c.bf16 %v2023_v54, %v2019_v53  ;;  %v2027_v1 = vld [vmem:[%s6701_s24 + $0x558] sm:$0xff] }
 0x32a   : > { %5411 = vmatprep.subr.bf16.mxu1 %v5410_v40  ;;  %v2013_v40 = vld [vmem:[%s6701_s24 + $0x4e8] sm:$0xff]  ;;  %v4920_v43 = vpack.c.bf16 %v2004_v35, %v2000_v34  ;;  %v5432_v44 = vpack.c.bf16 %v2006_v38, %v2002_v36  ;;  %v2031_v2 = vld [vmem:[%s6701_s24 + $0x578] sm:$0xff]  ;;  %v2030_v10 = vld [vmem:[%s6701_s24 + $0x570] sm:$0xff] }
 0x32b   : > { %v4922_v45 = vpack.c.bf16 %v2013_v40, %v2009_v39  ;;  %v5442_v9 = vpack.c.bf16 %v2031_v2, %v2027_v1  ;;  %v2033_v11 = vld [vmem:[%s6701_s24 + $0x588] sm:$0xff]  ;;  %v2035_v13 = vld [vmem:[%s6701_s24 + $0x598] sm:$0xff]  ;;  %v2032_v16 = vld [vmem:[%s6701_s24 + $0x580] sm:$0xff] }
 0x32c   : > { %4901 = vmatpush1.bf16.msra.mxu0 %v4900_v46  ;;  %v2008_v46 = vld [vmem:[%s6701_s24 + $0x4c0] sm:$0xff]  ;;  %v2039_v14 = vld [vmem:[%s6701_s24 + $0x5b8] sm:$0xff]  ;;  %v2041_v23 = vld [vmem:[%s6701_s24 + $0x5c8] sm:$0xff] }
 0x32d   : > { %5413 = vmatpush1.bf16.msra.mxu1 %v5412_v47  ;;  %4903 = vmatprep.subr.bf16.mxu0 %v4902_v48  ;;  %v2012_v47 = vld [vmem:[%s6701_s24 + $0x4e0] sm:$0xff]  ;;  %v2010_v48 = vld [vmem:[%s6701_s24 + $0x4d0] sm:$0xff]  ;;  %v5446_v22 = vpack.c.bf16 %v2039_v14, %v2035_v13  ;;  %v2045_v24 = vld [vmem:[%s6701_s24 + $0x5e8] sm:$0xff] }
 0x32e   : > { %5415 = vmatprep.subr.bf16.mxu1 %v5414_v52  ;;  %v2021_v52 = vld [vmem:[%s6701_s24 + $0x528] sm:$0xff]  ;;  %v4924_v55 = vpack.c.bf16 %v2012_v47, %v2008_v46  ;;  %v5436_v56 = vpack.c.bf16 %v2014_v50, %v2010_v48  ;;  %v2043_v26 = vld [vmem:[%s6701_s24 + $0x5d8] sm:$0xff]  ;;  %v4938_v30 = vpack.c.bf16 %v2045_v24, %v2041_v23  ;;  %v2046_v35 = vld [vmem:[%s6701_s24 + $0x5f0] sm:$0xff] }
 0x32f   : > { %v4926_v57 = vpack.c.bf16 %v2021_v52, %v2017_v51  ;;  %v2047_v27 = vld [vmem:[%s6701_s24 + $0x5f8] sm:$0xff]  ;;  %v2049_v36 = vld [vmem:[%s6701_s24 + $0x608] sm:$0xff]  ;;  %v2054_v47 = vld [vmem:[%s6701_s24 + $0x630] sm:$0xff] }
 0x330   : > { %4905 = vmatpush1.bf16.msra.mxu0 %v4904_v58  ;;  %v2016_v58 = vld [vmem:[%s6701_s24 + $0x500] sm:$0xff]  ;;  %v5450_v34 = vpack.c.bf16 %v2047_v27, %v2043_v26  ;;  %v2051_v38 = vld [vmem:[%s6701_s24 + $0x618] sm:$0xff]  ;;  %v2057_v48 = vld [vmem:[%s6701_s24 + $0x648] sm:$0xff] }
 0x331   : > { %5417 = vmatpush1.bf16.msra.mxu1 %v5416_v59  ;;  %4907 = vmatprep.subr.bf16.mxu0 %v4906_v60  ;;  %v2020_v59 = vld [vmem:[%s6701_s24 + $0x520] sm:$0xff]  ;;  %v2018_v60 = vld [vmem:[%s6701_s24 + $0x510] sm:$0xff]  ;;  %v2055_v39 = vld [vmem:[%s6701_s24 + $0x638] sm:$0xff] }
 0x332   : > { %5419 = vmatprep.subr.bf16.mxu1 %v5418_v0  ;;  %v2029_v0 = vld [vmem:[%s6701_s24 + $0x568] sm:$0xff]  ;;  %v4928_v3 = vpack.c.bf16 %v2020_v59, %v2016_v58  ;;  %v5440_v4 = vpack.c.bf16 %v2022_v62, %v2018_v60  ;;  %v5454_v46 = vpack.c.bf16 %v2055_v39, %v2051_v38  ;;  %v2059_v50 = vld [vmem:[%s6701_s24 + $0x658] sm:$0xff]  ;;  %v2062_v59 = vld [vmem:[%s6701_s24 + $0x670] sm:$0xff] }
 0x333   : > { %v4930_v5 = vpack.c.bf16 %v2029_v0, %v2025_v63  ;;  %v2063_v51 = vld [vmem:[%s6701_s24 + $0x678] sm:$0xff]  ;;  %v2065_v60 = vld [vmem:[%s6701_s24 + $0x688] sm:$0xff]  ;;  %v2080_v27 = vld [vmem:[%s6701_s24 + $0x700] sm:$0xff] }
 0x334   : > { %4909 = vmatpush1.bf16.msra.mxu0 %v4908_v6  ;;  %v2024_v6 = vld [vmem:[%s6701_s24 + $0x540] sm:$0xff]  ;;  %v5458_v58 = vpack.c.bf16 %v2063_v51, %v2059_v50  ;;  %v2067_v62 = vld [vmem:[%s6701_s24 + $0x698] sm:$0xff] }
 0x335   : > { %5421 = vmatpush1.bf16.msra.mxu1 %v5420_v7  ;;  %4911 = vmatprep.subr.bf16.mxu0 %v4910_v8  ;;  %v2028_v7 = vld [vmem:[%s6701_s24 + $0x560] sm:$0xff]  ;;  %v2026_v8 = vld [vmem:[%s6701_s24 + $0x550] sm:$0xff]  ;;  %v2071_v63 = vld [vmem:[%s6701_s24 + $0x6b8] sm:$0xff] }
 0x336   : > { %5423 = vmatprep.subr.bf16.mxu1 %v5422_v12  ;;  %v2037_v12 = vld [vmem:[%s6701_s24 + $0x5a8] sm:$0xff]  ;;  %v4932_v15 = vpack.c.bf16 %v2028_v7, %v2024_v6  ;;  %v5444_v17 = vpack.c.bf16 %v2030_v10, %v2026_v8  ;;  %v5462_v6 = vpack.c.bf16 %v2071_v63, %v2067_v62  ;;  %v2070_v7 = vld [vmem:[%s6701_s24 + $0x6b0] sm:$0xff]  ;;  %v2075_v10 = vld [vmem:[%s6701_s24 + $0x6d8] sm:$0xff] }
 0x337   : > { %2967 = vmatmul.mubr.f32.vlgmr.msra.gmra.mrb[0].mxu0 %v1840_v18  ;;  %v2073_v8 = vld [vmem:[%s6701_s24 + $0x6c8] sm:$0xff]  ;;  %v2087_v23 = vld [vmem:[%s6701_s24 + $0x738] sm:$0xff]  ;;  %v2088_v39 = vld [vmem:[%s6701_s24 + $0x740] sm:$0xff] }
 0x338   : > { %4913 = vmatpush1.bf16.msra.mxu0 %v4912_v19  ;;  %3535 = vmatmul.mubr.f32.vlgmr.msra.gmra.mrb[0].mxu1 %v1840_v18  ;;  %v4934_v18 = vpack.c.bf16 %v2037_v12, %v2033_v11  ;;  %v2036_v19 = vld [vmem:[%s6701_s24 + $0x5a0] sm:$0xff]  ;;  %v2079_v11 = vld [vmem:[%s6701_s24 + $0x6f8] sm:$0xff] }
 0x339   : > { %5425 = vmatpush1.bf16.msra.mxu1 %v5424_v20  ;;  %4915 = vmatprep.subr.bf16.mxu0 %v4914_v21  ;;  %v2034_v20 = vld [vmem:[%s6701_s24 + $0x590] sm:$0xff]  ;;  %v4936_v28 = vpack.c.bf16 %v2036_v19, %v2032_v16  ;;  %v2076_v16 = vld [vmem:[%s6701_s24 + $0x6e0] sm:$0xff] }
 0x33a   : > { %5427 = vmatprep.subr.bf16.mxu1 %v5426_v25  ;;  %v2038_v21 = vld [vmem:[%s6701_s24 + $0x5b0] sm:$0xff]  ;;  %v1843_v25 = vld [vmem:[#allocation2 + $0x18] sm:$0xff] }
 0x33b   : > { %3037 = vmatprep.mubr.f32.mxu0 %v1843_v25  ;;  %3605 = vmatprep.mubr.f32.mxu1 %v1843_v25  ;;  %v5448_v29 = vpack.c.bf16 %v2038_v21, %v2034_v20  ;;  %v2078_v19 = vld [vmem:[%s6701_s24 + $0x6f0] sm:$0xff]  ;;  %v2081_v20 = vld [vmem:[%s6701_s24 + $0x708] sm:$0xff]  ;;  %v2096_v51 = vld [vmem:[%s6701_s24 + $0x780] sm:$0xff] }
 0x33c   : > { %4917 = vmatpush1.bf16.msra.mxu0 %v4916_v31  ;;  %v2040_v31 = vld [vmem:[%s6701_s24 + $0x5c0] sm:$0xff]  ;;  %v2085_v21 = vld [vmem:[%s6701_s24 + $0x728] sm:$0xff] }
 0x33d   : > { %5429 = vmatpush1.bf16.msra.mxu1 %v5428_v32  ;;  %4919 = vmatprep.subr.bf16.mxu0 %v4918_v33  ;;  %v2044_v32 = vld [vmem:[%s6701_s24 + $0x5e0] sm:$0xff]  ;;  %v2042_v33 = vld [vmem:[%s6701_s24 + $0x5d0] sm:$0xff]  ;;  %v4958_v26 = vpack.c.bf16 %v2085_v21, %v2081_v20 }
 0x33e   : > { %5431 = vmatprep.subr.bf16.mxu1 %v5430_v37  ;;  %v2053_v37 = vld [vmem:[%s6701_s24 + $0x628] sm:$0xff]  ;;  %v4940_v40 = vpack.c.bf16 %v2044_v32, %v2040_v31  ;;  %v5452_v41 = vpack.c.bf16 %v2046_v35, %v2042_v33  ;;  %v2086_v31 = vld [vmem:[%s6701_s24 + $0x730] sm:$0xff]  ;;  %v2095_v35 = vld [vmem:[%s6701_s24 + $0x778] sm:$0xff] }
 0x33f   : > { %v4942_v42 = vpack.c.bf16 %v2053_v37, %v2049_v36  ;;  %v2089_v32 = vld [vmem:[%s6701_s24 + $0x748] sm:$0xff]  ;;  %v2104_v63 = vld [vmem:[%s6701_s24 + $0x7c0] sm:$0xff] }
 0x340   : > { %4921 = vmatpush1.bf16.msra.mxu0 %v4920_v43  ;;  %v2048_v43 = vld [vmem:[%s6701_s24 + $0x600] sm:$0xff]  ;;  %v2093_v33 = vld [vmem:[%s6701_s24 + $0x768] sm:$0xff] }
 0x341   : > { %5433 = vmatpush1.bf16.msra.mxu1 %v5432_v44  ;;  %4923 = vmatprep.subr.bf16.mxu0 %v4922_v45  ;;  %v2052_v44 = vld [vmem:[%s6701_s24 + $0x620] sm:$0xff]  ;;  %v2050_v45 = vld [vmem:[%s6701_s24 + $0x610] sm:$0xff]  ;;  %v4962_v38 = vpack.c.bf16 %v2093_v33, %v2089_v32  ;;  %v2135_v32 = vld [vmem:[%s6701_s24 + $0x8b8] sm:$0xff] }
 0x342   : > { %5435 = vmatprep.subr.bf16.mxu1 %v5434_v49  ;;  %v2061_v49 = vld [vmem:[%s6701_s24 + $0x668] sm:$0xff]  ;;  %v4944_v52 = vpack.c.bf16 %v2052_v44, %v2048_v43  ;;  %v5456_v53 = vpack.c.bf16 %v2054_v47, %v2050_v45  ;;  %v2094_v43 = vld [vmem:[%s6701_s24 + $0x770] sm:$0xff]  ;;  %v2103_v47 = vld [vmem:[%s6701_s24 + $0x7b8] sm:$0xff] }
 0x343   : > { %v4946_v54 = vpack.c.bf16 %v2061_v49, %v2057_v48  ;;  %v2097_v44 = vld [vmem:[%s6701_s24 + $0x788] sm:$0xff]  ;;  %v1842_v20 = vld [vmem:[#allocation2 + $0x10] sm:$0xff]  ;;  %v1845_v33 = vld [vmem:[#allocation2 + $0x28] sm:$0xff] }
 0x344   : > { %4925 = vmatpush1.bf16.msra.mxu0 %v4924_v55  ;;  %v2056_v55 = vld [vmem:[%s6701_s24 + $0x640] sm:$0xff]  ;;  %v2101_v45 = vld [vmem:[%s6701_s24 + $0x7a8] sm:$0xff] }
 0x345   : > { %5437 = vmatpush1.bf16.msra.mxu1 %v5436_v56  ;;  %4927 = vmatprep.subr.bf16.mxu0 %v4926_v57  ;;  %v2060_v56 = vld [vmem:[%s6701_s24 + $0x660] sm:$0xff]  ;;  %v2058_v57 = vld [vmem:[%s6701_s24 + $0x650] sm:$0xff]  ;;  %v4966_v50 = vpack.c.bf16 %v2101_v45, %v2097_v44  ;;  %v2139_v44 = vld [vmem:[%s6701_s24 + $0x8d8] sm:$0xff] }
 0x346   : > { %5439 = vmatprep.subr.bf16.mxu1 %v5438_v61  ;;  %v2069_v61 = vld [vmem:[%s6701_s24 + $0x6a8] sm:$0xff]  ;;  %v4948_v0 = vpack.c.bf16 %v2060_v56, %v2056_v55  ;;  %v5460_v1 = vpack.c.bf16 %v2062_v59, %v2058_v57  ;;  %v2102_v55 = vld [vmem:[%s6701_s24 + $0x7b0] sm:$0xff]  ;;  %v2111_v59 = vld [vmem:[%s6701_s24 + $0x7f8] sm:$0xff] }
 0x347   : > { %v4950_v2 = vpack.c.bf16 %v2069_v61, %v2065_v60  ;;  %v2105_v56 = vld [vmem:[%s6701_s24 + $0x7c8] sm:$0xff]  ;;  %v2143_v45 = vld [vmem:[%s6701_s24 + $0x8f8] sm:$0xff] }
 0x348   : > { %4929 = vmatpush1.bf16.msra.mxu0 %v4928_v3  ;;  %v2064_v3 = vld [vmem:[%s6701_s24 + $0x680] sm:$0xff]  ;;  %v2109_v57 = vld [vmem:[%s6701_s24 + $0x7e8] sm:$0xff] }
 0x349   : > { %5441 = vmatpush1.bf16.msra.mxu1 %v5440_v4  ;;  %4931 = vmatprep.subr.bf16.mxu0 %v4930_v5  ;;  %v2068_v4 = vld [vmem:[%s6701_s24 + $0x6a0] sm:$0xff]  ;;  %v2066_v5 = vld [vmem:[%s6701_s24 + $0x690] sm:$0xff]  ;;  %v4970_v62 = vpack.c.bf16 %v2109_v57, %v2105_v56  ;;  %v2147_v56 = vld [vmem:[%s6701_s24 + $0x918] sm:$0xff] }
 0x34a   : > { %5443 = vmatprep.subr.bf16.mxu1 %v5442_v9  ;;  %v2077_v9 = vld [vmem:[%s6701_s24 + $0x6e8] sm:$0xff]  ;;  %v4952_v12 = vpack.c.bf16 %v2068_v4, %v2064_v3  ;;  %v5464_v13 = vpack.c.bf16 %v2070_v7, %v2066_v5  ;;  %v2110_v3 = vld [vmem:[%s6701_s24 + $0x7f0] sm:$0xff]  ;;  %v2119_v7 = vld [vmem:[%s6701_s24 + $0x838] sm:$0xff] }
 0x34b   : > { %v4954_v14 = vpack.c.bf16 %v2077_v9, %v2073_v8  ;;  %v2113_v4 = vld [vmem:[%s6701_s24 + $0x808] sm:$0xff]  ;;  %v2151_v57 = vld [vmem:[%s6701_s24 + $0x938] sm:$0xff] }
 0x34c   : > { %4933 = vmatpush1.bf16.msra.mxu0 %v4932_v15  ;;  %v2072_v15 = vld [vmem:[%s6701_s24 + $0x6c0] sm:$0xff]  ;;  %v2117_v5 = vld [vmem:[%s6701_s24 + $0x828] sm:$0xff] }
 0x34d   : > { %5445 = vmatpush1.bf16.msra.mxu1 %v5444_v17  ;;  %4935 = vmatprep.subr.bf16.mxu0 %v4934_v18  ;;  %v2074_v17 = vld [vmem:[%s6701_s24 + $0x6d0] sm:$0xff]  ;;  %v5466_v18 = vpack.c.bf16 %v2079_v11, %v2075_v10  ;;  %v4956_v24 = vpack.c.bf16 %v2076_v16, %v2072_v15  ;;  %v4974_v10 = vpack.c.bf16 %v2117_v5, %v2113_v4  ;;  %v2112_v11 = vld [vmem:[%s6701_s24 + $0x800] sm:$0xff]  ;;  %v2121_v16 = vld [vmem:[%s6701_s24 + $0x848] sm:$0xff] }
 0x34e   : > { %5447 = vmatprep.subr.bf16.mxu1 %v5446_v22  ;;  %v2083_v22 = vld [vmem:[%s6701_s24 + $0x718] sm:$0xff]  ;;  %v5468_v25 = vpack.c.bf16 %v2078_v19, %v2074_v17  ;;  %v2118_v15 = vld [vmem:[%s6701_s24 + $0x830] sm:$0xff]  ;;  %v2125_v17 = vld [vmem:[%s6701_s24 + $0x868] sm:$0xff] }
 0x34f   : > { %v2127_v19 = vld [vmem:[%s6701_s24 + $0x878] sm:$0xff] }
 0x350   : > { %4937 = vmatpush1.bf16.msra.mxu0 %v4936_v28  ;;  %v2084_v28 = vld [vmem:[%s6701_s24 + $0x720] sm:$0xff]  ;;  %v2155_v4 = vld [vmem:[%s6701_s24 + $0x958] sm:$0xff] }
 0x351   : > { %5449 = vmatpush1.bf16.msra.mxu1 %v5448_v29  ;;  %4939 = vmatprep.subr.bf16.mxu0 %v4938_v30  ;;  %v2082_v29 = vld [vmem:[%s6701_s24 + $0x710] sm:$0xff]  ;;  %v5470_v30 = vpack.c.bf16 %v2087_v23, %v2083_v22  ;;  %v4960_v36 = vpack.c.bf16 %v2084_v28, %v2080_v27  ;;  %v4978_v23 = vpack.c.bf16 %v2125_v17, %v2121_v16  ;;  %v2159_v5 = vld [vmem:[%s6701_s24 + $0x978] sm:$0xff] }
 0x352   : > { %5451 = vmatprep.subr.bf16.mxu1 %v5450_v34  ;;  %v2091_v34 = vld [vmem:[%s6701_s24 + $0x758] sm:$0xff]  ;;  %v5472_v37 = vpack.c.bf16 %v2086_v31, %v2082_v29  ;;  %v2126_v28 = vld [vmem:[%s6701_s24 + $0x870] sm:$0xff]  ;;  %v2129_v29 = vld [vmem:[%s6701_s24 + $0x888] sm:$0xff] }
 0x353   : > { %v2131_v31 = vld [vmem:[%s6701_s24 + $0x898] sm:$0xff] }
 0x354   : > { %4941 = vmatpush1.bf16.msra.mxu0 %v4940_v40  ;;  %v2092_v40 = vld [vmem:[%s6701_s24 + $0x760] sm:$0xff]  ;;  %v2163_v16 = vld [vmem:[%s6701_s24 + $0x998] sm:$0xff] }
 0x355   : > { %5453 = vmatpush1.bf16.msra.mxu1 %v5452_v41  ;;  %4943 = vmatprep.subr.bf16.mxu0 %v4942_v42  ;;  %v2090_v41 = vld [vmem:[%s6701_s24 + $0x750] sm:$0xff]  ;;  %v5474_v42 = vpack.c.bf16 %v2095_v35, %v2091_v34  ;;  %v4964_v48 = vpack.c.bf16 %v2092_v40, %v2088_v39  ;;  %v5494_v40 = vpack.c.bf16 %v2135_v32, %v2131_v31  ;;  %v2167_v17 = vld [vmem:[%s6701_s24 + $0x9b8] sm:$0xff] }
 0x356   : > { %5455 = vmatprep.subr.bf16.mxu1 %v5454_v46  ;;  %v2099_v46 = vld [vmem:[%s6701_s24 + $0x798] sm:$0xff]  ;;  %v5476_v49 = vpack.c.bf16 %v2094_v43, %v2090_v41  ;;  %v2130_v39 = vld [vmem:[%s6701_s24 + $0x890] sm:$0xff]  ;;  %v2141_v43 = vld [vmem:[%s6701_s24 + $0x8e8] sm:$0xff] }
 0x357   : > { %v2134_v41 = vld [vmem:[%s6701_s24 + $0x8b0] sm:$0xff] }
 0x358   : > { %4945 = vmatpush1.bf16.msra.mxu0 %v4944_v52  ;;  %v2100_v52 = vld [vmem:[%s6701_s24 + $0x7a0] sm:$0xff] }
 0x359   : > { %5457 = vmatpush1.bf16.msra.mxu1 %v5456_v53  ;;  %4947 = vmatprep.subr.bf16.mxu0 %v4946_v54  ;;  %v2098_v53 = vld [vmem:[%s6701_s24 + $0x790] sm:$0xff]  ;;  %v5478_v54 = vpack.c.bf16 %v2103_v47, %v2099_v46  ;;  %v4968_v60 = vpack.c.bf16 %v2100_v52, %v2096_v51  ;;  %v5496_v47 = vpack.c.bf16 %v2134_v41, %v2130_v39  ;;  %v2181_v39 = vld [vmem:[%s6701_s24 + $0xa28] sm:$0xff]  ;;  %v2183_v41 = vld [vmem:[%s6701_s24 + $0xa38] sm:$0xff] }
 0x35a   : > { %5459 = vmatprep.subr.bf16.mxu1 %v5458_v58  ;;  %v2107_v58 = vld [vmem:[%s6701_s24 + $0x7d8] sm:$0xff]  ;;  %v5480_v61 = vpack.c.bf16 %v2102_v55, %v2098_v53  ;;  %v2138_v51 = vld [vmem:[%s6701_s24 + $0x8d0] sm:$0xff]  ;;  %v5498_v52 = vpack.c.bf16 %v2143_v45, %v2139_v44  ;;  %v2149_v55 = vld [vmem:[%s6701_s24 + $0x928] sm:$0xff] }
 0x35b   : > { %v2142_v53 = vld [vmem:[%s6701_s24 + $0x8f0] sm:$0xff]  ;;  %v2176_v45 = vld [vmem:[%s6701_s24 + $0xa00] sm:$0xff] }
 0x35c   : > { %4949 = vmatpush1.bf16.msra.mxu0 %v4948_v0  ;;  %v2108_v0 = vld [vmem:[%s6701_s24 + $0x7e0] sm:$0xff] }
 0x35d   : > { %5461 = vmatpush1.bf16.msra.mxu1 %v5460_v1  ;;  %4951 = vmatprep.subr.bf16.mxu0 %v4950_v2  ;;  %v2106_v1 = vld [vmem:[%s6701_s24 + $0x7d0] sm:$0xff]  ;;  %v5482_v2 = vpack.c.bf16 %v2111_v59, %v2107_v58  ;;  %v4972_v8 = vpack.c.bf16 %v2108_v0, %v2104_v63  ;;  %v5500_v59 = vpack.c.bf16 %v2142_v53, %v2138_v51  ;;  %v2189_v51 = vld [vmem:[%s6701_s24 + $0xa68] sm:$0xff]  ;;  %v2191_v53 = vld [vmem:[%s6701_s24 + $0xa78] sm:$0xff] }
 0x35e   : > { %5463 = vmatprep.subr.bf16.mxu1 %v5462_v6  ;;  %v2115_v6 = vld [vmem:[%s6701_s24 + $0x818] sm:$0xff]  ;;  %v5484_v9 = vpack.c.bf16 %v2110_v3, %v2106_v1  ;;  %v2146_v63 = vld [vmem:[%s6701_s24 + $0x910] sm:$0xff]  ;;  %v5502_v0 = vpack.c.bf16 %v2151_v57, %v2147_v56  ;;  %v2157_v3 = vld [vmem:[%s6701_s24 + $0x968] sm:$0xff] }
 0x35f   : > { %v2150_v1 = vld [vmem:[%s6701_s24 + $0x930] sm:$0xff]  ;;  %v2184_v57 = vld [vmem:[%s6701_s24 + $0xa40] sm:$0xff] }
 0x360   : > { %4953 = vmatpush1.bf16.msra.mxu0 %v4952_v12  ;;  %v2116_v12 = vld [vmem:[%s6701_s24 + $0x820] sm:$0xff] }
 0x361   : > { %5465 = vmatpush1.bf16.msra.mxu1 %v5464_v13  ;;  %4955 = vmatprep.subr.bf16.mxu0 %v4954_v14  ;;  %v2114_v13 = vld [vmem:[%s6701_s24 + $0x810] sm:$0xff]  ;;  %v5486_v14 = vpack.c.bf16 %v2119_v7, %v2115_v6  ;;  %v4976_v21 = vpack.c.bf16 %v2116_v12, %v2112_v11  ;;  %v5504_v7 = vpack.c.bf16 %v2150_v1, %v2146_v63  ;;  %v2197_v63 = vld [vmem:[%s6701_s24 + $0xaa8] sm:$0xff]  ;;  %v2199_v1 = vld [vmem:[%s6701_s24 + $0xab8] sm:$0xff] }
 0x362   : > { %5467 = vmatprep.subr.bf16.mxu1 %v5466_v18  ;;  %v2123_v18 = vld [vmem:[%s6701_s24 + $0x858] sm:$0xff]  ;;  %v5488_v22 = vpack.c.bf16 %v2118_v15, %v2114_v13  ;;  %v2154_v11 = vld [vmem:[%s6701_s24 + $0x950] sm:$0xff]  ;;  %v5506_v12 = vpack.c.bf16 %v2159_v5, %v2155_v4  ;;  %v2165_v15 = vld [vmem:[%s6701_s24 + $0x9a8] sm:$0xff] }
 0x363   : > { %v5490_v27 = vpack.c.bf16 %v2127_v19, %v2123_v18  ;;  %v2158_v13 = vld [vmem:[%s6701_s24 + $0x970] sm:$0xff]  ;;  %v2192_v5 = vld [vmem:[%s6701_s24 + $0xa80] sm:$0xff] }
 0x364   : > { %4957 = vmatpush1.bf16.msra.mxu0 %v4956_v24  ;;  %v2120_v24 = vld [vmem:[%s6701_s24 + $0x840] sm:$0xff]  ;;  %v5508_v19 = vpack.c.bf16 %v2158_v13, %v2154_v11  ;;  %v2205_v11 = vld [vmem:[%s6701_s24 + $0xae8] sm:$0xff]  ;;  %v2207_v13 = vld [vmem:[%s6701_s24 + $0xaf8] sm:$0xff] }
 0x365   : > { %5469 = vmatpush1.bf16.msra.mxu1 %v5468_v25  ;;  %4959 = vmatprep.subr.bf16.mxu0 %v4958_v26  ;;  %v2124_v25 = vld [vmem:[%s6701_s24 + $0x860] sm:$0xff]  ;;  %v2122_v26 = vld [vmem:[%s6701_s24 + $0x850] sm:$0xff] }
 0x366   : > { %5471 = vmatprep.subr.bf16.mxu1 %v5470_v30  ;;  %v2133_v30 = vld [vmem:[%s6701_s24 + $0x8a8] sm:$0xff]  ;;  %v4980_v34 = vpack.c.bf16 %v2124_v25, %v2120_v24  ;;  %v5492_v35 = vpack.c.bf16 %v2126_v28, %v2122_v26  ;;  %v5510_v24 = vpack.c.bf16 %v2167_v17, %v2163_v16  ;;  %v2166_v25 = vld [vmem:[%s6701_s24 + $0x9b0] sm:$0xff]  ;;  %v2171_v28 = vld [vmem:[%s6701_s24 + $0x9d8] sm:$0xff] }
 0x367   : > { %v2169_v26 = vld [vmem:[%s6701_s24 + $0x9c8] sm:$0xff]  ;;  %v2200_v17 = vld [vmem:[%s6701_s24 + $0xac0] sm:$0xff] }
 0x368   : > { %4961 = vmatpush1.bf16.msra.mxu0 %v4960_v36  ;;  %v4982_v36 = vpack.c.bf16 %v2133_v30, %v2129_v29  ;;  %v2175_v29 = vld [vmem:[%s6701_s24 + $0x9f8] sm:$0xff] }
 0x369   : > { %5473 = vmatpush1.bf16.msra.mxu1 %v5472_v37  ;;  %4963 = vmatprep.subr.bf16.mxu0 %v4962_v38  ;;  %v2128_v37 = vld [vmem:[%s6701_s24 + $0x880] sm:$0xff] }
 0x36a   : > { %5475 = vmatprep.subr.bf16.mxu1 %v5474_v42  ;;  %v2132_v38 = vld [vmem:[%s6701_s24 + $0x8a0] sm:$0xff]  ;;  %v2137_v42 = vld [vmem:[%s6701_s24 + $0x8c8] sm:$0xff] }
 0x36b   : > { %v4984_v46 = vpack.c.bf16 %v2132_v38, %v2128_v37  ;;  %v2174_v37 = vld [vmem:[%s6701_s24 + $0x9f0] sm:$0xff]  ;;  %v2177_v38 = vld [vmem:[%s6701_s24 + $0xa08] sm:$0xff] }
 0x36c   : > { %4965 = vmatpush1.bf16.msra.mxu0 %v4964_v48  ;;  %v4986_v48 = vpack.c.bf16 %v2141_v43, %v2137_v42  ;;  %v5006_v44 = vpack.c.bf16 %v2181_v39, %v2177_v38 }
 0x36d   : > { %5477 = vmatpush1.bf16.msra.mxu1 %v5476_v49  ;;  %4967 = vmatprep.subr.bf16.mxu0 %v4966_v50  ;;  %v2136_v49 = vld [vmem:[%s6701_s24 + $0x8c0] sm:$0xff] }
 0x36e   : > { %5479 = vmatprep.subr.bf16.mxu1 %v5478_v54  ;;  %v2140_v50 = vld [vmem:[%s6701_s24 + $0x8e0] sm:$0xff]  ;;  %v2145_v54 = vld [vmem:[%s6701_s24 + $0x908] sm:$0xff] }
 0x36f   : > { %v4988_v58 = vpack.c.bf16 %v2140_v50, %v2136_v49  ;;  %v2182_v49 = vld [vmem:[%s6701_s24 + $0xa30] sm:$0xff]  ;;  %v2185_v50 = vld [vmem:[%s6701_s24 + $0xa48] sm:$0xff] }
 0x370   : > { %4969 = vmatpush1.bf16.msra.mxu0 %v4968_v60  ;;  %v4990_v60 = vpack.c.bf16 %v2149_v55, %v2145_v54  ;;  %v5010_v56 = vpack.c.bf16 %v2189_v51, %v2185_v50 }
 0x371   : > { %5481 = vmatpush1.bf16.msra.mxu1 %v5480_v61  ;;  %4971 = vmatprep.subr.bf16.mxu0 %v4970_v62  ;;  %v2144_v61 = vld [vmem:[%s6701_s24 + $0x900] sm:$0xff] }
 0x372   : > { %5483 = vmatprep.subr.bf16.mxu1 %v5482_v2  ;;  %v2148_v62 = vld [vmem:[%s6701_s24 + $0x920] sm:$0xff]  ;;  %v2153_v2 = vld [vmem:[%s6701_s24 + $0x948] sm:$0xff] }
 0x373   : > { %v4992_v6 = vpack.c.bf16 %v2148_v62, %v2144_v61  ;;  %v2190_v61 = vld [vmem:[%s6701_s24 + $0xa70] sm:$0xff]  ;;  %v2193_v62 = vld [vmem:[%s6701_s24 + $0xa88] sm:$0xff] }
 0x374   : > { %4973 = vmatpush1.bf16.msra.mxu0 %v4972_v8  ;;  %v4994_v8 = vpack.c.bf16 %v2157_v3, %v2153_v2  ;;  %v5014_v4 = vpack.c.bf16 %v2197_v63, %v2193_v62 }
 0x375   : > { %5485 = vmatpush1.bf16.msra.mxu1 %v5484_v9  ;;  %4975 = vmatprep.subr.bf16.mxu0 %v4974_v10  ;;  %v2152_v9 = vld [vmem:[%s6701_s24 + $0x940] sm:$0xff] }
 0x376   : > { %5487 = vmatprep.subr.bf16.mxu1 %v5486_v14  ;;  %v2156_v10 = vld [vmem:[%s6701_s24 + $0x960] sm:$0xff]  ;;  %v2161_v14 = vld [vmem:[%s6701_s24 + $0x988] sm:$0xff] }
 0x377   : > { %3038 = vmatmul.mubr.f32.vlgmr.msra.gmra.mrb[0].mxu0 %v1842_v20  ;;  %v4996_v18 = vpack.c.bf16 %v2156_v10, %v2152_v9  ;;  %v2198_v9 = vld [vmem:[%s6701_s24 + $0xab0] sm:$0xff]  ;;  %v2201_v10 = vld [vmem:[%s6701_s24 + $0xac8] sm:$0xff] }
 0x378   : > { %4977 = vmatpush1.bf16.msra.mxu0 %v4976_v21  ;;  %3606 = vmatmul.mubr.f32.vlgmr.msra.gmra.mrb[0].mxu1 %v1842_v20  ;;  %v4998_v20 = vpack.c.bf16 %v2165_v15, %v2161_v14  ;;  %v2160_v21 = vld [vmem:[%s6701_s24 + $0x980] sm:$0xff]  ;;  %v5018_v16 = vpack.c.bf16 %v2205_v11, %v2201_v10 }
 0x379   : > { %5489 = vmatpush1.bf16.msra.mxu1 %v5488_v22  ;;  %4979 = vmatprep.subr.bf16.mxu0 %v4978_v23  ;;  %v2164_v22 = vld [vmem:[%s6701_s24 + $0x9a0] sm:$0xff]  ;;  %v2162_v23 = vld [vmem:[%s6701_s24 + $0x990] sm:$0xff] }
 0x37a   : > { %5491 = vmatprep.subr.bf16.mxu1 %v5490_v27  ;;  %3108 = vmatprep.mubr.f32.mxu0 %v1845_v33  ;;  %v2173_v27 = vld [vmem:[%s6701_s24 + $0x9e8] sm:$0xff]  ;;  %v5000_v30 = vpack.c.bf16 %v2164_v22, %v2160_v21  ;;  %v5512_v31 = vpack.c.bf16 %v2166_v25, %v2162_v23  ;;  %v2206_v21 = vld [vmem:[%s6701_s24 + $0xaf0] sm:$0xff]  ;;  %v2215_v25 = vld [vmem:[%s6701_s24 + $0xb38] sm:$0xff] }
 0x37b   : > { %3676 = vmatprep.mubr.f32.mxu1 %v1845_v33  ;;  %v5002_v32 = vpack.c.bf16 %v2173_v27, %v2169_v26  ;;  %v2168_v33 = vld [vmem:[%s6701_s24 + $0x9c0] sm:$0xff]  ;;  %v2209_v22 = vld [vmem:[%s6701_s24 + $0xb08] sm:$0xff] }
 0x37c   : > { %4981 = vmatpush1.bf16.msra.mxu0 %v4980_v34  ;;  %v2172_v34 = vld [vmem:[%s6701_s24 + $0x9e0] sm:$0xff]  ;;  %v2213_v23 = vld [vmem:[%s6701_s24 + $0xb28] sm:$0xff] }
 0x37d   : > { %5493 = vmatpush1.bf16.msra.mxu1 %v5492_v35  ;;  %4983 = vmatprep.subr.bf16.mxu0 %v4982_v36  ;;  %v2170_v35 = vld [vmem:[%s6701_s24 + $0x9d0] sm:$0xff]  ;;  %v5514_v36 = vpack.c.bf16 %v2175_v29, %v2171_v28  ;;  %v5004_v42 = vpack.c.bf16 %v2172_v34, %v2168_v33  ;;  %v5022_v28 = vpack.c.bf16 %v2213_v23, %v2209_v22  ;;  %v2208_v29 = vld [vmem:[%s6701_s24 + $0xb00] sm:$0xff]  ;;  %v2217_v34 = vld [vmem:[%s6701_s24 + $0xb48] sm:$0xff] }
 0x37e   : > { %5495 = vmatprep.subr.bf16.mxu1 %v5494_v40  ;;  %v2179_v40 = vld [vmem:[%s6701_s24 + $0xa18] sm:$0xff]  ;;  %v5516_v43 = vpack.c.bf16 %v2174_v37, %v2170_v35  ;;  %v2214_v33 = vld [vmem:[%s6701_s24 + $0xb30] sm:$0xff]  ;;  %v2221_v35 = vld [vmem:[%s6701_s24 + $0xb68] sm:$0xff] }
 0x37f   : > { %v2223_v37 = vld [vmem:[%s6701_s24 + $0xb78] sm:$0xff]  ;;  %v1844_v22 = vld [vmem:[#allocation2 + $0x20] sm:$0xff] }
 0x380   : > { %4985 = vmatpush1.bf16.msra.mxu0 %v4984_v46  ;;  %v2180_v46 = vld [vmem:[%s6701_s24 + $0xa20] sm:$0xff] }
 0x381   : > { %5497 = vmatpush1.bf16.msra.mxu1 %v5496_v47  ;;  %4987 = vmatprep.subr.bf16.mxu0 %v4986_v48  ;;  %v2178_v47 = vld [vmem:[%s6701_s24 + $0xa10] sm:$0xff]  ;;  %v5518_v48 = vpack.c.bf16 %v2183_v41, %v2179_v40  ;;  %v5008_v54 = vpack.c.bf16 %v2180_v46, %v2176_v45  ;;  %v5026_v40 = vpack.c.bf16 %v2221_v35, %v2217_v34  ;;  %v2216_v41 = vld [vmem:[%s6701_s24 + $0xb40] sm:$0xff]  ;;  %v2225_v46 = vld [vmem:[%s6701_s24 + $0xb88] sm:$0xff] }
 0x382   : > { %5499 = vmatprep.subr.bf16.mxu1 %v5498_v52  ;;  %v2187_v52 = vld [vmem:[%s6701_s24 + $0xa58] sm:$0xff]  ;;  %v5520_v55 = vpack.c.bf16 %v2182_v49, %v2178_v47  ;;  %v2222_v45 = vld [vmem:[%s6701_s24 + $0xb70] sm:$0xff]  ;;  %v2229_v47 = vld [vmem:[%s6701_s24 + $0xba8] sm:$0xff] }
 0x383   : > { %v2231_v49 = vld [vmem:[%s6701_s24 + $0xbb8] sm:$0xff]  ;;  %v1847_v35 = vld [vmem:[#allocation2 + $0x38] sm:$0xff] }
 0x384   : > { %4989 = vmatpush1.bf16.msra.mxu0 %v4988_v58  ;;  %v2188_v58 = vld [vmem:[%s6701_s24 + $0xa60] sm:$0xff]  ;;  %v2263_v34 = vld [vmem:[%s6701_s24 + $0xcb8] sm:$0xff] }
 0x385   : > { %5501 = vmatpush1.bf16.msra.mxu1 %v5500_v59  ;;  %4991 = vmatprep.subr.bf16.mxu0 %v4990_v60  ;;  %v2186_v59 = vld [vmem:[%s6701_s24 + $0xa50] sm:$0xff]  ;;  %v5522_v60 = vpack.c.bf16 %v2191_v53, %v2187_v52  ;;  %v5012_v2 = vpack.c.bf16 %v2188_v58, %v2184_v57  ;;  %v5030_v52 = vpack.c.bf16 %v2229_v47, %v2225_v46  ;;  %v2224_v53 = vld [vmem:[%s6701_s24 + $0xb80] sm:$0xff]  ;;  %v2233_v58 = vld [vmem:[%s6701_s24 + $0xbc8] sm:$0xff] }
 0x386   : > { %5503 = vmatprep.subr.bf16.mxu1 %v5502_v0  ;;  %v2195_v0 = vld [vmem:[%s6701_s24 + $0xa98] sm:$0xff]  ;;  %v5524_v3 = vpack.c.bf16 %v2190_v61, %v2186_v59  ;;  %v2230_v57 = vld [vmem:[%s6701_s24 + $0xbb0] sm:$0xff]  ;;  %v2237_v59 = vld [vmem:[%s6701_s24 + $0xbe8] sm:$0xff] }
 0x387   : > { %v2239_v61 = vld [vmem:[%s6701_s24 + $0xbf8] sm:$0xff] }
 0x388   : > { %4993 = vmatpush1.bf16.msra.mxu0 %v4992_v6  ;;  %v2196_v6 = vld [vmem:[%s6701_s24 + $0xaa0] sm:$0xff]  ;;  %v2267_v46 = vld [vmem:[%s6701_s24 + $0xcd8] sm:$0xff] }
 0x389   : > { %5505 = vmatpush1.bf16.msra.mxu1 %v5504_v7  ;;  %4995 = vmatprep.subr.bf16.mxu0 %v4994_v8  ;;  %v2194_v7 = vld [vmem:[%s6701_s24 + $0xa90] sm:$0xff]  ;;  %v5526_v8 = vpack.c.bf16 %v2199_v1, %v2195_v0  ;;  %v5016_v14 = vpack.c.bf16 %v2196_v6, %v2192_v5  ;;  %v5034_v0 = vpack.c.bf16 %v2237_v59, %v2233_v58  ;;  %v2232_v1 = vld [vmem:[%s6701_s24 + $0xbc0] sm:$0xff]  ;;  %v2241_v6 = vld [vmem:[%s6701_s24 + $0xc08] sm:$0xff] }
 0x38a   : > { %5507 = vmatprep.subr.bf16.mxu1 %v5506_v12  ;;  %v2203_v12 = vld [vmem:[%s6701_s24 + $0xad8] sm:$0xff]  ;;  %v5528_v15 = vpack.c.bf16 %v2198_v9, %v2194_v7  ;;  %v2238_v5 = vld [vmem:[%s6701_s24 + $0xbf0] sm:$0xff]  ;;  %v2245_v7 = vld [vmem:[%s6701_s24 + $0xc28] sm:$0xff] }
 0x38b   : > { %v2247_v9 = vld [vmem:[%s6701_s24 + $0xc38] sm:$0xff] }
 0x38c   : > { %4997 = vmatpush1.bf16.msra.mxu0 %v4996_v18  ;;  %v2204_v18 = vld [vmem:[%s6701_s24 + $0xae0] sm:$0xff]  ;;  %v2271_v47 = vld [vmem:[%s6701_s24 + $0xcf8] sm:$0xff] }
 0x38d   : > { %5509 = vmatpush1.bf16.msra.mxu1 %v5508_v19  ;;  %4999 = vmatprep.subr.bf16.mxu0 %v4998_v20  ;;  %v2202_v19 = vld [vmem:[%s6701_s24 + $0xad0] sm:$0xff]  ;;  %v5530_v20 = vpack.c.bf16 %v2207_v13, %v2203_v12  ;;  %v5020_v26 = vpack.c.bf16 %v2204_v18, %v2200_v17  ;;  %v5038_v12 = vpack.c.bf16 %v2245_v7, %v2241_v6  ;;  %v2240_v13 = vld [vmem:[%s6701_s24 + $0xc00] sm:$0xff]  ;;  %v2249_v18 = vld [vmem:[%s6701_s24 + $0xc48] sm:$0xff] }
 0x38e   : > { %5511 = vmatprep.subr.bf16.mxu1 %v5510_v24  ;;  %v2211_v24 = vld [vmem:[%s6701_s24 + $0xb18] sm:$0xff]  ;;  %v5532_v27 = vpack.c.bf16 %v2206_v21, %v2202_v19  ;;  %v2246_v17 = vld [vmem:[%s6701_s24 + $0xc30] sm:$0xff]  ;;  %v2253_v19 = vld [vmem:[%s6701_s24 + $0xc68] sm:$0xff] }
 0x38f   : > { %v2255_v21 = vld [vmem:[%s6701_s24 + $0xc78] sm:$0xff] }
 0x390   : > { %5001 = vmatpush1.bf16.msra.mxu0 %v5000_v30  ;;  %v2212_v30 = vld [vmem:[%s6701_s24 + $0xb20] sm:$0xff]  ;;  %v2275_v58 = vld [vmem:[%s6701_s24 + $0xd18] sm:$0xff] }
 0x391   : > { %5513 = vmatpush1.bf16.msra.mxu1 %v5512_v31  ;;  %5003 = vmatprep.subr.bf16.mxu0 %v5002_v32  ;;  %v2210_v31 = vld [vmem:[%s6701_s24 + $0xb10] sm:$0xff]  ;;  %v5534_v32 = vpack.c.bf16 %v2215_v25, %v2211_v24  ;;  %v5024_v38 = vpack.c.bf16 %v2212_v30, %v2208_v29  ;;  %v5042_v25 = vpack.c.bf16 %v2253_v19, %v2249_v18  ;;  %v2279_v59 = vld [vmem:[%s6701_s24 + $0xd38] sm:$0xff] }
 0x392   : > { %5515 = vmatprep.subr.bf16.mxu1 %v5514_v36  ;;  %v2219_v36 = vld [vmem:[%s6701_s24 + $0xb58] sm:$0xff]  ;;  %v5536_v39 = vpack.c.bf16 %v2214_v33, %v2210_v31  ;;  %v2254_v30 = vld [vmem:[%s6701_s24 + $0xc70] sm:$0xff]  ;;  %v2257_v31 = vld [vmem:[%s6701_s24 + $0xc88] sm:$0xff] }
 0x393   : > { %v2259_v33 = vld [vmem:[%s6701_s24 + $0xc98] sm:$0xff] }
 0x394   : > { %5005 = vmatpush1.bf16.msra.mxu0 %v5004_v42  ;;  %v2220_v42 = vld [vmem:[%s6701_s24 + $0xb60] sm:$0xff]  ;;  %v2283_v6 = vld [vmem:[%s6701_s24 + $0xd58] sm:$0xff] }
 0x395   : > { %5517 = vmatpush1.bf16.msra.mxu1 %v5516_v43  ;;  %5007 = vmatprep.subr.bf16.mxu0 %v5006_v44  ;;  %v2218_v43 = vld [vmem:[%s6701_s24 + $0xb50] sm:$0xff]  ;;  %v5538_v44 = vpack.c.bf16 %v2223_v37, %v2219_v36  ;;  %v5028_v50 = vpack.c.bf16 %v2220_v42, %v2216_v41  ;;  %v5558_v42 = vpack.c.bf16 %v2263_v34, %v2259_v33  ;;  %v2287_v7 = vld [vmem:[%s6701_s24 + $0xd78] sm:$0xff] }
 0x396   : > { %5519 = vmatprep.subr.bf16.mxu1 %v5518_v48  ;;  %v2227_v48 = vld [vmem:[%s6701_s24 + $0xb98] sm:$0xff]  ;;  %v5540_v51 = vpack.c.bf16 %v2222_v45, %v2218_v43  ;;  %v2258_v41 = vld [vmem:[%s6701_s24 + $0xc90] sm:$0xff]  ;;  %v2269_v45 = vld [vmem:[%s6701_s24 + $0xce8] sm:$0xff] }
 0x397   : > { %v2262_v43 = vld [vmem:[%s6701_s24 + $0xcb0] sm:$0xff]  ;;  %v2291_v18 = vld [vmem:[%s6701_s24 + $0xd98] sm:$0xff] }
 0x398   : > { %5009 = vmatpush1.bf16.msra.mxu0 %v5008_v54  ;;  %v2228_v54 = vld [vmem:[%s6701_s24 + $0xba0] sm:$0xff]  ;;  %v2295_v19 = vld [vmem:[%s6701_s24 + $0xdb8] sm:$0xff] }
 0x399   : > { %5521 = vmatpush1.bf16.msra.mxu1 %v5520_v55  ;;  %5011 = vmatprep.subr.bf16.mxu0 %v5010_v56  ;;  %v2226_v55 = vld [vmem:[%s6701_s24 + $0xb90] sm:$0xff]  ;;  %v5542_v56 = vpack.c.bf16 %v2231_v49, %v2227_v48  ;;  %v5032_v62 = vpack.c.bf16 %v2228_v54, %v2224_v53  ;;  %v5560_v49 = vpack.c.bf16 %v2262_v43, %v2258_v41  ;;  %v2309_v41 = vld [vmem:[%s6701_s24 + $0xe28] sm:$0xff]  ;;  %v2311_v43 = vld [vmem:[%s6701_s24 + $0xe38] sm:$0xff] }
 0x39a   : > { %5523 = vmatprep.subr.bf16.mxu1 %v5522_v60  ;;  %v2235_v60 = vld [vmem:[%s6701_s24 + $0xbd8] sm:$0xff]  ;;  %v5544_v63 = vpack.c.bf16 %v2230_v57, %v2226_v55  ;;  %v2266_v53 = vld [vmem:[%s6701_s24 + $0xcd0] sm:$0xff]  ;;  %v5562_v54 = vpack.c.bf16 %v2271_v47, %v2267_v46  ;;  %v2277_v57 = vld [vmem:[%s6701_s24 + $0xd28] sm:$0xff] }
 0x39b   : > { %v2270_v55 = vld [vmem:[%s6701_s24 + $0xcf0] sm:$0xff]  ;;  %v2304_v47 = vld [vmem:[%s6701_s24 + $0xe00] sm:$0xff] }
 0x39c   : > { %5013 = vmatpush1.bf16.msra.mxu0 %v5012_v2  ;;  %v2236_v2 = vld [vmem:[%s6701_s24 + $0xbe0] sm:$0xff] }
 0x39d   : > { %5525 = vmatpush1.bf16.msra.mxu1 %v5524_v3  ;;  %5015 = vmatprep.subr.bf16.mxu0 %v5014_v4  ;;  %v2234_v3 = vld [vmem:[%s6701_s24 + $0xbd0] sm:$0xff]  ;;  %v5546_v4 = vpack.c.bf16 %v2239_v61, %v2235_v60  ;;  %v5036_v10 = vpack.c.bf16 %v2236_v2, %v2232_v1  ;;  %v5564_v61 = vpack.c.bf16 %v2270_v55, %v2266_v53  ;;  %v2317_v53 = vld [vmem:[%s6701_s24 + $0xe68] sm:$0xff]  ;;  %v2319_v55 = vld [vmem:[%s6701_s24 + $0xe78] sm:$0xff] }
 0x39e   : > { %5527 = vmatprep.subr.bf16.mxu1 %v5526_v8  ;;  %v2243_v8 = vld [vmem:[%s6701_s24 + $0xc18] sm:$0xff]  ;;  %v5548_v11 = vpack.c.bf16 %v2238_v5, %v2234_v3  ;;  %v2274_v1 = vld [vmem:[%s6701_s24 + $0xd10] sm:$0xff]  ;;  %v5566_v2 = vpack.c.bf16 %v2279_v59, %v2275_v58  ;;  %v2285_v5 = vld [vmem:[%s6701_s24 + $0xd68] sm:$0xff] }
 0x39f   : > { %v2278_v3 = vld [vmem:[%s6701_s24 + $0xd30] sm:$0xff]  ;;  %v2312_v59 = vld [vmem:[%s6701_s24 + $0xe40] sm:$0xff] }
 0x3a0   : > { %5017 = vmatpush1.bf16.msra.mxu0 %v5016_v14  ;;  %v2244_v14 = vld [vmem:[%s6701_s24 + $0xc20] sm:$0xff] }
 0x3a1   : > { %5529 = vmatpush1.bf16.msra.mxu1 %v5528_v15  ;;  %5019 = vmatprep.subr.bf16.mxu0 %v5018_v16  ;;  %v2242_v15 = vld [vmem:[%s6701_s24 + $0xc10] sm:$0xff]  ;;  %v5550_v16 = vpack.c.bf16 %v2247_v9, %v2243_v8  ;;  %v5040_v23 = vpack.c.bf16 %v2244_v14, %v2240_v13  ;;  %v5568_v9 = vpack.c.bf16 %v2278_v3, %v2274_v1  ;;  %v2325_v1 = vld [vmem:[%s6701_s24 + $0xea8] sm:$0xff]  ;;  %v2327_v3 = vld [vmem:[%s6701_s24 + $0xeb8] sm:$0xff] }
 0x3a2   : > { %5531 = vmatprep.subr.bf16.mxu1 %v5530_v20  ;;  %v2251_v20 = vld [vmem:[%s6701_s24 + $0xc58] sm:$0xff]  ;;  %v5552_v24 = vpack.c.bf16 %v2246_v17, %v2242_v15  ;;  %v2282_v13 = vld [vmem:[%s6701_s24 + $0xd50] sm:$0xff]  ;;  %v5570_v14 = vpack.c.bf16 %v2287_v7, %v2283_v6  ;;  %v2293_v17 = vld [vmem:[%s6701_s24 + $0xda8] sm:$0xff] }
 0x3a3   : > { %v5554_v29 = vpack.c.bf16 %v2255_v21, %v2251_v20  ;;  %v2286_v15 = vld [vmem:[%s6701_s24 + $0xd70] sm:$0xff]  ;;  %v2320_v7 = vld [vmem:[%s6701_s24 + $0xe80] sm:$0xff] }
 0x3a4   : > { %5021 = vmatpush1.bf16.msra.mxu0 %v5020_v26  ;;  %v2248_v26 = vld [vmem:[%s6701_s24 + $0xc40] sm:$0xff]  ;;  %v5572_v21 = vpack.c.bf16 %v2286_v15, %v2282_v13  ;;  %v2333_v13 = vld [vmem:[%s6701_s24 + $0xee8] sm:$0xff]  ;;  %v2335_v15 = vld [vmem:[%s6701_s24 + $0xef8] sm:$0xff] }
 0x3a5   : > { %5533 = vmatpush1.bf16.msra.mxu1 %v5532_v27  ;;  %5023 = vmatprep.subr.bf16.mxu0 %v5022_v28  ;;  %v2252_v27 = vld [vmem:[%s6701_s24 + $0xc60] sm:$0xff]  ;;  %v2250_v28 = vld [vmem:[%s6701_s24 + $0xc50] sm:$0xff] }
 0x3a6   : > { %5535 = vmatprep.subr.bf16.mxu1 %v5534_v32  ;;  %v2261_v32 = vld [vmem:[%s6701_s24 + $0xca8] sm:$0xff]  ;;  %v5044_v36 = vpack.c.bf16 %v2252_v27, %v2248_v26  ;;  %v5556_v37 = vpack.c.bf16 %v2254_v30, %v2250_v28  ;;  %v5574_v26 = vpack.c.bf16 %v2295_v19, %v2291_v18  ;;  %v2294_v27 = vld [vmem:[%s6701_s24 + $0xdb0] sm:$0xff]  ;;  %v2299_v30 = vld [vmem:[%s6701_s24 + $0xdd8] sm:$0xff] }
 0x3a7   : > { %v2297_v28 = vld [vmem:[%s6701_s24 + $0xdc8] sm:$0xff]  ;;  %v2328_v19 = vld [vmem:[%s6701_s24 + $0xec0] sm:$0xff] }
 0x3a8   : > { %5025 = vmatpush1.bf16.msra.mxu0 %v5024_v38  ;;  %v5046_v38 = vpack.c.bf16 %v2261_v32, %v2257_v31  ;;  %v2303_v31 = vld [vmem:[%s6701_s24 + $0xdf8] sm:$0xff] }
 0x3a9   : > { %5537 = vmatpush1.bf16.msra.mxu1 %v5536_v39  ;;  %5027 = vmatprep.subr.bf16.mxu0 %v5026_v40  ;;  %v2256_v39 = vld [vmem:[%s6701_s24 + $0xc80] sm:$0xff] }
 0x3aa   : > { %5539 = vmatprep.subr.bf16.mxu1 %v5538_v44  ;;  %v2260_v40 = vld [vmem:[%s6701_s24 + $0xca0] sm:$0xff]  ;;  %v2265_v44 = vld [vmem:[%s6701_s24 + $0xcc8] sm:$0xff] }
 0x3ab   : > { %v5048_v48 = vpack.c.bf16 %v2260_v40, %v2256_v39  ;;  %v2302_v39 = vld [vmem:[%s6701_s24 + $0xdf0] sm:$0xff]  ;;  %v2305_v40 = vld [vmem:[%s6701_s24 + $0xe08] sm:$0xff] }
 0x3ac   : > { %5029 = vmatpush1.bf16.msra.mxu0 %v5028_v50  ;;  %v5050_v50 = vpack.c.bf16 %v2269_v45, %v2265_v44  ;;  %v5070_v46 = vpack.c.bf16 %v2309_v41, %v2305_v40 }
 0x3ad   : > { %5541 = vmatpush1.bf16.msra.mxu1 %v5540_v51  ;;  %5031 = vmatprep.subr.bf16.mxu0 %v5030_v52  ;;  %v2264_v51 = vld [vmem:[%s6701_s24 + $0xcc0] sm:$0xff] }
 0x3ae   : > { %5543 = vmatprep.subr.bf16.mxu1 %v5542_v56  ;;  %v2268_v52 = vld [vmem:[%s6701_s24 + $0xce0] sm:$0xff]  ;;  %v2273_v56 = vld [vmem:[%s6701_s24 + $0xd08] sm:$0xff] }
 0x3af   : > { %v5052_v60 = vpack.c.bf16 %v2268_v52, %v2264_v51  ;;  %v2310_v51 = vld [vmem:[%s6701_s24 + $0xe30] sm:$0xff]  ;;  %v2313_v52 = vld [vmem:[%s6701_s24 + $0xe48] sm:$0xff] }
 0x3b0   : > { %5033 = vmatpush1.bf16.msra.mxu0 %v5032_v62  ;;  %v5054_v62 = vpack.c.bf16 %v2277_v57, %v2273_v56  ;;  %v5074_v58 = vpack.c.bf16 %v2317_v53, %v2313_v52 }
 0x3b1   : > { %5545 = vmatpush1.bf16.msra.mxu1 %v5544_v63  ;;  %5035 = vmatprep.subr.bf16.mxu0 %v5034_v0  ;;  %v2272_v63 = vld [vmem:[%s6701_s24 + $0xd00] sm:$0xff] }
 0x3b2   : > { %5547 = vmatprep.subr.bf16.mxu1 %v5546_v4  ;;  %v2276_v0 = vld [vmem:[%s6701_s24 + $0xd20] sm:$0xff]  ;;  %v2281_v4 = vld [vmem:[%s6701_s24 + $0xd48] sm:$0xff] }
 0x3b3   : > { %v5056_v8 = vpack.c.bf16 %v2276_v0, %v2272_v63  ;;  %v2318_v63 = vld [vmem:[%s6701_s24 + $0xe70] sm:$0xff]  ;;  %v2321_v0 = vld [vmem:[%s6701_s24 + $0xe88] sm:$0xff] }
 0x3b4   : > { %5037 = vmatpush1.bf16.msra.mxu0 %v5036_v10  ;;  %v5058_v10 = vpack.c.bf16 %v2285_v5, %v2281_v4  ;;  %v5078_v6 = vpack.c.bf16 %v2325_v1, %v2321_v0 }
 0x3b5   : > { %5549 = vmatpush1.bf16.msra.mxu1 %v5548_v11  ;;  %5039 = vmatprep.subr.bf16.mxu0 %v5038_v12  ;;  %v2280_v11 = vld [vmem:[%s6701_s24 + $0xd40] sm:$0xff] }
 0x3b6   : > { %5551 = vmatprep.subr.bf16.mxu1 %v5550_v16  ;;  %v2284_v12 = vld [vmem:[%s6701_s24 + $0xd60] sm:$0xff]  ;;  %v2289_v16 = vld [vmem:[%s6701_s24 + $0xd88] sm:$0xff] }
 0x3b7   : > { %3109 = vmatmul.mubr.f32.vlgmr.msra.gmra.mrb[0].mxu0 %v1844_v22  ;;  %v5060_v20 = vpack.c.bf16 %v2284_v12, %v2280_v11  ;;  %v2326_v11 = vld [vmem:[%s6701_s24 + $0xeb0] sm:$0xff]  ;;  %v2329_v12 = vld [vmem:[%s6701_s24 + $0xec8] sm:$0xff] }
 0x3b8   : > { %5041 = vmatpush1.bf16.msra.mxu0 %v5040_v23  ;;  %3677 = vmatmul.mubr.f32.vlgmr.msra.gmra.mrb[0].mxu1 %v1844_v22  ;;  %v5062_v22 = vpack.c.bf16 %v2293_v17, %v2289_v16  ;;  %v2288_v23 = vld [vmem:[%s6701_s24 + $0xd80] sm:$0xff]  ;;  %v5082_v18 = vpack.c.bf16 %v2333_v13, %v2329_v12 }
 0x3b9   : > { %5553 = vmatpush1.bf16.msra.mxu1 %v5552_v24  ;;  %5043 = vmatprep.subr.bf16.mxu0 %v5042_v25  ;;  %v2292_v24 = vld [vmem:[%s6701_s24 + $0xda0] sm:$0xff]  ;;  %v2290_v25 = vld [vmem:[%s6701_s24 + $0xd90] sm:$0xff] }
 0x3ba   : > { %5555 = vmatprep.subr.bf16.mxu1 %v5554_v29  ;;  %3179 = vmatprep.mubr.f32.mxu0 %v1847_v35  ;;  %v2301_v29 = vld [vmem:[%s6701_s24 + $0xde8] sm:$0xff]  ;;  %v5064_v32 = vpack.c.bf16 %v2292_v24, %v2288_v23  ;;  %v5576_v33 = vpack.c.bf16 %v2294_v27, %v2290_v25  ;;  %v2334_v23 = vld [vmem:[%s6701_s24 + $0xef0] sm:$0xff]  ;;  %v2343_v27 = vld [vmem:[%s6701_s24 + $0xf38] sm:$0xff] }
 0x3bb   : > { %3747 = vmatprep.mubr.f32.mxu1 %v1847_v35  ;;  %v5066_v34 = vpack.c.bf16 %v2301_v29, %v2297_v28  ;;  %v2296_v35 = vld [vmem:[%s6701_s24 + $0xdc0] sm:$0xff]  ;;  %v2337_v24 = vld [vmem:[%s6701_s24 + $0xf08] sm:$0xff] }
 0x3bc   : > { %5045 = vmatpush1.bf16.msra.mxu0 %v5044_v36  ;;  %v2300_v36 = vld [vmem:[%s6701_s24 + $0xde0] sm:$0xff]  ;;  %v2341_v25 = vld [vmem:[%s6701_s24 + $0xf28] sm:$0xff] }
 0x3bd   : > { %5557 = vmatpush1.bf16.msra.mxu1 %v5556_v37  ;;  %5047 = vmatprep.subr.bf16.mxu0 %v5046_v38  ;;  %v2298_v37 = vld [vmem:[%s6701_s24 + $0xdd0] sm:$0xff]  ;;  %v5578_v38 = vpack.c.bf16 %v2303_v31, %v2299_v30  ;;  %v5068_v44 = vpack.c.bf16 %v2300_v36, %v2296_v35  ;;  %v5086_v30 = vpack.c.bf16 %v2341_v25, %v2337_v24  ;;  %v2336_v31 = vld [vmem:[%s6701_s24 + $0xf00] sm:$0xff]  ;;  %v2345_v36 = vld [vmem:[%s6701_s24 + $0xf48] sm:$0xff] }
 0x3be   : > { %5559 = vmatprep.subr.bf16.mxu1 %v5558_v42  ;;  %v2307_v42 = vld [vmem:[%s6701_s24 + $0xe18] sm:$0xff]  ;;  %v5580_v45 = vpack.c.bf16 %v2302_v39, %v2298_v37  ;;  %v2342_v35 = vld [vmem:[%s6701_s24 + $0xf30] sm:$0xff]  ;;  %v2349_v37 = vld [vmem:[%s6701_s24 + $0xf68] sm:$0xff] }
 0x3bf   : > { %v2351_v39 = vld [vmem:[%s6701_s24 + $0xf78] sm:$0xff] }
 0x3c0   : > { %5049 = vmatpush1.bf16.msra.mxu0 %v5048_v48  ;;  %v2308_v48 = vld [vmem:[%s6701_s24 + $0xe20] sm:$0xff] }
 0x3c1   : > { %5561 = vmatpush1.bf16.msra.mxu1 %v5560_v49  ;;  %5051 = vmatprep.subr.bf16.mxu0 %v5050_v50  ;;  %v2306_v49 = vld [vmem:[%s6701_s24 + $0xe10] sm:$0xff]  ;;  %v5582_v50 = vpack.c.bf16 %v2311_v43, %v2307_v42  ;;  %v5072_v56 = vpack.c.bf16 %v2308_v48, %v2304_v47  ;;  %v5090_v42 = vpack.c.bf16 %v2349_v37, %v2345_v36  ;;  %v2344_v43 = vld [vmem:[%s6701_s24 + $0xf40] sm:$0xff]  ;;  %v2353_v48 = vld [vmem:[%s6701_s24 + $0xf88] sm:$0xff] }
 0x3c2   : > { %5563 = vmatprep.subr.bf16.mxu1 %v5562_v54  ;;  %v2315_v54 = vld [vmem:[%s6701_s24 + $0xe58] sm:$0xff]  ;;  %v5584_v57 = vpack.c.bf16 %v2310_v51, %v2306_v49  ;;  %v2350_v47 = vld [vmem:[%s6701_s24 + $0xf70] sm:$0xff]  ;;  %v2357_v49 = vld [vmem:[%s6701_s24 + $0xfa8] sm:$0xff] }
 0x3c3   : > { %v2359_v51 = vld [vmem:[%s6701_s24 + $0xfb8] sm:$0xff] }
 0x3c4   : > { %5053 = vmatpush1.bf16.msra.mxu0 %v5052_v60  ;;  %v2316_v60 = vld [vmem:[%s6701_s24 + $0xe60] sm:$0xff]  ;;  %v2391_v36 = vld [vmem:[%s6701_s24 + $0x10b8] sm:$0xff] }
 0x3c5   : > { %5565 = vmatpush1.bf16.msra.mxu1 %v5564_v61  ;;  %5055 = vmatprep.subr.bf16.mxu0 %v5054_v62  ;;  %v2314_v61 = vld [vmem:[%s6701_s24 + $0xe50] sm:$0xff]  ;;  %v5586_v62 = vpack.c.bf16 %v2319_v55, %v2315_v54  ;;  %v5076_v4 = vpack.c.bf16 %v2316_v60, %v2312_v59  ;;  %v5094_v54 = vpack.c.bf16 %v2357_v49, %v2353_v48  ;;  %v2352_v55 = vld [vmem:[%s6701_s24 + $0xf80] sm:$0xff]  ;;  %v2361_v60 = vld [vmem:[%s6701_s24 + $0xfc8] sm:$0xff] }
 0x3c6   : > { %5567 = vmatprep.subr.bf16.mxu1 %v5566_v2  ;;  %v2323_v2 = vld [vmem:[%s6701_s24 + $0xe98] sm:$0xff]  ;;  %v5588_v5 = vpack.c.bf16 %v2318_v63, %v2314_v61  ;;  %v2358_v59 = vld [vmem:[%s6701_s24 + $0xfb0] sm:$0xff]  ;;  %v2365_v61 = vld [vmem:[%s6701_s24 + $0xfe8] sm:$0xff] }
 0x3c7   : > { %v2367_v63 = vld [vmem:[%s6701_s24 + $0xff8] sm:$0xff] }
 0x3c8   : > { %5057 = vmatpush1.bf16.msra.mxu0 %v5056_v8  ;;  %v2324_v8 = vld [vmem:[%s6701_s24 + $0xea0] sm:$0xff]  ;;  %v1849_v37 = vld [vmem:[#allocation2 + $0x48] sm:$0xff] }
 0x3c9   : > { %5569 = vmatpush1.bf16.msra.mxu1 %v5568_v9  ;;  %5059 = vmatprep.subr.bf16.mxu0 %v5058_v10  ;;  %v2322_v9 = vld [vmem:[%s6701_s24 + $0xe90] sm:$0xff]  ;;  %v5590_v10 = vpack.c.bf16 %v2327_v3, %v2323_v2  ;;  %v5080_v16 = vpack.c.bf16 %v2324_v8, %v2320_v7  ;;  %v5098_v2 = vpack.c.bf16 %v2365_v61, %v2361_v60  ;;  %v2360_v3 = vld [vmem:[%s6701_s24 + $0xfc0] sm:$0xff]  ;;  %v2369_v8 = vld [vmem:[%s6701_s24 + $0x1008] sm:$0xff] }
 0x3ca   : > { %5571 = vmatprep.subr.bf16.mxu1 %v5570_v14  ;;  %v2331_v14 = vld [vmem:[%s6701_s24 + $0xed8] sm:$0xff]  ;;  %v5592_v17 = vpack.c.bf16 %v2326_v11, %v2322_v9  ;;  %v2366_v7 = vld [vmem:[%s6701_s24 + $0xff0] sm:$0xff]  ;;  %v2373_v9 = vld [vmem:[%s6701_s24 + $0x1028] sm:$0xff] }
 0x3cb   : > { %v2375_v11 = vld [vmem:[%s6701_s24 + $0x1038] sm:$0xff] }
 0x3cc   : > { %5061 = vmatpush1.bf16.msra.mxu0 %v5060_v20  ;;  %v2332_v20 = vld [vmem:[%s6701_s24 + $0xee0] sm:$0xff]  ;;  %v2395_v48 = vld [vmem:[%s6701_s24 + $0x10d8] sm:$0xff] }
 0x3cd   : > { %5573 = vmatpush1.bf16.msra.mxu1 %v5572_v21  ;;  %5063 = vmatprep.subr.bf16.mxu0 %v5062_v22  ;;  %v2330_v21 = vld [vmem:[%s6701_s24 + $0xed0] sm:$0xff]  ;;  %v5594_v22 = vpack.c.bf16 %v2335_v15, %v2331_v14  ;;  %v5084_v28 = vpack.c.bf16 %v2332_v20, %v2328_v19  ;;  %v5102_v14 = vpack.c.bf16 %v2373_v9, %v2369_v8  ;;  %v2368_v15 = vld [vmem:[%s6701_s24 + $0x1000] sm:$0xff]  ;;  %v2377_v20 = vld [vmem:[%s6701_s24 + $0x1048] sm:$0xff] }
 0x3ce   : > { %5575 = vmatprep.subr.bf16.mxu1 %v5574_v26  ;;  %v2339_v26 = vld [vmem:[%s6701_s24 + $0xf18] sm:$0xff]  ;;  %v5596_v29 = vpack.c.bf16 %v2334_v23, %v2330_v21  ;;  %v2374_v19 = vld [vmem:[%s6701_s24 + $0x1030] sm:$0xff]  ;;  %v2381_v21 = vld [vmem:[%s6701_s24 + $0x1068] sm:$0xff] }
 0x3cf   : > { %v2383_v23 = vld [vmem:[%s6701_s24 + $0x1078] sm:$0xff] }
 0x3d0   : > { %5065 = vmatpush1.bf16.msra.mxu0 %v5064_v32  ;;  %v2340_v32 = vld [vmem:[%s6701_s24 + $0xf20] sm:$0xff]  ;;  %v2399_v49 = vld [vmem:[%s6701_s24 + $0x10f8] sm:$0xff] }
 0x3d1   : > { %5577 = vmatpush1.bf16.msra.mxu1 %v5576_v33  ;;  %5067 = vmatprep.subr.bf16.mxu0 %v5066_v34  ;;  %v2338_v33 = vld [vmem:[%s6701_s24 + $0xf10] sm:$0xff]  ;;  %v5598_v34 = vpack.c.bf16 %v2343_v27, %v2339_v26  ;;  %v5088_v40 = vpack.c.bf16 %v2340_v32, %v2336_v31  ;;  %v1846_v24 = vld [vmem:[#allocation2 + $0x30] sm:$0xff]  ;;  %v5106_v27 = vpack.c.bf16 %v2381_v21, %v2377_v20 }
 0x3d2   : > { %5579 = vmatprep.subr.bf16.mxu1 %v5578_v38  ;;  %v2347_v38 = vld [vmem:[%s6701_s24 + $0xf58] sm:$0xff]  ;;  %v5600_v41 = vpack.c.bf16 %v2342_v35, %v2338_v33  ;;  %v2382_v32 = vld [vmem:[%s6701_s24 + $0x1070] sm:$0xff]  ;;  %v2385_v33 = vld [vmem:[%s6701_s24 + $0x1088] sm:$0xff] }
 0x3d3   : > { %v2387_v35 = vld [vmem:[%s6701_s24 + $0x1098] sm:$0xff] }
 0x3d4   : > { %5069 = vmatpush1.bf16.msra.mxu0 %v5068_v44  ;;  %v2348_v44 = vld [vmem:[%s6701_s24 + $0xf60] sm:$0xff]  ;;  %v2403_v60 = vld [vmem:[%s6701_s24 + $0x1118] sm:$0xff] }
 0x3d5   : > { %5581 = vmatpush1.bf16.msra.mxu1 %v5580_v45  ;;  %5071 = vmatprep.subr.bf16.mxu0 %v5070_v46  ;;  %v2346_v45 = vld [vmem:[%s6701_s24 + $0xf50] sm:$0xff]  ;;  %v5602_v46 = vpack.c.bf16 %v2351_v39, %v2347_v38  ;;  %v5092_v52 = vpack.c.bf16 %v2348_v44, %v2344_v43  ;;  %v5622_v44 = vpack.c.bf16 %v2391_v36, %v2387_v35  ;;  %v2407_v61 = vld [vmem:[%s6701_s24 + $0x1138] sm:$0xff] }
 0x3d6   : > { %5583 = vmatprep.subr.bf16.mxu1 %v5582_v50  ;;  %v2355_v50 = vld [vmem:[%s6701_s24 + $0xf98] sm:$0xff]  ;;  %v5604_v53 = vpack.c.bf16 %v2350_v47, %v2346_v45  ;;  %v2386_v43 = vld [vmem:[%s6701_s24 + $0x1090] sm:$0xff]  ;;  %v2397_v47 = vld [vmem:[%s6701_s24 + $0x10e8] sm:$0xff] }
 0x3d7   : > { %v2390_v45 = vld [vmem:[%s6701_s24 + $0x10b0] sm:$0xff]  ;;  %v2411_v8 = vld [vmem:[%s6701_s24 + $0x1158] sm:$0xff] }
 0x3d8   : > { %5073 = vmatpush1.bf16.msra.mxu0 %v5072_v56  ;;  %v2356_v56 = vld [vmem:[%s6701_s24 + $0xfa0] sm:$0xff]  ;;  %v2415_v9 = vld [vmem:[%s6701_s24 + $0x1178] sm:$0xff] }
 0x3d9   : > { %5585 = vmatpush1.bf16.msra.mxu1 %v5584_v57  ;;  %5075 = vmatprep.subr.bf16.mxu0 %v5074_v58  ;;  %v2354_v57 = vld [vmem:[%s6701_s24 + $0xf90] sm:$0xff]  ;;  %v5606_v58 = vpack.c.bf16 %v2359_v51, %v2355_v50  ;;  %v5096_v0 = vpack.c.bf16 %v2356_v56, %v2352_v55  ;;  %v5624_v51 = vpack.c.bf16 %v2390_v45, %v2386_v43  ;;  %v2419_v20 = vld [vmem:[%s6701_s24 + $0x1198] sm:$0xff]  ;;  %v2437_v43 = vld [vmem:[%s6701_s24 + $0x1228] sm:$0xff] }
 0x3da   : > { %5587 = vmatprep.subr.bf16.mxu1 %v5586_v62  ;;  %v2363_v62 = vld [vmem:[%s6701_s24 + $0xfd8] sm:$0xff]  ;;  %v5608_v1 = vpack.c.bf16 %v2358_v59, %v2354_v57  ;;  %v2394_v55 = vld [vmem:[%s6701_s24 + $0x10d0] sm:$0xff]  ;;  %v5626_v56 = vpack.c.bf16 %v2399_v49, %v2395_v48  ;;  %v2405_v59 = vld [vmem:[%s6701_s24 + $0x1128] sm:$0xff] }
 0x3db   : > { %v2398_v57 = vld [vmem:[%s6701_s24 + $0x10f0] sm:$0xff]  ;;  %v2423_v21 = vld [vmem:[%s6701_s24 + $0x11b8] sm:$0xff]  ;;  %v2432_v49 = vld [vmem:[%s6701_s24 + $0x1200] sm:$0xff] }
 0x3dc   : > { %5077 = vmatpush1.bf16.msra.mxu0 %v5076_v4  ;;  %v2364_v4 = vld [vmem:[%s6701_s24 + $0xfe0] sm:$0xff]  ;;  %v2439_v45 = vld [vmem:[%s6701_s24 + $0x1238] sm:$0xff] }
 0x3dd   : > { %5589 = vmatpush1.bf16.msra.mxu1 %v5588_v5  ;;  %5079 = vmatprep.subr.bf16.mxu0 %v5078_v6  ;;  %v2362_v5 = vld [vmem:[%s6701_s24 + $0xfd0] sm:$0xff]  ;;  %v5610_v6 = vpack.c.bf16 %v2367_v63, %v2363_v62  ;;  %v5100_v12 = vpack.c.bf16 %v2364_v4, %v2360_v3  ;;  %v5628_v63 = vpack.c.bf16 %v2398_v57, %v2394_v55  ;;  %v2445_v55 = vld [vmem:[%s6701_s24 + $0x1268] sm:$0xff]  ;;  %v2447_v57 = vld [vmem:[%s6701_s24 + $0x1278] sm:$0xff] }
 0x3de   : > { %5591 = vmatprep.subr.bf16.mxu1 %v5590_v10  ;;  %v2371_v10 = vld [vmem:[%s6701_s24 + $0x1018] sm:$0xff]  ;;  %v5612_v13 = vpack.c.bf16 %v2366_v7, %v2362_v5  ;;  %v2402_v3 = vld [vmem:[%s6701_s24 + $0x1110] sm:$0xff]  ;;  %v5630_v4 = vpack.c.bf16 %v2407_v61, %v2403_v60  ;;  %v2413_v7 = vld [vmem:[%s6701_s24 + $0x1168] sm:$0xff] }
 0x3df   : > { %v2406_v5 = vld [vmem:[%s6701_s24 + $0x1130] sm:$0xff]  ;;  %v2440_v61 = vld [vmem:[%s6701_s24 + $0x1240] sm:$0xff] }
 0x3e0   : > { %5081 = vmatpush1.bf16.msra.mxu0 %v5080_v16  ;;  %v2372_v16 = vld [vmem:[%s6701_s24 + $0x1020] sm:$0xff] }
 0x3e1   : > { %5593 = vmatpush1.bf16.msra.mxu1 %v5592_v17  ;;  %5083 = vmatprep.subr.bf16.mxu0 %v5082_v18  ;;  %v2370_v17 = vld [vmem:[%s6701_s24 + $0x1010] sm:$0xff]  ;;  %v5614_v18 = vpack.c.bf16 %v2375_v11, %v2371_v10  ;;  %v5104_v25 = vpack.c.bf16 %v2372_v16, %v2368_v15  ;;  %v5632_v11 = vpack.c.bf16 %v2406_v5, %v2402_v3  ;;  %v2453_v3 = vld [vmem:[%s6701_s24 + $0x12a8] sm:$0xff]  ;;  %v2455_v5 = vld [vmem:[%s6701_s24 + $0x12b8] sm:$0xff] }
 0x3e2   : > { %5595 = vmatprep.subr.bf16.mxu1 %v5594_v22  ;;  %v2379_v22 = vld [vmem:[%s6701_s24 + $0x1058] sm:$0xff]  ;;  %v5616_v26 = vpack.c.bf16 %v2374_v19, %v2370_v17  ;;  %v2410_v15 = vld [vmem:[%s6701_s24 + $0x1150] sm:$0xff]  ;;  %v5634_v16 = vpack.c.bf16 %v2415_v9, %v2411_v8  ;;  %v2421_v19 = vld [vmem:[%s6701_s24 + $0x11a8] sm:$0xff] }
 0x3e3   : > { %v5618_v31 = vpack.c.bf16 %v2383_v23, %v2379_v22  ;;  %v2414_v17 = vld [vmem:[%s6701_s24 + $0x1170] sm:$0xff]  ;;  %v2448_v9 = vld [vmem:[%s6701_s24 + $0x1280] sm:$0xff] }
 0x3e4   : > { %5085 = vmatpush1.bf16.msra.mxu0 %v5084_v28  ;;  %v2376_v28 = vld [vmem:[%s6701_s24 + $0x1040] sm:$0xff]  ;;  %v5636_v23 = vpack.c.bf16 %v2414_v17, %v2410_v15  ;;  %v2461_v15 = vld [vmem:[%s6701_s24 + $0x12e8] sm:$0xff]  ;;  %v2463_v17 = vld [vmem:[%s6701_s24 + $0x12f8] sm:$0xff] }
 0x3e5   : > { %5597 = vmatpush1.bf16.msra.mxu1 %v5596_v29  ;;  %5087 = vmatprep.subr.bf16.mxu0 %v5086_v30  ;;  %v2380_v29 = vld [vmem:[%s6701_s24 + $0x1060] sm:$0xff]  ;;  %v2378_v30 = vld [vmem:[%s6701_s24 + $0x1050] sm:$0xff] }
 0x3e6   : > { %5599 = vmatprep.subr.bf16.mxu1 %v5598_v34  ;;  %v2389_v34 = vld [vmem:[%s6701_s24 + $0x10a8] sm:$0xff]  ;;  %v5108_v38 = vpack.c.bf16 %v2380_v29, %v2376_v28  ;;  %v5620_v39 = vpack.c.bf16 %v2382_v32, %v2378_v30  ;;  %v5638_v28 = vpack.c.bf16 %v2423_v21, %v2419_v20  ;;  %v2422_v29 = vld [vmem:[%s6701_s24 + $0x11b0] sm:$0xff]  ;;  %v2427_v32 = vld [vmem:[%s6701_s24 + $0x11d8] sm:$0xff] }
 0x3e7   : > { %v2425_v30 = vld [vmem:[%s6701_s24 + $0x11c8] sm:$0xff]  ;;  %v2456_v21 = vld [vmem:[%s6701_s24 + $0x12c0] sm:$0xff] }
 0x3e8   : > { %5089 = vmatpush1.bf16.msra.mxu0 %v5088_v40  ;;  %v5110_v40 = vpack.c.bf16 %v2389_v34, %v2385_v33  ;;  %v2431_v33 = vld [vmem:[%s6701_s24 + $0x11f8] sm:$0xff] }
 0x3e9   : > { %5601 = vmatpush1.bf16.msra.mxu1 %v5600_v41  ;;  %5091 = vmatprep.subr.bf16.mxu0 %v5090_v42  ;;  %v2384_v41 = vld [vmem:[%s6701_s24 + $0x1080] sm:$0xff] }
 0x3ea   : > { %5603 = vmatprep.subr.bf16.mxu1 %v5602_v46  ;;  %v2388_v42 = vld [vmem:[%s6701_s24 + $0x10a0] sm:$0xff]  ;;  %v2393_v46 = vld [vmem:[%s6701_s24 + $0x10c8] sm:$0xff] }
 0x3eb   : > { %v5112_v50 = vpack.c.bf16 %v2388_v42, %v2384_v41  ;;  %v2430_v41 = vld [vmem:[%s6701_s24 + $0x11f0] sm:$0xff]  ;;  %v2433_v42 = vld [vmem:[%s6701_s24 + $0x1208] sm:$0xff] }
 0x3ec   : > { %5093 = vmatpush1.bf16.msra.mxu0 %v5092_v52  ;;  %v5114_v52 = vpack.c.bf16 %v2397_v47, %v2393_v46  ;;  %v5134_v48 = vpack.c.bf16 %v2437_v43, %v2433_v42 }
 0x3ed   : > { %5605 = vmatpush1.bf16.msra.mxu1 %v5604_v53  ;;  %5095 = vmatprep.subr.bf16.mxu0 %v5094_v54  ;;  %v2392_v53 = vld [vmem:[%s6701_s24 + $0x10c0] sm:$0xff] }
 0x3ee   : > { %5607 = vmatprep.subr.bf16.mxu1 %v5606_v58  ;;  %v2396_v54 = vld [vmem:[%s6701_s24 + $0x10e0] sm:$0xff]  ;;  %v2401_v58 = vld [vmem:[%s6701_s24 + $0x1108] sm:$0xff] }
 0x3ef   : > { %v5116_v62 = vpack.c.bf16 %v2396_v54, %v2392_v53  ;;  %v2438_v53 = vld [vmem:[%s6701_s24 + $0x1230] sm:$0xff]  ;;  %v2441_v54 = vld [vmem:[%s6701_s24 + $0x1248] sm:$0xff] }
 0x3f0   : > { %5097 = vmatpush1.bf16.msra.mxu0 %v5096_v0  ;;  %v5118_v0 = vpack.c.bf16 %v2405_v59, %v2401_v58  ;;  %v5138_v60 = vpack.c.bf16 %v2445_v55, %v2441_v54 }
 0x3f1   : > { %5609 = vmatpush1.bf16.msra.mxu1 %v5608_v1  ;;  %5099 = vmatprep.subr.bf16.mxu0 %v5098_v2  ;;  %v2400_v1 = vld [vmem:[%s6701_s24 + $0x1100] sm:$0xff] }
 0x3f2   : > { %5611 = vmatprep.subr.bf16.mxu1 %v5610_v6  ;;  %v2404_v2 = vld [vmem:[%s6701_s24 + $0x1120] sm:$0xff]  ;;  %v2409_v6 = vld [vmem:[%s6701_s24 + $0x1148] sm:$0xff] }
 0x3f3   : > { %v5120_v10 = vpack.c.bf16 %v2404_v2, %v2400_v1  ;;  %v2446_v1 = vld [vmem:[%s6701_s24 + $0x1270] sm:$0xff]  ;;  %v2449_v2 = vld [vmem:[%s6701_s24 + $0x1288] sm:$0xff] }
 0x3f4   : > { %5101 = vmatpush1.bf16.msra.mxu0 %v5100_v12  ;;  %v5122_v12 = vpack.c.bf16 %v2413_v7, %v2409_v6  ;;  %v5142_v8 = vpack.c.bf16 %v2453_v3, %v2449_v2 }
 0x3f5   : > { %5613 = vmatpush1.bf16.msra.mxu1 %v5612_v13  ;;  %5103 = vmatprep.subr.bf16.mxu0 %v5102_v14  ;;  %v2408_v13 = vld [vmem:[%s6701_s24 + $0x1140] sm:$0xff] }
 0x3f6   : > { %5615 = vmatprep.subr.bf16.mxu1 %v5614_v18  ;;  %v2412_v14 = vld [vmem:[%s6701_s24 + $0x1160] sm:$0xff]  ;;  %v2417_v18 = vld [vmem:[%s6701_s24 + $0x1188] sm:$0xff] }
 0x3f7   : > { %3180 = vmatmul.mubr.f32.vlgmr.msra.gmra.mrb[0].mxu0 %v1846_v24  ;;  %v5124_v22 = vpack.c.bf16 %v2412_v14, %v2408_v13  ;;  %v2454_v13 = vld [vmem:[%s6701_s24 + $0x12b0] sm:$0xff]  ;;  %v2457_v14 = vld [vmem:[%s6701_s24 + $0x12c8] sm:$0xff] }
 0x3f8   : > { %5105 = vmatpush1.bf16.msra.mxu0 %v5104_v25  ;;  %3748 = vmatmul.mubr.f32.vlgmr.msra.gmra.mrb[0].mxu1 %v1846_v24  ;;  %v5126_v24 = vpack.c.bf16 %v2421_v19, %v2417_v18  ;;  %v2416_v25 = vld [vmem:[%s6701_s24 + $0x1180] sm:$0xff]  ;;  %v5146_v20 = vpack.c.bf16 %v2461_v15, %v2457_v14 }
 0x3f9   : > { %5617 = vmatpush1.bf16.msra.mxu1 %v5616_v26  ;;  %5107 = vmatprep.subr.bf16.mxu0 %v5106_v27  ;;  %v2420_v26 = vld [vmem:[%s6701_s24 + $0x11a0] sm:$0xff]  ;;  %v2418_v27 = vld [vmem:[%s6701_s24 + $0x1190] sm:$0xff] }
 0x3fa   : > { %5619 = vmatprep.subr.bf16.mxu1 %v5618_v31  ;;  %3250 = vmatprep.mubr.f32.mxu0 %v1849_v37  ;;  %v2429_v31 = vld [vmem:[%s6701_s24 + $0x11e8] sm:$0xff]  ;;  %v5128_v34 = vpack.c.bf16 %v2420_v26, %v2416_v25  ;;  %v5640_v35 = vpack.c.bf16 %v2422_v29, %v2418_v27  ;;  %v2462_v25 = vld [vmem:[%s6701_s24 + $0x12f0] sm:$0xff]  ;;  %v2471_v29 = vld [vmem:[%s6701_s24 + $0x1338] sm:$0xff] }
 0x3fb   : > { %3818 = vmatprep.mubr.f32.mxu1 %v1849_v37  ;;  %v5130_v36 = vpack.c.bf16 %v2429_v31, %v2425_v30  ;;  %v2424_v37 = vld [vmem:[%s6701_s24 + $0x11c0] sm:$0xff]  ;;  %v2465_v26 = vld [vmem:[%s6701_s24 + $0x1308] sm:$0xff] }
 0x3fc   : > { %5109 = vmatpush1.bf16.msra.mxu0 %v5108_v38  ;;  %v2428_v38 = vld [vmem:[%s6701_s24 + $0x11e0] sm:$0xff]  ;;  %v2469_v27 = vld [vmem:[%s6701_s24 + $0x1328] sm:$0xff] }
 0x3fd   : > { %5621 = vmatpush1.bf16.msra.mxu1 %v5620_v39  ;;  %5111 = vmatprep.subr.bf16.mxu0 %v5110_v40  ;;  %v2426_v39 = vld [vmem:[%s6701_s24 + $0x11d0] sm:$0xff]  ;;  %v5642_v40 = vpack.c.bf16 %v2431_v33, %v2427_v32  ;;  %v5132_v46 = vpack.c.bf16 %v2428_v38, %v2424_v37  ;;  %v5150_v32 = vpack.c.bf16 %v2469_v27, %v2465_v26  ;;  %v2464_v33 = vld [vmem:[%s6701_s24 + $0x1300] sm:$0xff]  ;;  %v2473_v38 = vld [vmem:[%s6701_s24 + $0x1348] sm:$0xff] }
 0x3fe   : > { %5623 = vmatprep.subr.bf16.mxu1 %v5622_v44  ;;  %v2435_v44 = vld [vmem:[%s6701_s24 + $0x1218] sm:$0xff]  ;;  %v5644_v47 = vpack.c.bf16 %v2430_v41, %v2426_v39  ;;  %v2470_v37 = vld [vmem:[%s6701_s24 + $0x1330] sm:$0xff]  ;;  %v2477_v39 = vld [vmem:[%s6701_s24 + $0x1368] sm:$0xff] }
 0x3ff   : > { %v2479_v41 = vld [vmem:[%s6701_s24 + $0x1378] sm:$0xff]  ;;  %v1848_v26 = vld [vmem:[#allocation2 + $0x40] sm:$0xff] }
 0x400   : > { %5113 = vmatpush1.bf16.msra.mxu0 %v5112_v50  ;;  %v2436_v50 = vld [vmem:[%s6701_s24 + $0x1220] sm:$0xff] }
 0x401   : > { %5625 = vmatpush1.bf16.msra.mxu1 %v5624_v51  ;;  %5115 = vmatprep.subr.bf16.mxu0 %v5114_v52  ;;  %v2434_v51 = vld [vmem:[%s6701_s24 + $0x1210] sm:$0xff]  ;;  %v5646_v52 = vpack.c.bf16 %v2439_v45, %v2435_v44  ;;  %v5136_v58 = vpack.c.bf16 %v2436_v50, %v2432_v49  ;;  %v5154_v44 = vpack.c.bf16 %v2477_v39, %v2473_v38  ;;  %v2472_v45 = vld [vmem:[%s6701_s24 + $0x1340] sm:$0xff]  ;;  %v2481_v50 = vld [vmem:[%s6701_s24 + $0x1388] sm:$0xff] }
 0x402   : > { %5627 = vmatprep.subr.bf16.mxu1 %v5626_v56  ;;  %v2443_v56 = vld [vmem:[%s6701_s24 + $0x1258] sm:$0xff]  ;;  %v5648_v59 = vpack.c.bf16 %v2438_v53, %v2434_v51  ;;  %v2478_v49 = vld [vmem:[%s6701_s24 + $0x1370] sm:$0xff]  ;;  %v2485_v51 = vld [vmem:[%s6701_s24 + $0x13a8] sm:$0xff] }
 0x403   : > { %v2487_v53 = vld [vmem:[%s6701_s24 + $0x13b8] sm:$0xff]  ;;  %v1851_v39 = vld [vmem:[#allocation2 + $0x58] sm:$0xff] }
 0x404   : > { %5117 = vmatpush1.bf16.msra.mxu0 %v5116_v62  ;;  %v2444_v62 = vld [vmem:[%s6701_s24 + $0x1260] sm:$0xff]  ;;  %v2519_v38 = vld [vmem:[%s6701_s24 + $0x14b8] sm:$0xff] }
 0x405   : > { %5629 = vmatpush1.bf16.msra.mxu1 %v5628_v63  ;;  %5119 = vmatprep.subr.bf16.mxu0 %v5118_v0  ;;  %v2442_v63 = vld [vmem:[%s6701_s24 + $0x1250] sm:$0xff]  ;;  %v5650_v0 = vpack.c.bf16 %v2447_v57, %v2443_v56  ;;  %v5140_v6 = vpack.c.bf16 %v2444_v62, %v2440_v61  ;;  %v5158_v56 = vpack.c.bf16 %v2485_v51, %v2481_v50  ;;  %v2480_v57 = vld [vmem:[%s6701_s24 + $0x1380] sm:$0xff]  ;;  %v2489_v62 = vld [vmem:[%s6701_s24 + $0x13c8] sm:$0xff] }
 0x406   : > { %5631 = vmatprep.subr.bf16.mxu1 %v5630_v4  ;;  %v2451_v4 = vld [vmem:[%s6701_s24 + $0x1298] sm:$0xff]  ;;  %v5652_v7 = vpack.c.bf16 %v2446_v1, %v2442_v63  ;;  %v2486_v61 = vld [vmem:[%s6701_s24 + $0x13b0] sm:$0xff]  ;;  %v2493_v63 = vld [vmem:[%s6701_s24 + $0x13e8] sm:$0xff] }
 0x407   : > { %v2495_v1 = vld [vmem:[%s6701_s24 + $0x13f8] sm:$0xff] }
 0x408   : > { %5121 = vmatpush1.bf16.msra.mxu0 %v5120_v10  ;;  %v2452_v10 = vld [vmem:[%s6701_s24 + $0x12a0] sm:$0xff]  ;;  %v2523_v50 = vld [vmem:[%s6701_s24 + $0x14d8] sm:$0xff] }
 0x409   : > { %5633 = vmatpush1.bf16.msra.mxu1 %v5632_v11  ;;  %5123 = vmatprep.subr.bf16.mxu0 %v5122_v12  ;;  %v2450_v11 = vld [vmem:[%s6701_s24 + $0x1290] sm:$0xff]  ;;  %v5654_v12 = vpack.c.bf16 %v2455_v5, %v2451_v4  ;;  %v5144_v18 = vpack.c.bf16 %v2452_v10, %v2448_v9  ;;  %v5162_v4 = vpack.c.bf16 %v2493_v63, %v2489_v62  ;;  %v2488_v5 = vld [vmem:[%s6701_s24 + $0x13c0] sm:$0xff]  ;;  %v2497_v10 = vld [vmem:[%s6701_s24 + $0x1408] sm:$0xff] }
 0x40a   : > { %5635 = vmatprep.subr.bf16.mxu1 %v5634_v16  ;;  %v2459_v16 = vld [vmem:[%s6701_s24 + $0x12d8] sm:$0xff]  ;;  %v5656_v19 = vpack.c.bf16 %v2454_v13, %v2450_v11  ;;  %v2494_v9 = vld [vmem:[%s6701_s24 + $0x13f0] sm:$0xff]  ;;  %v2501_v11 = vld [vmem:[%s6701_s24 + $0x1428] sm:$0xff] }
 0x40b   : > { %v2503_v13 = vld [vmem:[%s6701_s24 + $0x1438] sm:$0xff] }
 0x40c   : > { %5125 = vmatpush1.bf16.msra.mxu0 %v5124_v22  ;;  %v2460_v22 = vld [vmem:[%s6701_s24 + $0x12e0] sm:$0xff]  ;;  %v2527_v51 = vld [vmem:[%s6701_s24 + $0x14f8] sm:$0xff] }
 0x40d   : > { %5637 = vmatpush1.bf16.msra.mxu1 %v5636_v23  ;;  %5127 = vmatprep.subr.bf16.mxu0 %v5126_v24  ;;  %v2458_v23 = vld [vmem:[%s6701_s24 + $0x12d0] sm:$0xff]  ;;  %v5658_v24 = vpack.c.bf16 %v2463_v17, %v2459_v16  ;;  %v5148_v30 = vpack.c.bf16 %v2460_v22, %v2456_v21  ;;  %v5166_v16 = vpack.c.bf16 %v2501_v11, %v2497_v10  ;;  %v2496_v17 = vld [vmem:[%s6701_s24 + $0x1400] sm:$0xff]  ;;  %v2505_v22 = vld [vmem:[%s6701_s24 + $0x1448] sm:$0xff] }
 0x40e   : > { %5639 = vmatprep.subr.bf16.mxu1 %v5638_v28  ;;  %v2467_v28 = vld [vmem:[%s6701_s24 + $0x1318] sm:$0xff]  ;;  %v5660_v31 = vpack.c.bf16 %v2462_v25, %v2458_v23  ;;  %v2502_v21 = vld [vmem:[%s6701_s24 + $0x1430] sm:$0xff]  ;;  %v2509_v23 = vld [vmem:[%s6701_s24 + $0x1468] sm:$0xff] }
 0x40f   : > { %v2511_v25 = vld [vmem:[%s6701_s24 + $0x1478] sm:$0xff] }
 0x410   : > { %5129 = vmatpush1.bf16.msra.mxu0 %v5128_v34  ;;  %v2468_v34 = vld [vmem:[%s6701_s24 + $0x1320] sm:$0xff]  ;;  %v2531_v62 = vld [vmem:[%s6701_s24 + $0x1518] sm:$0xff] }
 0x411   : > { %5641 = vmatpush1.bf16.msra.mxu1 %v5640_v35  ;;  %5131 = vmatprep.subr.bf16.mxu0 %v5130_v36  ;;  %v2466_v35 = vld [vmem:[%s6701_s24 + $0x1310] sm:$0xff]  ;;  %v5662_v36 = vpack.c.bf16 %v2471_v29, %v2467_v28  ;;  %v5152_v42 = vpack.c.bf16 %v2468_v34, %v2464_v33  ;;  %v5170_v29 = vpack.c.bf16 %v2509_v23, %v2505_v22  ;;  %v2535_v63 = vld [vmem:[%s6701_s24 + $0x1538] sm:$0xff] }
 0x412   : > { %5643 = vmatprep.subr.bf16.mxu1 %v5642_v40  ;;  %v2475_v40 = vld [vmem:[%s6701_s24 + $0x1358] sm:$0xff]  ;;  %v5664_v43 = vpack.c.bf16 %v2470_v37, %v2466_v35  ;;  %v2510_v34 = vld [vmem:[%s6701_s24 + $0x1470] sm:$0xff]  ;;  %v2513_v35 = vld [vmem:[%s6701_s24 + $0x1488] sm:$0xff] }
 0x413   : > { %v2515_v37 = vld [vmem:[%s6701_s24 + $0x1498] sm:$0xff] }
 0x414   : > { %5133 = vmatpush1.bf16.msra.mxu0 %v5132_v46  ;;  %v2476_v46 = vld [vmem:[%s6701_s24 + $0x1360] sm:$0xff]  ;;  %v2539_v10 = vld [vmem:[%s6701_s24 + $0x1558] sm:$0xff] }
 0x415   : > { %5645 = vmatpush1.bf16.msra.mxu1 %v5644_v47  ;;  %5135 = vmatprep.subr.bf16.mxu0 %v5134_v48  ;;  %v2474_v47 = vld [vmem:[%s6701_s24 + $0x1350] sm:$0xff]  ;;  %v5666_v48 = vpack.c.bf16 %v2479_v41, %v2475_v40  ;;  %v5156_v54 = vpack.c.bf16 %v2476_v46, %v2472_v45  ;;  %v5686_v46 = vpack.c.bf16 %v2519_v38, %v2515_v37  ;;  %v2543_v11 = vld [vmem:[%s6701_s24 + $0x1578] sm:$0xff] }
 0x416   : > { %5647 = vmatprep.subr.bf16.mxu1 %v5646_v52  ;;  %v2483_v52 = vld [vmem:[%s6701_s24 + $0x1398] sm:$0xff]  ;;  %v5668_v55 = vpack.c.bf16 %v2478_v49, %v2474_v47  ;;  %v2514_v45 = vld [vmem:[%s6701_s24 + $0x1490] sm:$0xff]  ;;  %v2525_v49 = vld [vmem:[%s6701_s24 + $0x14e8] sm:$0xff] }
 0x417   : > { %v2518_v47 = vld [vmem:[%s6701_s24 + $0x14b0] sm:$0xff]  ;;  %v2547_v22 = vld [vmem:[%s6701_s24 + $0x1598] sm:$0xff] }
 0x418   : > { %5137 = vmatpush1.bf16.msra.mxu0 %v5136_v58  ;;  %v2484_v58 = vld [vmem:[%s6701_s24 + $0x13a0] sm:$0xff]  ;;  %v2551_v23 = vld [vmem:[%s6701_s24 + $0x15b8] sm:$0xff] }
 0x419   : > { %5649 = vmatpush1.bf16.msra.mxu1 %v5648_v59  ;;  %5139 = vmatprep.subr.bf16.mxu0 %v5138_v60  ;;  %v2482_v59 = vld [vmem:[%s6701_s24 + $0x1390] sm:$0xff]  ;;  %v5670_v60 = vpack.c.bf16 %v2487_v53, %v2483_v52  ;;  %v5160_v2 = vpack.c.bf16 %v2484_v58, %v2480_v57  ;;  %v5688_v53 = vpack.c.bf16 %v2518_v47, %v2514_v45  ;;  %v2565_v45 = vld [vmem:[%s6701_s24 + $0x1628] sm:$0xff]  ;;  %v2567_v47 = vld [vmem:[%s6701_s24 + $0x1638] sm:$0xff] }
 0x41a   : > { %5651 = vmatprep.subr.bf16.mxu1 %v5650_v0  ;;  %v2491_v0 = vld [vmem:[%s6701_s24 + $0x13d8] sm:$0xff]  ;;  %v5672_v3 = vpack.c.bf16 %v2486_v61, %v2482_v59  ;;  %v2522_v57 = vld [vmem:[%s6701_s24 + $0x14d0] sm:$0xff]  ;;  %v5690_v58 = vpack.c.bf16 %v2527_v51, %v2523_v50  ;;  %v2533_v61 = vld [vmem:[%s6701_s24 + $0x1528] sm:$0xff] }
 0x41b   : > { %v2526_v59 = vld [vmem:[%s6701_s24 + $0x14f0] sm:$0xff]  ;;  %v2560_v51 = vld [vmem:[%s6701_s24 + $0x1600] sm:$0xff] }
 0x41c   : > { %5141 = vmatpush1.bf16.msra.mxu0 %v5140_v6  ;;  %v2492_v6 = vld [vmem:[%s6701_s24 + $0x13e0] sm:$0xff] }
 0x41d   : > { %5653 = vmatpush1.bf16.msra.mxu1 %v5652_v7  ;;  %5143 = vmatprep.subr.bf16.mxu0 %v5142_v8  ;;  %v2490_v7 = vld [vmem:[%s6701_s24 + $0x13d0] sm:$0xff]  ;;  %v5674_v8 = vpack.c.bf16 %v2495_v1, %v2491_v0  ;;  %v5164_v14 = vpack.c.bf16 %v2492_v6, %v2488_v5  ;;  %v5692_v1 = vpack.c.bf16 %v2526_v59, %v2522_v57  ;;  %v2573_v57 = vld [vmem:[%s6701_s24 + $0x1668] sm:$0xff]  ;;  %v2575_v59 = vld [vmem:[%s6701_s24 + $0x1678] sm:$0xff] }
 0x41e   : > { %5655 = vmatprep.subr.bf16.mxu1 %v5654_v12  ;;  %v2499_v12 = vld [vmem:[%s6701_s24 + $0x1418] sm:$0xff]  ;;  %v5676_v15 = vpack.c.bf16 %v2494_v9, %v2490_v7  ;;  %v2530_v5 = vld [vmem:[%s6701_s24 + $0x1510] sm:$0xff]  ;;  %v5694_v6 = vpack.c.bf16 %v2535_v63, %v2531_v62  ;;  %v2541_v9 = vld [vmem:[%s6701_s24 + $0x1568] sm:$0xff] }
 0x41f   : > { %v2534_v7 = vld [vmem:[%s6701_s24 + $0x1530] sm:$0xff]  ;;  %v2568_v63 = vld [vmem:[%s6701_s24 + $0x1640] sm:$0xff] }
 0x420   : > { %5145 = vmatpush1.bf16.msra.mxu0 %v5144_v18  ;;  %v2500_v18 = vld [vmem:[%s6701_s24 + $0x1420] sm:$0xff] }
 0x421   : > { %5657 = vmatpush1.bf16.msra.mxu1 %v5656_v19  ;;  %5147 = vmatprep.subr.bf16.mxu0 %v5146_v20  ;;  %v2498_v19 = vld [vmem:[%s6701_s24 + $0x1410] sm:$0xff]  ;;  %v5678_v20 = vpack.c.bf16 %v2503_v13, %v2499_v12  ;;  %v5168_v27 = vpack.c.bf16 %v2500_v18, %v2496_v17  ;;  %v5696_v13 = vpack.c.bf16 %v2534_v7, %v2530_v5  ;;  %v2581_v5 = vld [vmem:[%s6701_s24 + $0x16a8] sm:$0xff]  ;;  %v2583_v7 = vld [vmem:[%s6701_s24 + $0x16b8] sm:$0xff] }
 0x422   : > { %5659 = vmatprep.subr.bf16.mxu1 %v5658_v24  ;;  %v2507_v24 = vld [vmem:[%s6701_s24 + $0x1458] sm:$0xff]  ;;  %v5680_v28 = vpack.c.bf16 %v2502_v21, %v2498_v19  ;;  %v2538_v17 = vld [vmem:[%s6701_s24 + $0x1550] sm:$0xff]  ;;  %v5698_v18 = vpack.c.bf16 %v2543_v11, %v2539_v10  ;;  %v2549_v21 = vld [vmem:[%s6701_s24 + $0x15a8] sm:$0xff] }
 0x423   : > { %v5682_v33 = vpack.c.bf16 %v2511_v25, %v2507_v24  ;;  %v2542_v19 = vld [vmem:[%s6701_s24 + $0x1570] sm:$0xff]  ;;  %v2576_v11 = vld [vmem:[%s6701_s24 + $0x1680] sm:$0xff] }
 0x424   : > { %5149 = vmatpush1.bf16.msra.mxu0 %v5148_v30  ;;  %v2504_v30 = vld [vmem:[%s6701_s24 + $0x1440] sm:$0xff]  ;;  %v5700_v25 = vpack.c.bf16 %v2542_v19, %v2538_v17  ;;  %v2589_v17 = vld [vmem:[%s6701_s24 + $0x16e8] sm:$0xff]  ;;  %v2591_v19 = vld [vmem:[%s6701_s24 + $0x16f8] sm:$0xff] }
 0x425   : > { %5661 = vmatpush1.bf16.msra.mxu1 %v5660_v31  ;;  %5151 = vmatprep.subr.bf16.mxu0 %v5150_v32  ;;  %v2508_v31 = vld [vmem:[%s6701_s24 + $0x1460] sm:$0xff]  ;;  %v2506_v32 = vld [vmem:[%s6701_s24 + $0x1450] sm:$0xff] }
 0x426   : > { %5663 = vmatprep.subr.bf16.mxu1 %v5662_v36  ;;  %v2517_v36 = vld [vmem:[%s6701_s24 + $0x14a8] sm:$0xff]  ;;  %v5172_v40 = vpack.c.bf16 %v2508_v31, %v2504_v30  ;;  %v5684_v41 = vpack.c.bf16 %v2510_v34, %v2506_v32  ;;  %v5702_v30 = vpack.c.bf16 %v2551_v23, %v2547_v22  ;;  %v2550_v31 = vld [vmem:[%s6701_s24 + $0x15b0] sm:$0xff]  ;;  %v2555_v34 = vld [vmem:[%s6701_s24 + $0x15d8] sm:$0xff] }
 0x427   : > { %v2553_v32 = vld [vmem:[%s6701_s24 + $0x15c8] sm:$0xff]  ;;  %v2584_v23 = vld [vmem:[%s6701_s24 + $0x16c0] sm:$0xff] }
 0x428   : > { %5153 = vmatpush1.bf16.msra.mxu0 %v5152_v42  ;;  %v5174_v42 = vpack.c.bf16 %v2517_v36, %v2513_v35  ;;  %v2559_v35 = vld [vmem:[%s6701_s24 + $0x15f8] sm:$0xff] }
 0x429   : > { %5665 = vmatpush1.bf16.msra.mxu1 %v5664_v43  ;;  %5155 = vmatprep.subr.bf16.mxu0 %v5154_v44  ;;  %v2512_v43 = vld [vmem:[%s6701_s24 + $0x1480] sm:$0xff] }
 0x42a   : > { %5667 = vmatprep.subr.bf16.mxu1 %v5666_v48  ;;  %v2516_v44 = vld [vmem:[%s6701_s24 + $0x14a0] sm:$0xff]  ;;  %v2521_v48 = vld [vmem:[%s6701_s24 + $0x14c8] sm:$0xff] }
 0x42b   : > { %v5176_v52 = vpack.c.bf16 %v2516_v44, %v2512_v43  ;;  %v2558_v43 = vld [vmem:[%s6701_s24 + $0x15f0] sm:$0xff]  ;;  %v2561_v44 = vld [vmem:[%s6701_s24 + $0x1608] sm:$0xff] }
 0x42c   : > { %5157 = vmatpush1.bf16.msra.mxu0 %v5156_v54  ;;  %v5178_v54 = vpack.c.bf16 %v2525_v49, %v2521_v48  ;;  %v5198_v50 = vpack.c.bf16 %v2565_v45, %v2561_v44 }
 0x42d   : > { %5669 = vmatpush1.bf16.msra.mxu1 %v5668_v55  ;;  %5159 = vmatprep.subr.bf16.mxu0 %v5158_v56  ;;  %v2520_v55 = vld [vmem:[%s6701_s24 + $0x14c0] sm:$0xff] }
 0x42e   : > { %5671 = vmatprep.subr.bf16.mxu1 %v5670_v60  ;;  %v2524_v56 = vld [vmem:[%s6701_s24 + $0x14e0] sm:$0xff]  ;;  %v2529_v60 = vld [vmem:[%s6701_s24 + $0x1508] sm:$0xff] }
 0x42f   : > { %v5180_v0 = vpack.c.bf16 %v2524_v56, %v2520_v55  ;;  %v2566_v55 = vld [vmem:[%s6701_s24 + $0x1630] sm:$0xff]  ;;  %v2569_v56 = vld [vmem:[%s6701_s24 + $0x1648] sm:$0xff] }
 0x430   : > { %5161 = vmatpush1.bf16.msra.mxu0 %v5160_v2  ;;  %v5182_v2 = vpack.c.bf16 %v2533_v61, %v2529_v60  ;;  %v5202_v62 = vpack.c.bf16 %v2573_v57, %v2569_v56 }
 0x431   : > { %5673 = vmatpush1.bf16.msra.mxu1 %v5672_v3  ;;  %5163 = vmatprep.subr.bf16.mxu0 %v5162_v4  ;;  %v2528_v3 = vld [vmem:[%s6701_s24 + $0x1500] sm:$0xff] }
 0x432   : > { %5675 = vmatprep.subr.bf16.mxu1 %v5674_v8  ;;  %v2532_v4 = vld [vmem:[%s6701_s24 + $0x1520] sm:$0xff]  ;;  %v2537_v8 = vld [vmem:[%s6701_s24 + $0x1548] sm:$0xff] }
 0x433   : > { %v5184_v12 = vpack.c.bf16 %v2532_v4, %v2528_v3  ;;  %v2574_v3 = vld [vmem:[%s6701_s24 + $0x1670] sm:$0xff]  ;;  %v2577_v4 = vld [vmem:[%s6701_s24 + $0x1688] sm:$0xff] }
 0x434   : > { %5165 = vmatpush1.bf16.msra.mxu0 %v5164_v14  ;;  %v5186_v14 = vpack.c.bf16 %v2541_v9, %v2537_v8  ;;  %v5206_v10 = vpack.c.bf16 %v2581_v5, %v2577_v4 }
 0x435   : > { %5677 = vmatpush1.bf16.msra.mxu1 %v5676_v15  ;;  %5167 = vmatprep.subr.bf16.mxu0 %v5166_v16  ;;  %v2536_v15 = vld [vmem:[%s6701_s24 + $0x1540] sm:$0xff] }
 0x436   : > { %5679 = vmatprep.subr.bf16.mxu1 %v5678_v20  ;;  %v2540_v16 = vld [vmem:[%s6701_s24 + $0x1560] sm:$0xff]  ;;  %v2545_v20 = vld [vmem:[%s6701_s24 + $0x1588] sm:$0xff] }
 0x437   : > { %3251 = vmatmul.mubr.f32.vlgmr.msra.gmra.mrb[0].mxu0 %v1848_v26  ;;  %v5188_v24 = vpack.c.bf16 %v2540_v16, %v2536_v15  ;;  %v2582_v15 = vld [vmem:[%s6701_s24 + $0x16b0] sm:$0xff]  ;;  %v2585_v16 = vld [vmem:[%s6701_s24 + $0x16c8] sm:$0xff] }
 0x438   : > { %5169 = vmatpush1.bf16.msra.mxu0 %v5168_v27  ;;  %3819 = vmatmul.mubr.f32.vlgmr.msra.gmra.mrb[0].mxu1 %v1848_v26  ;;  %v5190_v26 = vpack.c.bf16 %v2549_v21, %v2545_v20  ;;  %v2544_v27 = vld [vmem:[%s6701_s24 + $0x1580] sm:$0xff]  ;;  %v5210_v22 = vpack.c.bf16 %v2589_v17, %v2585_v16 }
 0x439   : > { %5681 = vmatpush1.bf16.msra.mxu1 %v5680_v28  ;;  %5171 = vmatprep.subr.bf16.mxu0 %v5170_v29  ;;  %v2548_v28 = vld [vmem:[%s6701_s24 + $0x15a0] sm:$0xff]  ;;  %v2546_v29 = vld [vmem:[%s6701_s24 + $0x1590] sm:$0xff] }
 0x43a   : > { %5683 = vmatprep.subr.bf16.mxu1 %v5682_v33  ;;  %3321 = vmatprep.mubr.f32.mxu0 %v1851_v39  ;;  %v2557_v33 = vld [vmem:[%s6701_s24 + $0x15e8] sm:$0xff]  ;;  %v5192_v36 = vpack.c.bf16 %v2548_v28, %v2544_v27  ;;  %v5704_v37 = vpack.c.bf16 %v2550_v31, %v2546_v29  ;;  %v2590_v27 = vld [vmem:[%s6701_s24 + $0x16f0] sm:$0xff]  ;;  %v2599_v31 = vld [vmem:[%s6701_s24 + $0x1738] sm:$0xff] }
 0x43b   : > { %3889 = vmatprep.mubr.f32.mxu1 %v1851_v39  ;;  %v5194_v38 = vpack.c.bf16 %v2557_v33, %v2553_v32  ;;  %v2552_v39 = vld [vmem:[%s6701_s24 + $0x15c0] sm:$0xff]  ;;  %v2593_v28 = vld [vmem:[%s6701_s24 + $0x1708] sm:$0xff] }
 0x43c   : > { %5173 = vmatpush1.bf16.msra.mxu0 %v5172_v40  ;;  %v2556_v40 = vld [vmem:[%s6701_s24 + $0x15e0] sm:$0xff]  ;;  %v2597_v29 = vld [vmem:[%s6701_s24 + $0x1728] sm:$0xff] }
 0x43d   : > { %5685 = vmatpush1.bf16.msra.mxu1 %v5684_v41  ;;  %5175 = vmatprep.subr.bf16.mxu0 %v5174_v42  ;;  %v2554_v41 = vld [vmem:[%s6701_s24 + $0x15d0] sm:$0xff]  ;;  %v5706_v42 = vpack.c.bf16 %v2559_v35, %v2555_v34  ;;  %v5196_v48 = vpack.c.bf16 %v2556_v40, %v2552_v39  ;;  %v5214_v34 = vpack.c.bf16 %v2597_v29, %v2593_v28  ;;  %v2592_v35 = vld [vmem:[%s6701_s24 + $0x1700] sm:$0xff]  ;;  %v2601_v40 = vld [vmem:[%s6701_s24 + $0x1748] sm:$0xff] }
 0x43e   : > { %5687 = vmatprep.subr.bf16.mxu1 %v5686_v46  ;;  %v2563_v46 = vld [vmem:[%s6701_s24 + $0x1618] sm:$0xff]  ;;  %v5708_v49 = vpack.c.bf16 %v2558_v43, %v2554_v41  ;;  %v2598_v39 = vld [vmem:[%s6701_s24 + $0x1730] sm:$0xff]  ;;  %v2605_v41 = vld [vmem:[%s6701_s24 + $0x1768] sm:$0xff] }
 0x43f   : > { %v2607_v43 = vld [vmem:[%s6701_s24 + $0x1778] sm:$0xff] }
 0x440   : > { %5177 = vmatpush1.bf16.msra.mxu0 %v5176_v52  ;;  %v2564_v52 = vld [vmem:[%s6701_s24 + $0x1620] sm:$0xff] }
 0x441   : > { %5689 = vmatpush1.bf16.msra.mxu1 %v5688_v53  ;;  %5179 = vmatprep.subr.bf16.mxu0 %v5178_v54  ;;  %v2562_v53 = vld [vmem:[%s6701_s24 + $0x1610] sm:$0xff]  ;;  %v5710_v54 = vpack.c.bf16 %v2567_v47, %v2563_v46  ;;  %v5200_v60 = vpack.c.bf16 %v2564_v52, %v2560_v51  ;;  %v5218_v46 = vpack.c.bf16 %v2605_v41, %v2601_v40  ;;  %v2600_v47 = vld [vmem:[%s6701_s24 + $0x1740] sm:$0xff]  ;;  %v2609_v52 = vld [vmem:[%s6701_s24 + $0x1788] sm:$0xff] }
 0x442   : > { %5691 = vmatprep.subr.bf16.mxu1 %v5690_v58  ;;  %v2571_v58 = vld [vmem:[%s6701_s24 + $0x1658] sm:$0xff]  ;;  %v5712_v61 = vpack.c.bf16 %v2566_v55, %v2562_v53  ;;  %v2606_v51 = vld [vmem:[%s6701_s24 + $0x1770] sm:$0xff]  ;;  %v2613_v53 = vld [vmem:[%s6701_s24 + $0x17a8] sm:$0xff] }
 0x443   : > { %v2615_v55 = vld [vmem:[%s6701_s24 + $0x17b8] sm:$0xff] }
 0x444   : > { %5181 = vmatpush1.bf16.msra.mxu0 %v5180_v0  ;;  %v2572_v0 = vld [vmem:[%s6701_s24 + $0x1660] sm:$0xff]  ;;  %v2647_v40 = vld [vmem:[%s6701_s24 + $0x18b8] sm:$0xff] }
 0x445   : > { %5693 = vmatpush1.bf16.msra.mxu1 %v5692_v1  ;;  %5183 = vmatprep.subr.bf16.mxu0 %v5182_v2  ;;  %v2570_v1 = vld [vmem:[%s6701_s24 + $0x1650] sm:$0xff]  ;;  %v5714_v2 = vpack.c.bf16 %v2575_v59, %v2571_v58  ;;  %v5204_v8 = vpack.c.bf16 %v2572_v0, %v2568_v63  ;;  %v5222_v58 = vpack.c.bf16 %v2613_v53, %v2609_v52  ;;  %v2608_v59 = vld [vmem:[%s6701_s24 + $0x1780] sm:$0xff]  ;;  %v2617_v0 = vld [vmem:[%s6701_s24 + $0x17c8] sm:$0xff] }
 0x446   : > { %5695 = vmatprep.subr.bf16.mxu1 %v5694_v6  ;;  %v2579_v6 = vld [vmem:[%s6701_s24 + $0x1698] sm:$0xff]  ;;  %v5716_v9 = vpack.c.bf16 %v2574_v3, %v2570_v1  ;;  %v2614_v63 = vld [vmem:[%s6701_s24 + $0x17b0] sm:$0xff]  ;;  %v2621_v1 = vld [vmem:[%s6701_s24 + $0x17e8] sm:$0xff] }
 0x447   : > { %v2623_v3 = vld [vmem:[%s6701_s24 + $0x17f8] sm:$0xff] }
 0x448   : > { %5185 = vmatpush1.bf16.msra.mxu0 %v5184_v12  ;;  %v2580_v12 = vld [vmem:[%s6701_s24 + $0x16a0] sm:$0xff]  ;;  %v1853_v41 = vld [vmem:[#allocation2 + $0x68] sm:$0xff] }
 0x449   : > { %5697 = vmatpush1.bf16.msra.mxu1 %v5696_v13  ;;  %5187 = vmatprep.subr.bf16.mxu0 %v5186_v14  ;;  %v2578_v13 = vld [vmem:[%s6701_s24 + $0x1690] sm:$0xff]  ;;  %v5718_v14 = vpack.c.bf16 %v2583_v7, %v2579_v6  ;;  %v5208_v20 = vpack.c.bf16 %v2580_v12, %v2576_v11  ;;  %v5226_v6 = vpack.c.bf16 %v2621_v1, %v2617_v0  ;;  %v2616_v7 = vld [vmem:[%s6701_s24 + $0x17c0] sm:$0xff]  ;;  %v2625_v12 = vld [vmem:[%s6701_s24 + $0x1808] sm:$0xff] }
 0x44a   : > { %5699 = vmatprep.subr.bf16.mxu1 %v5698_v18  ;;  %v2587_v18 = vld [vmem:[%s6701_s24 + $0x16d8] sm:$0xff]  ;;  %v5720_v21 = vpack.c.bf16 %v2582_v15, %v2578_v13  ;;  %v2622_v11 = vld [vmem:[%s6701_s24 + $0x17f0] sm:$0xff]  ;;  %v2629_v13 = vld [vmem:[%s6701_s24 + $0x1828] sm:$0xff] }
 0x44b   : > { %v2631_v15 = vld [vmem:[%s6701_s24 + $0x1838] sm:$0xff] }
 0x44c   : > { %5189 = vmatpush1.bf16.msra.mxu0 %v5188_v24  ;;  %v2588_v24 = vld [vmem:[%s6701_s24 + $0x16e0] sm:$0xff]  ;;  %v2651_v52 = vld [vmem:[%s6701_s24 + $0x18d8] sm:$0xff] }
 0x44d   : > { %5701 = vmatpush1.bf16.msra.mxu1 %v5700_v25  ;;  %5191 = vmatprep.subr.bf16.mxu0 %v5190_v26  ;;  %v2586_v25 = vld [vmem:[%s6701_s24 + $0x16d0] sm:$0xff]  ;;  %v5722_v26 = vpack.c.bf16 %v2591_v19, %v2587_v18  ;;  %v5212_v32 = vpack.c.bf16 %v2588_v24, %v2584_v23  ;;  %v5230_v18 = vpack.c.bf16 %v2629_v13, %v2625_v12  ;;  %v2624_v19 = vld [vmem:[%s6701_s24 + $0x1800] sm:$0xff]  ;;  %v2633_v24 = vld [vmem:[%s6701_s24 + $0x1848] sm:$0xff] }
 0x44e   : > { %5703 = vmatprep.subr.bf16.mxu1 %v5702_v30  ;;  %v2595_v30 = vld [vmem:[%s6701_s24 + $0x1718] sm:$0xff]  ;;  %v5724_v33 = vpack.c.bf16 %v2590_v27, %v2586_v25  ;;  %v2630_v23 = vld [vmem:[%s6701_s24 + $0x1830] sm:$0xff]  ;;  %v2637_v25 = vld [vmem:[%s6701_s24 + $0x1868] sm:$0xff] }
 0x44f   : > { %v2639_v27 = vld [vmem:[%s6701_s24 + $0x1878] sm:$0xff] }
 0x450   : > { %5193 = vmatpush1.bf16.msra.mxu0 %v5192_v36  ;;  %v2596_v36 = vld [vmem:[%s6701_s24 + $0x1720] sm:$0xff]  ;;  %v2655_v53 = vld [vmem:[%s6701_s24 + $0x18f8] sm:$0xff] }
 0x451   : > { %5705 = vmatpush1.bf16.msra.mxu1 %v5704_v37  ;;  %5195 = vmatprep.subr.bf16.mxu0 %v5194_v38  ;;  %v2594_v37 = vld [vmem:[%s6701_s24 + $0x1710] sm:$0xff]  ;;  %v5726_v38 = vpack.c.bf16 %v2599_v31, %v2595_v30  ;;  %v5216_v44 = vpack.c.bf16 %v2596_v36, %v2592_v35  ;;  %v1850_v28 = vld [vmem:[#allocation2 + $0x50] sm:$0xff]  ;;  %v5234_v31 = vpack.c.bf16 %v2637_v25, %v2633_v24 }
 0x452   : > { %5707 = vmatprep.subr.bf16.mxu1 %v5706_v42  ;;  %v2603_v42 = vld [vmem:[%s6701_s24 + $0x1758] sm:$0xff]  ;;  %v5728_v45 = vpack.c.bf16 %v2598_v39, %v2594_v37  ;;  %v2638_v36 = vld [vmem:[%s6701_s24 + $0x1870] sm:$0xff]  ;;  %v2641_v37 = vld [vmem:[%s6701_s24 + $0x1888] sm:$0xff] }
 0x453   : > { %v2643_v39 = vld [vmem:[%s6701_s24 + $0x1898] sm:$0xff] }
 0x454   : > { %5197 = vmatpush1.bf16.msra.mxu0 %v5196_v48  ;;  %v2604_v48 = vld [vmem:[%s6701_s24 + $0x1760] sm:$0xff]  ;;  %v2659_v0 = vld [vmem:[%s6701_s24 + $0x1918] sm:$0xff] }
 0x455   : > { %5709 = vmatpush1.bf16.msra.mxu1 %v5708_v49  ;;  %5199 = vmatprep.subr.bf16.mxu0 %v5198_v50  ;;  %v2602_v49 = vld [vmem:[%s6701_s24 + $0x1750] sm:$0xff]  ;;  %v5730_v50 = vpack.c.bf16 %v2607_v43, %v2603_v42  ;;  %v5220_v56 = vpack.c.bf16 %v2604_v48, %v2600_v47  ;;  %v5750_v48 = vpack.c.bf16 %v2647_v40, %v2643_v39  ;;  %v2663_v1 = vld [vmem:[%s6701_s24 + $0x1938] sm:$0xff] }
 0x456   : > { %5711 = vmatprep.subr.bf16.mxu1 %v5710_v54  ;;  %v2611_v54 = vld [vmem:[%s6701_s24 + $0x1798] sm:$0xff]  ;;  %v5732_v57 = vpack.c.bf16 %v2606_v51, %v2602_v49  ;;  %v2642_v47 = vld [vmem:[%s6701_s24 + $0x1890] sm:$0xff]  ;;  %v2653_v51 = vld [vmem:[%s6701_s24 + $0x18e8] sm:$0xff] }
 0x457   : > { %v2646_v49 = vld [vmem:[%s6701_s24 + $0x18b0] sm:$0xff]  ;;  %v2667_v12 = vld [vmem:[%s6701_s24 + $0x1958] sm:$0xff] }
 0x458   : > { %5201 = vmatpush1.bf16.msra.mxu0 %v5200_v60  ;;  %v2612_v60 = vld [vmem:[%s6701_s24 + $0x17a0] sm:$0xff]  ;;  %v2671_v13 = vld [vmem:[%s6701_s24 + $0x1978] sm:$0xff] }
 0x459   : > { %5713 = vmatpush1.bf16.msra.mxu1 %v5712_v61  ;;  %5203 = vmatprep.subr.bf16.mxu0 %v5202_v62  ;;  %v2610_v61 = vld [vmem:[%s6701_s24 + $0x1790] sm:$0xff]  ;;  %v5734_v62 = vpack.c.bf16 %v2615_v55, %v2611_v54  ;;  %v5224_v4 = vpack.c.bf16 %v2612_v60, %v2608_v59  ;;  %v5752_v55 = vpack.c.bf16 %v2646_v49, %v2642_v47  ;;  %v2675_v24 = vld [vmem:[%s6701_s24 + $0x1998] sm:$0xff]  ;;  %v2693_v47 = vld [vmem:[%s6701_s24 + $0x1a28] sm:$0xff] }
 0x45a   : > { %5715 = vmatprep.subr.bf16.mxu1 %v5714_v2  ;;  %v2619_v2 = vld [vmem:[%s6701_s24 + $0x17d8] sm:$0xff]  ;;  %v5736_v5 = vpack.c.bf16 %v2614_v63, %v2610_v61  ;;  %v2650_v59 = vld [vmem:[%s6701_s24 + $0x18d0] sm:$0xff]  ;;  %v5754_v60 = vpack.c.bf16 %v2655_v53, %v2651_v52  ;;  %v2661_v63 = vld [vmem:[%s6701_s24 + $0x1928] sm:$0xff] }
 0x45b   : > { %v2654_v61 = vld [vmem:[%s6701_s24 + $0x18f0] sm:$0xff]  ;;  %v2679_v25 = vld [vmem:[%s6701_s24 + $0x19b8] sm:$0xff]  ;;  %v2688_v53 = vld [vmem:[%s6701_s24 + $0x1a00] sm:$0xff] }
 0x45c   : > { %5205 = vmatpush1.bf16.msra.mxu0 %v5204_v8  ;;  %v2620_v8 = vld [vmem:[%s6701_s24 + $0x17e0] sm:$0xff]  ;;  %v2695_v49 = vld [vmem:[%s6701_s24 + $0x1a38] sm:$0xff] }
 0x45d   : > { %5717 = vmatpush1.bf16.msra.mxu1 %v5716_v9  ;;  %5207 = vmatprep.subr.bf16.mxu0 %v5206_v10  ;;  %v2618_v9 = vld [vmem:[%s6701_s24 + $0x17d0] sm:$0xff]  ;;  %v5738_v10 = vpack.c.bf16 %v2623_v3, %v2619_v2  ;;  %v5228_v16 = vpack.c.bf16 %v2620_v8, %v2616_v7  ;;  %v5756_v3 = vpack.c.bf16 %v2654_v61, %v2650_v59  ;;  %v2701_v59 = vld [vmem:[%s6701_s24 + $0x1a68] sm:$0xff]  ;;  %v2703_v61 = vld [vmem:[%s6701_s24 + $0x1a78] sm:$0xff] }
 0x45e   : > { %5719 = vmatprep.subr.bf16.mxu1 %v5718_v14  ;;  %v2627_v14 = vld [vmem:[%s6701_s24 + $0x1818] sm:$0xff]  ;;  %v5740_v17 = vpack.c.bf16 %v2622_v11, %v2618_v9  ;;  %v2658_v7 = vld [vmem:[%s6701_s24 + $0x1910] sm:$0xff]  ;;  %v5758_v8 = vpack.c.bf16 %v2663_v1, %v2659_v0  ;;  %v2669_v11 = vld [vmem:[%s6701_s24 + $0x1968] sm:$0xff] }
 0x45f   : > { %v2662_v9 = vld [vmem:[%s6701_s24 + $0x1930] sm:$0xff]  ;;  %v2696_v1 = vld [vmem:[%s6701_s24 + $0x1a40] sm:$0xff] }
 0x460   : > { %5209 = vmatpush1.bf16.msra.mxu0 %v5208_v20  ;;  %v2628_v20 = vld [vmem:[%s6701_s24 + $0x1820] sm:$0xff] }
 0x461   : > { %5721 = vmatpush1.bf16.msra.mxu1 %v5720_v21  ;;  %5211 = vmatprep.subr.bf16.mxu0 %v5210_v22  ;;  %v2626_v21 = vld [vmem:[%s6701_s24 + $0x1810] sm:$0xff]  ;;  %v5742_v22 = vpack.c.bf16 %v2631_v15, %v2627_v14  ;;  %v5232_v29 = vpack.c.bf16 %v2628_v20, %v2624_v19  ;;  %v5760_v15 = vpack.c.bf16 %v2662_v9, %v2658_v7  ;;  %v2709_v7 = vld [vmem:[%s6701_s24 + $0x1aa8] sm:$0xff]  ;;  %v2711_v9 = vld [vmem:[%s6701_s24 + $0x1ab8] sm:$0xff] }
 0x462   : > { %5723 = vmatprep.subr.bf16.mxu1 %v5722_v26  ;;  %v2635_v26 = vld [vmem:[%s6701_s24 + $0x1858] sm:$0xff]  ;;  %v5744_v30 = vpack.c.bf16 %v2630_v23, %v2626_v21  ;;  %v2666_v19 = vld [vmem:[%s6701_s24 + $0x1950] sm:$0xff]  ;;  %v5762_v20 = vpack.c.bf16 %v2671_v13, %v2667_v12  ;;  %v2677_v23 = vld [vmem:[%s6701_s24 + $0x19a8] sm:$0xff] }
 0x463   : > { %v5746_v35 = vpack.c.bf16 %v2639_v27, %v2635_v26  ;;  %v2670_v21 = vld [vmem:[%s6701_s24 + $0x1970] sm:$0xff]  ;;  %v2704_v13 = vld [vmem:[%s6701_s24 + $0x1a80] sm:$0xff] }
 0x464   : > { %5213 = vmatpush1.bf16.msra.mxu0 %v5212_v32  ;;  %v2632_v32 = vld [vmem:[%s6701_s24 + $0x1840] sm:$0xff]  ;;  %v5764_v27 = vpack.c.bf16 %v2670_v21, %v2666_v19  ;;  %v2717_v19 = vld [vmem:[%s6701_s24 + $0x1ae8] sm:$0xff]  ;;  %v2719_v21 = vld [vmem:[%s6701_s24 + $0x1af8] sm:$0xff] }
 0x465   : > { %5725 = vmatpush1.bf16.msra.mxu1 %v5724_v33  ;;  %5215 = vmatprep.subr.bf16.mxu0 %v5214_v34  ;;  %v2636_v33 = vld [vmem:[%s6701_s24 + $0x1860] sm:$0xff]  ;;  %v2634_v34 = vld [vmem:[%s6701_s24 + $0x1850] sm:$0xff] }
 0x466   : > { %5727 = vmatprep.subr.bf16.mxu1 %v5726_v38  ;;  %v2645_v38 = vld [vmem:[%s6701_s24 + $0x18a8] sm:$0xff]  ;;  %v5236_v42 = vpack.c.bf16 %v2636_v33, %v2632_v32  ;;  %v5748_v43 = vpack.c.bf16 %v2638_v36, %v2634_v34  ;;  %v5766_v32 = vpack.c.bf16 %v2679_v25, %v2675_v24  ;;  %v2678_v33 = vld [vmem:[%s6701_s24 + $0x19b0] sm:$0xff]  ;;  %v2683_v36 = vld [vmem:[%s6701_s24 + $0x19d8] sm:$0xff] }
 0x467   : > { %v2681_v34 = vld [vmem:[%s6701_s24 + $0x19c8] sm:$0xff]  ;;  %v2712_v25 = vld [vmem:[%s6701_s24 + $0x1ac0] sm:$0xff] }
 0x468   : > { %5217 = vmatpush1.bf16.msra.mxu0 %v5216_v44  ;;  %v5238_v44 = vpack.c.bf16 %v2645_v38, %v2641_v37  ;;  %v2687_v37 = vld [vmem:[%s6701_s24 + $0x19f8] sm:$0xff] }
 0x469   : > { %5729 = vmatpush1.bf16.msra.mxu1 %v5728_v45  ;;  %5219 = vmatprep.subr.bf16.mxu0 %v5218_v46  ;;  %v2640_v45 = vld [vmem:[%s6701_s24 + $0x1880] sm:$0xff] }
 0x46a   : > { %5731 = vmatprep.subr.bf16.mxu1 %v5730_v50  ;;  %v2644_v46 = vld [vmem:[%s6701_s24 + $0x18a0] sm:$0xff]  ;;  %v2649_v50 = vld [vmem:[%s6701_s24 + $0x18c8] sm:$0xff] }
 0x46b   : > { %v5240_v54 = vpack.c.bf16 %v2644_v46, %v2640_v45  ;;  %v2686_v45 = vld [vmem:[%s6701_s24 + $0x19f0] sm:$0xff]  ;;  %v2689_v46 = vld [vmem:[%s6701_s24 + $0x1a08] sm:$0xff] }
 0x46c   : > { %5221 = vmatpush1.bf16.msra.mxu0 %v5220_v56  ;;  %v5242_v56 = vpack.c.bf16 %v2653_v51, %v2649_v50  ;;  %v5262_v52 = vpack.c.bf16 %v2693_v47, %v2689_v46 }
 0x46d   : > { %5733 = vmatpush1.bf16.msra.mxu1 %v5732_v57  ;;  %5223 = vmatprep.subr.bf16.mxu0 %v5222_v58  ;;  %v2648_v57 = vld [vmem:[%s6701_s24 + $0x18c0] sm:$0xff] }
 0x46e   : > { %5735 = vmatprep.subr.bf16.mxu1 %v5734_v62  ;;  %v2652_v58 = vld [vmem:[%s6701_s24 + $0x18e0] sm:$0xff]  ;;  %v2657_v62 = vld [vmem:[%s6701_s24 + $0x1908] sm:$0xff] }
 0x46f   : > { %v5244_v2 = vpack.c.bf16 %v2652_v58, %v2648_v57  ;;  %v2694_v57 = vld [vmem:[%s6701_s24 + $0x1a30] sm:$0xff]  ;;  %v2697_v58 = vld [vmem:[%s6701_s24 + $0x1a48] sm:$0xff] }
 0x470   : > { %5225 = vmatpush1.bf16.msra.mxu0 %v5224_v4  ;;  %v5246_v4 = vpack.c.bf16 %v2661_v63, %v2657_v62  ;;  %v5266_v0 = vpack.c.bf16 %v2701_v59, %v2697_v58 }
 0x471   : > { %5737 = vmatpush1.bf16.msra.mxu1 %v5736_v5  ;;  %5227 = vmatprep.subr.bf16.mxu0 %v5226_v6  ;;  %v2656_v5 = vld [vmem:[%s6701_s24 + $0x1900] sm:$0xff] }
 0x472   : > { %5739 = vmatprep.subr.bf16.mxu1 %v5738_v10  ;;  %v2660_v6 = vld [vmem:[%s6701_s24 + $0x1920] sm:$0xff]  ;;  %v2665_v10 = vld [vmem:[%s6701_s24 + $0x1948] sm:$0xff] }
 0x473   : > { %v5248_v14 = vpack.c.bf16 %v2660_v6, %v2656_v5  ;;  %v2702_v5 = vld [vmem:[%s6701_s24 + $0x1a70] sm:$0xff]  ;;  %v2705_v6 = vld [vmem:[%s6701_s24 + $0x1a88] sm:$0xff] }
 0x474   : > { %5229 = vmatpush1.bf16.msra.mxu0 %v5228_v16  ;;  %v5250_v16 = vpack.c.bf16 %v2669_v11, %v2665_v10  ;;  %v5270_v12 = vpack.c.bf16 %v2709_v7, %v2705_v6 }
 0x475   : > { %5741 = vmatpush1.bf16.msra.mxu1 %v5740_v17  ;;  %5231 = vmatprep.subr.bf16.mxu0 %v5230_v18  ;;  %v2664_v17 = vld [vmem:[%s6701_s24 + $0x1940] sm:$0xff] }
 0x476   : > { %5743 = vmatprep.subr.bf16.mxu1 %v5742_v22  ;;  %v2668_v18 = vld [vmem:[%s6701_s24 + $0x1960] sm:$0xff]  ;;  %v2673_v22 = vld [vmem:[%s6701_s24 + $0x1988] sm:$0xff] }
 0x477   : > { %3322 = vmatmul.mubr.f32.vlgmr.msra.gmra.mrb[0].mxu0 %v1850_v28  ;;  %v5252_v26 = vpack.c.bf16 %v2668_v18, %v2664_v17  ;;  %v2710_v17 = vld [vmem:[%s6701_s24 + $0x1ab0] sm:$0xff]  ;;  %v2713_v18 = vld [vmem:[%s6701_s24 + $0x1ac8] sm:$0xff] }
 0x478   : > { %5233 = vmatpush1.bf16.msra.mxu0 %v5232_v29  ;;  %3890 = vmatmul.mubr.f32.vlgmr.msra.gmra.mrb[0].mxu1 %v1850_v28  ;;  %v5254_v28 = vpack.c.bf16 %v2677_v23, %v2673_v22  ;;  %v2672_v29 = vld [vmem:[%s6701_s24 + $0x1980] sm:$0xff]  ;;  %v5274_v24 = vpack.c.bf16 %v2717_v19, %v2713_v18 }
 0x479   : > { %5745 = vmatpush1.bf16.msra.mxu1 %v5744_v30  ;;  %5235 = vmatprep.subr.bf16.mxu0 %v5234_v31  ;;  %v2676_v30 = vld [vmem:[%s6701_s24 + $0x19a0] sm:$0xff]  ;;  %v2674_v31 = vld [vmem:[%s6701_s24 + $0x1990] sm:$0xff] }
 0x47a   : > { %5747 = vmatprep.subr.bf16.mxu1 %v5746_v35  ;;  %3392 = vmatprep.mubr.f32.mxu0 %v1853_v41  ;;  %v2685_v35 = vld [vmem:[%s6701_s24 + $0x19e8] sm:$0xff]  ;;  %v5256_v38 = vpack.c.bf16 %v2676_v30, %v2672_v29  ;;  %v5768_v39 = vpack.c.bf16 %v2678_v33, %v2674_v31  ;;  %v2718_v29 = vld [vmem:[%s6701_s24 + $0x1af0] sm:$0xff]  ;;  %v2727_v33 = vld [vmem:[%s6701_s24 + $0x1b38] sm:$0xff] }
 0x47b   : > { %3960 = vmatprep.mubr.f32.mxu1 %v1853_v41  ;;  %v5258_v40 = vpack.c.bf16 %v2685_v35, %v2681_v34  ;;  %v2680_v41 = vld [vmem:[%s6701_s24 + $0x19c0] sm:$0xff]  ;;  %v2721_v30 = vld [vmem:[%s6701_s24 + $0x1b08] sm:$0xff] }
 0x47c   : > { %5237 = vmatpush1.bf16.msra.mxu0 %v5236_v42  ;;  %v2684_v42 = vld [vmem:[%s6701_s24 + $0x19e0] sm:$0xff]  ;;  %v2725_v31 = vld [vmem:[%s6701_s24 + $0x1b28] sm:$0xff] }
 0x47d   : > { %5749 = vmatpush1.bf16.msra.mxu1 %v5748_v43  ;;  %5239 = vmatprep.subr.bf16.mxu0 %v5238_v44  ;;  %v2682_v43 = vld [vmem:[%s6701_s24 + $0x19d0] sm:$0xff]  ;;  %v5770_v44 = vpack.c.bf16 %v2687_v37, %v2683_v36  ;;  %v5260_v50 = vpack.c.bf16 %v2684_v42, %v2680_v41  ;;  %v5278_v36 = vpack.c.bf16 %v2725_v31, %v2721_v30  ;;  %v2720_v37 = vld [vmem:[%s6701_s24 + $0x1b00] sm:$0xff]  ;;  %v2729_v42 = vld [vmem:[%s6701_s24 + $0x1b48] sm:$0xff] }
 0x47e   : > { %5751 = vmatprep.subr.bf16.mxu1 %v5750_v48  ;;  %v2691_v48 = vld [vmem:[%s6701_s24 + $0x1a18] sm:$0xff]  ;;  %v5772_v51 = vpack.c.bf16 %v2686_v45, %v2682_v43  ;;  %v2726_v41 = vld [vmem:[%s6701_s24 + $0x1b30] sm:$0xff]  ;;  %v2733_v43 = vld [vmem:[%s6701_s24 + $0x1b68] sm:$0xff] }
 0x47f   : > { %v2735_v45 = vld [vmem:[%s6701_s24 + $0x1b78] sm:$0xff]  ;;  %v1852_v30 = vld [vmem:[#allocation2 + $0x60] sm:$0xff] }
 0x480   : > { %5241 = vmatpush1.bf16.msra.mxu0 %v5240_v54  ;;  %v2692_v54 = vld [vmem:[%s6701_s24 + $0x1a20] sm:$0xff] }
 0x481   : > { %5753 = vmatpush1.bf16.msra.mxu1 %v5752_v55  ;;  %5243 = vmatprep.subr.bf16.mxu0 %v5242_v56  ;;  %v2690_v55 = vld [vmem:[%s6701_s24 + $0x1a10] sm:$0xff]  ;;  %v5774_v56 = vpack.c.bf16 %v2695_v49, %v2691_v48  ;;  %v5264_v62 = vpack.c.bf16 %v2692_v54, %v2688_v53  ;;  %v5282_v48 = vpack.c.bf16 %v2733_v43, %v2729_v42  ;;  %v2728_v49 = vld [vmem:[%s6701_s24 + $0x1b40] sm:$0xff]  ;;  %v2737_v54 = vld [vmem:[%s6701_s24 + $0x1b88] sm:$0xff] }
 0x482   : > { %5755 = vmatprep.subr.bf16.mxu1 %v5754_v60  ;;  %v2699_v60 = vld [vmem:[%s6701_s24 + $0x1a58] sm:$0xff]  ;;  %v5776_v63 = vpack.c.bf16 %v2694_v57, %v2690_v55  ;;  %v2734_v53 = vld [vmem:[%s6701_s24 + $0x1b70] sm:$0xff]  ;;  %v2741_v55 = vld [vmem:[%s6701_s24 + $0x1ba8] sm:$0xff] }
 0x483   : > { %v2743_v57 = vld [vmem:[%s6701_s24 + $0x1bb8] sm:$0xff]  ;;  %v1855_v43 = vld [vmem:[#allocation2 + $0x78] sm:$0xff] }
 0x484   : > { %5245 = vmatpush1.bf16.msra.mxu0 %v5244_v2  ;;  %v2700_v2 = vld [vmem:[%s6701_s24 + $0x1a60] sm:$0xff]  ;;  %v2775_v42 = vld [vmem:[%s6701_s24 + $0x1cb8] sm:$0xff] }
 0x485   : > { %5757 = vmatpush1.bf16.msra.mxu1 %v5756_v3  ;;  %5247 = vmatprep.subr.bf16.mxu0 %v5246_v4  ;;  %v2698_v3 = vld [vmem:[%s6701_s24 + $0x1a50] sm:$0xff]  ;;  %v5778_v4 = vpack.c.bf16 %v2703_v61, %v2699_v60  ;;  %v5268_v10 = vpack.c.bf16 %v2700_v2, %v2696_v1  ;;  %v5286_v60 = vpack.c.bf16 %v2741_v55, %v2737_v54  ;;  %v2736_v61 = vld [vmem:[%s6701_s24 + $0x1b80] sm:$0xff]  ;;  %v2745_v2 = vld [vmem:[%s6701_s24 + $0x1bc8] sm:$0xff] }
 0x486   : > { %5759 = vmatprep.subr.bf16.mxu1 %v5758_v8  ;;  %v2707_v8 = vld [vmem:[%s6701_s24 + $0x1a98] sm:$0xff]  ;;  %v5780_v11 = vpack.c.bf16 %v2702_v5, %v2698_v3  ;;  %v2742_v1 = vld [vmem:[%s6701_s24 + $0x1bb0] sm:$0xff]  ;;  %v2749_v3 = vld [vmem:[%s6701_s24 + $0x1be8] sm:$0xff] }
 0x487   : > { %v2751_v5 = vld [vmem:[%s6701_s24 + $0x1bf8] sm:$0xff] }
 0x488   : > { %5249 = vmatpush1.bf16.msra.mxu0 %v5248_v14  ;;  %v2708_v14 = vld [vmem:[%s6701_s24 + $0x1aa0] sm:$0xff]  ;;  %v2779_v54 = vld [vmem:[%s6701_s24 + $0x1cd8] sm:$0xff] }
 0x489   : > { %5761 = vmatpush1.bf16.msra.mxu1 %v5760_v15  ;;  %5251 = vmatprep.subr.bf16.mxu0 %v5250_v16  ;;  %v2706_v15 = vld [vmem:[%s6701_s24 + $0x1a90] sm:$0xff]  ;;  %v5782_v16 = vpack.c.bf16 %v2711_v9, %v2707_v8  ;;  %v5272_v22 = vpack.c.bf16 %v2708_v14, %v2704_v13  ;;  %v5290_v8 = vpack.c.bf16 %v2749_v3, %v2745_v2  ;;  %v2744_v9 = vld [vmem:[%s6701_s24 + $0x1bc0] sm:$0xff]  ;;  %v2753_v14 = vld [vmem:[%s6701_s24 + $0x1c08] sm:$0xff] }
 0x48a   : > { %5763 = vmatprep.subr.bf16.mxu1 %v5762_v20  ;;  %v2715_v20 = vld [vmem:[%s6701_s24 + $0x1ad8] sm:$0xff]  ;;  %v5784_v23 = vpack.c.bf16 %v2710_v17, %v2706_v15  ;;  %v2750_v13 = vld [vmem:[%s6701_s24 + $0x1bf0] sm:$0xff]  ;;  %v2757_v15 = vld [vmem:[%s6701_s24 + $0x1c28] sm:$0xff] }
 0x48b   : > { %v2759_v17 = vld [vmem:[%s6701_s24 + $0x1c38] sm:$0xff] }
 0x48c   : > { %5253 = vmatpush1.bf16.msra.mxu0 %v5252_v26  ;;  %v2716_v26 = vld [vmem:[%s6701_s24 + $0x1ae0] sm:$0xff]  ;;  %v2783_v55 = vld [vmem:[%s6701_s24 + $0x1cf8] sm:$0xff] }
 0x48d   : > { %5765 = vmatpush1.bf16.msra.mxu1 %v5764_v27  ;;  %5255 = vmatprep.subr.bf16.mxu0 %v5254_v28  ;;  %v2714_v27 = vld [vmem:[%s6701_s24 + $0x1ad0] sm:$0xff]  ;;  %v5786_v28 = vpack.c.bf16 %v2719_v21, %v2715_v20  ;;  %v5276_v34 = vpack.c.bf16 %v2716_v26, %v2712_v25  ;;  %v5294_v20 = vpack.c.bf16 %v2757_v15, %v2753_v14  ;;  %v2752_v21 = vld [vmem:[%s6701_s24 + $0x1c00] sm:$0xff]  ;;  %v2761_v26 = vld [vmem:[%s6701_s24 + $0x1c48] sm:$0xff] }
 0x48e   : > { %5767 = vmatprep.subr.bf16.mxu1 %v5766_v32  ;;  %v2723_v32 = vld [vmem:[%s6701_s24 + $0x1b18] sm:$0xff]  ;;  %v5788_v35 = vpack.c.bf16 %v2718_v29, %v2714_v27  ;;  %v2758_v25 = vld [vmem:[%s6701_s24 + $0x1c30] sm:$0xff]  ;;  %v2765_v27 = vld [vmem:[%s6701_s24 + $0x1c68] sm:$0xff] }
 0x48f   : > { %v2767_v29 = vld [vmem:[%s6701_s24 + $0x1c78] sm:$0xff] }
 0x490   : > { %5257 = vmatpush1.bf16.msra.mxu0 %v5256_v38  ;;  %v2724_v38 = vld [vmem:[%s6701_s24 + $0x1b20] sm:$0xff]  ;;  %v2787_v2 = vld [vmem:[%s6701_s24 + $0x1d18] sm:$0xff] }
 0x491   : > { %5769 = vmatpush1.bf16.msra.mxu1 %v5768_v39  ;;  %5259 = vmatprep.subr.bf16.mxu0 %v5258_v40  ;;  %v2722_v39 = vld [vmem:[%s6701_s24 + $0x1b10] sm:$0xff]  ;;  %v5790_v40 = vpack.c.bf16 %v2727_v33, %v2723_v32  ;;  %v5280_v46 = vpack.c.bf16 %v2724_v38, %v2720_v37  ;;  %v5298_v33 = vpack.c.bf16 %v2765_v27, %v2761_v26  ;;  %v2791_v3 = vld [vmem:[%s6701_s24 + $0x1d38] sm:$0xff] }
 0x492   : > { %5771 = vmatprep.subr.bf16.mxu1 %v5770_v44  ;;  %v2731_v44 = vld [vmem:[%s6701_s24 + $0x1b58] sm:$0xff]  ;;  %v5792_v47 = vpack.c.bf16 %v2726_v41, %v2722_v39  ;;  %v2766_v38 = vld [vmem:[%s6701_s24 + $0x1c70] sm:$0xff]  ;;  %v2769_v39 = vld [vmem:[%s6701_s24 + $0x1c88] sm:$0xff] }
 0x493   : > { %v2771_v41 = vld [vmem:[%s6701_s24 + $0x1c98] sm:$0xff] }
 0x494   : > { %5261 = vmatpush1.bf16.msra.mxu0 %v5260_v50  ;;  %v2732_v50 = vld [vmem:[%s6701_s24 + $0x1b60] sm:$0xff]  ;;  %v2795_v14 = vld [vmem:[%s6701_s24 + $0x1d58] sm:$0xff] }
 0x495   : > { %5773 = vmatpush1.bf16.msra.mxu1 %v5772_v51  ;;  %5263 = vmatprep.subr.bf16.mxu0 %v5262_v52  ;;  %v2730_v51 = vld [vmem:[%s6701_s24 + $0x1b50] sm:$0xff]  ;;  %v5794_v52 = vpack.c.bf16 %v2735_v45, %v2731_v44  ;;  %v5284_v58 = vpack.c.bf16 %v2732_v50, %v2728_v49  ;;  %v5814_v50 = vpack.c.bf16 %v2775_v42, %v2771_v41  ;;  %v2799_v15 = vld [vmem:[%s6701_s24 + $0x1d78] sm:$0xff] }
 0x496   : > { %5775 = vmatprep.subr.bf16.mxu1 %v5774_v56  ;;  %v2739_v56 = vld [vmem:[%s6701_s24 + $0x1b98] sm:$0xff]  ;;  %v5796_v59 = vpack.c.bf16 %v2734_v53, %v2730_v51  ;;  %v2770_v49 = vld [vmem:[%s6701_s24 + $0x1c90] sm:$0xff]  ;;  %v2781_v53 = vld [vmem:[%s6701_s24 + $0x1ce8] sm:$0xff] }
 0x497   : > { %v2774_v51 = vld [vmem:[%s6701_s24 + $0x1cb0] sm:$0xff]  ;;  %v2803_v26 = vld [vmem:[%s6701_s24 + $0x1d98] sm:$0xff] }
 0x498   : > { %5265 = vmatpush1.bf16.msra.mxu0 %v5264_v62  ;;  %v2740_v62 = vld [vmem:[%s6701_s24 + $0x1ba0] sm:$0xff]  ;;  %v2807_v27 = vld [vmem:[%s6701_s24 + $0x1db8] sm:$0xff] }
 0x499   : > { %5777 = vmatpush1.bf16.msra.mxu1 %v5776_v63  ;;  %5267 = vmatprep.subr.bf16.mxu0 %v5266_v0  ;;  %v2738_v63 = vld [vmem:[%s6701_s24 + $0x1b90] sm:$0xff]  ;;  %v5798_v0 = vpack.c.bf16 %v2743_v57, %v2739_v56  ;;  %v5288_v6 = vpack.c.bf16 %v2740_v62, %v2736_v61  ;;  %v5816_v57 = vpack.c.bf16 %v2774_v51, %v2770_v49  ;;  %v2821_v49 = vld [vmem:[%s6701_s24 + $0x1e28] sm:$0xff]  ;;  %v2823_v51 = vld [vmem:[%s6701_s24 + $0x1e38] sm:$0xff] }
 0x49a   : > { %5779 = vmatprep.subr.bf16.mxu1 %v5778_v4  ;;  %v2747_v4 = vld [vmem:[%s6701_s24 + $0x1bd8] sm:$0xff]  ;;  %v5800_v7 = vpack.c.bf16 %v2742_v1, %v2738_v63  ;;  %v2778_v61 = vld [vmem:[%s6701_s24 + $0x1cd0] sm:$0xff]  ;;  %v5818_v62 = vpack.c.bf16 %v2783_v55, %v2779_v54  ;;  %v2789_v1 = vld [vmem:[%s6701_s24 + $0x1d28] sm:$0xff] }
 0x49b   : > { %v2782_v63 = vld [vmem:[%s6701_s24 + $0x1cf0] sm:$0xff]  ;;  %v2816_v55 = vld [vmem:[%s6701_s24 + $0x1e00] sm:$0xff] }
 0x49c   : > { %5269 = vmatpush1.bf16.msra.mxu0 %v5268_v10  ;;  %v2748_v10 = vld [vmem:[%s6701_s24 + $0x1be0] sm:$0xff] }
 0x49d   : > { %5781 = vmatpush1.bf16.msra.mxu1 %v5780_v11  ;;  %5271 = vmatprep.subr.bf16.mxu0 %v5270_v12  ;;  %v2746_v11 = vld [vmem:[%s6701_s24 + $0x1bd0] sm:$0xff]  ;;  %v5802_v12 = vpack.c.bf16 %v2751_v5, %v2747_v4  ;;  %v5292_v18 = vpack.c.bf16 %v2748_v10, %v2744_v9  ;;  %v5820_v5 = vpack.c.bf16 %v2782_v63, %v2778_v61  ;;  %v2829_v61 = vld [vmem:[%s6701_s24 + $0x1e68] sm:$0xff]  ;;  %v2831_v63 = vld [vmem:[%s6701_s24 + $0x1e78] sm:$0xff] }
 0x49e   : > { %5783 = vmatprep.subr.bf16.mxu1 %v5782_v16  ;;  %v2755_v16 = vld [vmem:[%s6701_s24 + $0x1c18] sm:$0xff]  ;;  %v5804_v19 = vpack.c.bf16 %v2750_v13, %v2746_v11  ;;  %v2786_v9 = vld [vmem:[%s6701_s24 + $0x1d10] sm:$0xff]  ;;  %v5822_v10 = vpack.c.bf16 %v2791_v3, %v2787_v2  ;;  %v2797_v13 = vld [vmem:[%s6701_s24 + $0x1d68] sm:$0xff] }
 0x49f   : > { %v2790_v11 = vld [vmem:[%s6701_s24 + $0x1d30] sm:$0xff]  ;;  %v2824_v3 = vld [vmem:[%s6701_s24 + $0x1e40] sm:$0xff] }
 0x4a0   : > { %5273 = vmatpush1.bf16.msra.mxu0 %v5272_v22  ;;  %v2756_v22 = vld [vmem:[%s6701_s24 + $0x1c20] sm:$0xff] }
 0x4a1   : > { %5785 = vmatpush1.bf16.msra.mxu1 %v5784_v23  ;;  %5275 = vmatprep.subr.bf16.mxu0 %v5274_v24  ;;  %v2754_v23 = vld [vmem:[%s6701_s24 + $0x1c10] sm:$0xff]  ;;  %v5806_v24 = vpack.c.bf16 %v2759_v17, %v2755_v16  ;;  %v5296_v31 = vpack.c.bf16 %v2756_v22, %v2752_v21  ;;  %v5824_v17 = vpack.c.bf16 %v2790_v11, %v2786_v9  ;;  %v2837_v9 = vld [vmem:[%s6701_s24 + $0x1ea8] sm:$0xff]  ;;  %v2839_v11 = vld [vmem:[%s6701_s24 + $0x1eb8] sm:$0xff] }
 0x4a2   : > { %5787 = vmatprep.subr.bf16.mxu1 %v5786_v28  ;;  %v2763_v28 = vld [vmem:[%s6701_s24 + $0x1c58] sm:$0xff]  ;;  %v5808_v32 = vpack.c.bf16 %v2758_v25, %v2754_v23  ;;  %v2794_v21 = vld [vmem:[%s6701_s24 + $0x1d50] sm:$0xff]  ;;  %v5826_v22 = vpack.c.bf16 %v2799_v15, %v2795_v14  ;;  %v2805_v25 = vld [vmem:[%s6701_s24 + $0x1da8] sm:$0xff] }
 0x4a3   : > { %v5810_v37 = vpack.c.bf16 %v2767_v29, %v2763_v28  ;;  %v2798_v23 = vld [vmem:[%s6701_s24 + $0x1d70] sm:$0xff]  ;;  %v2832_v15 = vld [vmem:[%s6701_s24 + $0x1e80] sm:$0xff] }
 0x4a4   : > { %5277 = vmatpush1.bf16.msra.mxu0 %v5276_v34  ;;  %v2760_v34 = vld [vmem:[%s6701_s24 + $0x1c40] sm:$0xff]  ;;  %v5828_v29 = vpack.c.bf16 %v2798_v23, %v2794_v21  ;;  %v2845_v21 = vld [vmem:[%s6701_s24 + $0x1ee8] sm:$0xff]  ;;  %v2847_v23 = vld [vmem:[%s6701_s24 + $0x1ef8] sm:$0xff] }
 0x4a5   : > { %5789 = vmatpush1.bf16.msra.mxu1 %v5788_v35  ;;  %5279 = vmatprep.subr.bf16.mxu0 %v5278_v36  ;;  %v2764_v35 = vld [vmem:[%s6701_s24 + $0x1c60] sm:$0xff]  ;;  %v2762_v36 = vld [vmem:[%s6701_s24 + $0x1c50] sm:$0xff] }
 0x4a6   : > { %5791 = vmatprep.subr.bf16.mxu1 %v5790_v40  ;;  %v2773_v40 = vld [vmem:[%s6701_s24 + $0x1ca8] sm:$0xff]  ;;  %v5300_v44 = vpack.c.bf16 %v2764_v35, %v2760_v34  ;;  %v5812_v45 = vpack.c.bf16 %v2766_v38, %v2762_v36  ;;  %v5830_v34 = vpack.c.bf16 %v2807_v27, %v2803_v26  ;;  %v2806_v35 = vld [vmem:[%s6701_s24 + $0x1db0] sm:$0xff]  ;;  %v2811_v38 = vld [vmem:[%s6701_s24 + $0x1dd8] sm:$0xff] }
 0x4a7   : > { %v2809_v36 = vld [vmem:[%s6701_s24 + $0x1dc8] sm:$0xff]  ;;  %v2840_v27 = vld [vmem:[%s6701_s24 + $0x1ec0] sm:$0xff] }
 0x4a8   : > { %5281 = vmatpush1.bf16.msra.mxu0 %v5280_v46  ;;  %v5302_v46 = vpack.c.bf16 %v2773_v40, %v2769_v39  ;;  %v2815_v39 = vld [vmem:[%s6701_s24 + $0x1df8] sm:$0xff] }
 0x4a9   : > { %5793 = vmatpush1.bf16.msra.mxu1 %v5792_v47  ;;  %5283 = vmatprep.subr.bf16.mxu0 %v5282_v48  ;;  %v2768_v47 = vld [vmem:[%s6701_s24 + $0x1c80] sm:$0xff] }
 0x4aa   : > { %5795 = vmatprep.subr.bf16.mxu1 %v5794_v52  ;;  %v2772_v48 = vld [vmem:[%s6701_s24 + $0x1ca0] sm:$0xff]  ;;  %v2777_v52 = vld [vmem:[%s6701_s24 + $0x1cc8] sm:$0xff] }
 0x4ab   : > { %v5304_v56 = vpack.c.bf16 %v2772_v48, %v2768_v47  ;;  %v2814_v47 = vld [vmem:[%s6701_s24 + $0x1df0] sm:$0xff]  ;;  %v2817_v48 = vld [vmem:[%s6701_s24 + $0x1e08] sm:$0xff] }
 0x4ac   : > { %5285 = vmatpush1.bf16.msra.mxu0 %v5284_v58  ;;  %v5306_v58 = vpack.c.bf16 %v2781_v53, %v2777_v52  ;;  %v5326_v54 = vpack.c.bf16 %v2821_v49, %v2817_v48 }
 0x4ad   : > { %5797 = vmatpush1.bf16.msra.mxu1 %v5796_v59  ;;  %5287 = vmatprep.subr.bf16.mxu0 %v5286_v60  ;;  %v2776_v59 = vld [vmem:[%s6701_s24 + $0x1cc0] sm:$0xff] }
 0x4ae   : > { %5799 = vmatprep.subr.bf16.mxu1 %v5798_v0  ;;  %v2780_v60 = vld [vmem:[%s6701_s24 + $0x1ce0] sm:$0xff]  ;;  %v2785_v0 = vld [vmem:[%s6701_s24 + $0x1d08] sm:$0xff] }
 0x4af   : > { %v5308_v4 = vpack.c.bf16 %v2780_v60, %v2776_v59  ;;  %v2822_v59 = vld [vmem:[%s6701_s24 + $0x1e30] sm:$0xff]  ;;  %v2825_v60 = vld [vmem:[%s6701_s24 + $0x1e48] sm:$0xff] }
 0x4b0   : > { %5289 = vmatpush1.bf16.msra.mxu0 %v5288_v6  ;;  %v5310_v6 = vpack.c.bf16 %v2789_v1, %v2785_v0  ;;  %v5330_v2 = vpack.c.bf16 %v2829_v61, %v2825_v60 }
 0x4b1   : > { %5801 = vmatpush1.bf16.msra.mxu1 %v5800_v7  ;;  %5291 = vmatprep.subr.bf16.mxu0 %v5290_v8  ;;  %v2784_v7 = vld [vmem:[%s6701_s24 + $0x1d00] sm:$0xff] }
 0x4b2   : > { %5803 = vmatprep.subr.bf16.mxu1 %v5802_v12  ;;  %v2788_v8 = vld [vmem:[%s6701_s24 + $0x1d20] sm:$0xff]  ;;  %v2793_v12 = vld [vmem:[%s6701_s24 + $0x1d48] sm:$0xff] }
 0x4b3   : > { %v5312_v16 = vpack.c.bf16 %v2788_v8, %v2784_v7  ;;  %v2830_v7 = vld [vmem:[%s6701_s24 + $0x1e70] sm:$0xff]  ;;  %v2833_v8 = vld [vmem:[%s6701_s24 + $0x1e88] sm:$0xff] }
 0x4b4   : > { %5293 = vmatpush1.bf16.msra.mxu0 %v5292_v18  ;;  %v5314_v18 = vpack.c.bf16 %v2797_v13, %v2793_v12  ;;  %v5334_v14 = vpack.c.bf16 %v2837_v9, %v2833_v8 }
 0x4b5   : > { %5805 = vmatpush1.bf16.msra.mxu1 %v5804_v19  ;;  %5295 = vmatprep.subr.bf16.mxu0 %v5294_v20  ;;  %v2792_v19 = vld [vmem:[%s6701_s24 + $0x1d40] sm:$0xff] }
 0x4b6   : > { %5807 = vmatprep.subr.bf16.mxu1 %v5806_v24  ;;  %v2796_v20 = vld [vmem:[%s6701_s24 + $0x1d60] sm:$0xff]  ;;  %v2801_v24 = vld [vmem:[%s6701_s24 + $0x1d88] sm:$0xff] }
 0x4b7   : > { %3393 = vmatmul.mubr.f32.vlgmr.msra.gmra.mrb[0].mxu0 %v1852_v30  ;;  %v5316_v28 = vpack.c.bf16 %v2796_v20, %v2792_v19  ;;  %v2838_v19 = vld [vmem:[%s6701_s24 + $0x1eb0] sm:$0xff]  ;;  %v2841_v20 = vld [vmem:[%s6701_s24 + $0x1ec8] sm:$0xff] }
 0x4b8   : > { %5297 = vmatpush1.bf16.msra.mxu0 %v5296_v31  ;;  %3961 = vmatmul.mubr.f32.vlgmr.msra.gmra.mrb[0].mxu1 %v1852_v30  ;;  %v5318_v30 = vpack.c.bf16 %v2805_v25, %v2801_v24  ;;  %v2800_v31 = vld [vmem:[%s6701_s24 + $0x1d80] sm:$0xff]  ;;  %v5338_v26 = vpack.c.bf16 %v2845_v21, %v2841_v20 }
 0x4b9   : > { %5809 = vmatpush1.bf16.msra.mxu1 %v5808_v32  ;;  %5299 = vmatprep.subr.bf16.mxu0 %v5298_v33  ;;  %v2804_v32 = vld [vmem:[%s6701_s24 + $0x1da0] sm:$0xff]  ;;  %v2802_v33 = vld [vmem:[%s6701_s24 + $0x1d90] sm:$0xff] }
 0x4ba   : > { %5811 = vmatprep.subr.bf16.mxu1 %v5810_v37  ;;  %3463 = vmatprep.mubr.f32.mxu0 %v1855_v43  ;;  %v2813_v37 = vld [vmem:[%s6701_s24 + $0x1de8] sm:$0xff]  ;;  %v5320_v40 = vpack.c.bf16 %v2804_v32, %v2800_v31  ;;  %v5832_v41 = vpack.c.bf16 %v2806_v35, %v2802_v33  ;;  %v2846_v31 = vld [vmem:[%s6701_s24 + $0x1ef0] sm:$0xff]  ;;  %v2855_v35 = vld [vmem:[%s6701_s24 + $0x1f38] sm:$0xff] }
 0x4bb   : > { %4031 = vmatprep.mubr.f32.mxu1 %v1855_v43  ;;  %v5322_v42 = vpack.c.bf16 %v2813_v37, %v2809_v36  ;;  %v2808_v43 = vld [vmem:[%s6701_s24 + $0x1dc0] sm:$0xff]  ;;  %v2849_v32 = vld [vmem:[%s6701_s24 + $0x1f08] sm:$0xff] }
 0x4bc   : > { %5301 = vmatpush1.bf16.msra.mxu0 %v5300_v44  ;;  %v2812_v44 = vld [vmem:[%s6701_s24 + $0x1de0] sm:$0xff]  ;;  %v2853_v33 = vld [vmem:[%s6701_s24 + $0x1f28] sm:$0xff] }
 0x4bd   : > { %5813 = vmatpush1.bf16.msra.mxu1 %v5812_v45  ;;  %5303 = vmatprep.subr.bf16.mxu0 %v5302_v46  ;;  %v2810_v45 = vld [vmem:[%s6701_s24 + $0x1dd0] sm:$0xff]  ;;  %v5834_v46 = vpack.c.bf16 %v2815_v39, %v2811_v38  ;;  %v5324_v52 = vpack.c.bf16 %v2812_v44, %v2808_v43  ;;  %v5342_v38 = vpack.c.bf16 %v2853_v33, %v2849_v32  ;;  %v2848_v39 = vld [vmem:[%s6701_s24 + $0x1f00] sm:$0xff]  ;;  %v2857_v44 = vld [vmem:[%s6701_s24 + $0x1f48] sm:$0xff] }
 0x4be   : > { %5815 = vmatprep.subr.bf16.mxu1 %v5814_v50  ;;  %v2819_v50 = vld [vmem:[%s6701_s24 + $0x1e18] sm:$0xff]  ;;  %v5836_v53 = vpack.c.bf16 %v2814_v47, %v2810_v45  ;;  %v2854_v43 = vld [vmem:[%s6701_s24 + $0x1f30] sm:$0xff]  ;;  %v2861_v45 = vld [vmem:[%s6701_s24 + $0x1f68] sm:$0xff] }
 0x4bf   : > { %v2863_v47 = vld [vmem:[%s6701_s24 + $0x1f78] sm:$0xff] }
 0x4c0   : > { %5305 = vmatpush1.bf16.msra.mxu0 %v5304_v56  ;;  %v2820_v56 = vld [vmem:[%s6701_s24 + $0x1e20] sm:$0xff] }
 0x4c1   : > { %5817 = vmatpush1.bf16.msra.mxu1 %v5816_v57  ;;  %5307 = vmatprep.subr.bf16.mxu0 %v5306_v58  ;;  %v2818_v57 = vld [vmem:[%s6701_s24 + $0x1e10] sm:$0xff]  ;;  %v5838_v58 = vpack.c.bf16 %v2823_v51, %v2819_v50  ;;  %v5328_v0 = vpack.c.bf16 %v2820_v56, %v2816_v55  ;;  %v5346_v50 = vpack.c.bf16 %v2861_v45, %v2857_v44  ;;  %v2856_v51 = vld [vmem:[%s6701_s24 + $0x1f40] sm:$0xff]  ;;  %v2865_v56 = vld [vmem:[%s6701_s24 + $0x1f88] sm:$0xff] }
 0x4c2   : > { %5819 = vmatprep.subr.bf16.mxu1 %v5818_v62  ;;  %v2827_v62 = vld [vmem:[%s6701_s24 + $0x1e58] sm:$0xff]  ;;  %v5840_v1 = vpack.c.bf16 %v2822_v59, %v2818_v57  ;;  %v2862_v55 = vld [vmem:[%s6701_s24 + $0x1f70] sm:$0xff]  ;;  %v2869_v57 = vld [vmem:[%s6701_s24 + $0x1fa8] sm:$0xff] }
 0x4c3   : > { %v2871_v59 = vld [vmem:[%s6701_s24 + $0x1fb8] sm:$0xff] }
 0x4c4   : > { %5309 = vmatpush1.bf16.msra.mxu0 %v5308_v4  ;;  %v2828_v4 = vld [vmem:[%s6701_s24 + $0x1e60] sm:$0xff] }
 0x4c5   : > { %5821 = vmatpush1.bf16.msra.mxu1 %v5820_v5  ;;  %5311 = vmatprep.subr.bf16.mxu0 %v5310_v6  ;;  %v2826_v5 = vld [vmem:[%s6701_s24 + $0x1e50] sm:$0xff]  ;;  %v5842_v6 = vpack.c.bf16 %v2831_v63, %v2827_v62  ;;  %v5332_v12 = vpack.c.bf16 %v2828_v4, %v2824_v3  ;;  %v5350_v62 = vpack.c.bf16 %v2869_v57, %v2865_v56  ;;  %v2864_v63 = vld [vmem:[%s6701_s24 + $0x1f80] sm:$0xff]  ;;  %v2873_v4 = vld [vmem:[%s6701_s24 + $0x1fc8] sm:$0xff] }
 0x4c6   : > { %5823 = vmatprep.subr.bf16.mxu1 %v5822_v10  ;;  %v2835_v10 = vld [vmem:[%s6701_s24 + $0x1e98] sm:$0xff]  ;;  %v5844_v13 = vpack.c.bf16 %v2830_v7, %v2826_v5  ;;  %v2870_v3 = vld [vmem:[%s6701_s24 + $0x1fb0] sm:$0xff]  ;;  %v2877_v5 = vld [vmem:[%s6701_s24 + $0x1fe8] sm:$0xff] }
 0x4c7   : > { %v2879_v7 = vld [vmem:[%s6701_s24 + $0x1ff8] sm:$0xff] }
 0x4c8   : > { %5313 = vmatpush1.bf16.msra.mxu0 %v5312_v16  ;;  %v2836_v16 = vld [vmem:[%s6701_s24 + $0x1ea0] sm:$0xff] }
 0x4c9   : > { %5825 = vmatpush1.bf16.msra.mxu1 %v5824_v17  ;;  %5315 = vmatprep.subr.bf16.mxu0 %v5314_v18  ;;  %v2834_v17 = vld [vmem:[%s6701_s24 + $0x1e90] sm:$0xff]  ;;  %v5846_v18 = vpack.c.bf16 %v2839_v11, %v2835_v10  ;;  %v5336_v24 = vpack.c.bf16 %v2836_v16, %v2832_v15  ;;  %v5354_v10 = vpack.c.bf16 %v2877_v5, %v2873_v4  ;;  %v2872_v11 = vld [vmem:[%s6701_s24 + $0x1fc0] sm:$0xff] }
 0x4ca   : > { %5827 = vmatprep.subr.bf16.mxu1 %v5826_v22  ;;  %v2843_v22 = vld [vmem:[%s6701_s24 + $0x1ed8] sm:$0xff]  ;;  %v5848_v25 = vpack.c.bf16 %v2838_v19, %v2834_v17  ;;  %v2878_v15 = vld [vmem:[%s6701_s24 + $0x1ff0] sm:$0xff]  ;;  %v2882_v19 = vlaneseq }
 0x4cc   : > { %5317 = vmatpush1.bf16.msra.mxu0 %v5316_v28  ;;  %v2844_v28 = vld [vmem:[%s6701_s24 + $0x1ee0] sm:$0xff]  ;;  %v2883_v20 = vshrl.u32 %v2882_v19, 7 }
 0x4cd   : > { %5829 = vmatpush1.bf16.msra.mxu1 %v5828_v29  ;;  %5319 = vmatprep.subr.bf16.mxu0 %v5318_v30  ;;  %v2842_v29 = vld [vmem:[%s6701_s24 + $0x1ed0] sm:$0xff]  ;;  %v5850_v30 = vpack.c.bf16 %v2847_v23, %v2843_v22  ;;  %v5340_v36 = vpack.c.bf16 %v2844_v28, %v2840_v27  ;;  %v2880_v22 = vld [vmem:[%s424_s0] sm:$0xf]  ;;  %v4043_v27 = vld [vmem:[%s433_s20] sm:$0xf] }
 0x4ce   : > { %5831 = vmatprep.subr.bf16.mxu1 %v5830_v34  ;;  %v2851_v34 = vld [vmem:[%s6701_s24 + $0x1f18] sm:$0xff]  ;;  %v5852_v37 = vpack.c.bf16 %v2846_v31, %v2842_v29  ;;  %v2884_v21 = vsub.s32 0, %v2883_v20  ;;  %v2892_v23 = vsub.s32 2, %v2883_v20 }
 0x4d0   : > { %5321 = vmatpush1.bf16.msra.mxu0 %v5320_v40  ;;  %v2852_v40 = vld [vmem:[%s6701_s24 + $0x1f20] sm:$0xff]  ;;  %v2893_v28 = vrot.slane %v2880_v22, %v2892_v23  ;;  %v4048_v33 = vrot.slane %v4043_v27, %v2884_v21 }
 0x4d1   : > { %5833 = vmatpush1.bf16.msra.mxu1 %v5832_v41  ;;  %5323 = vmatprep.subr.bf16.mxu0 %v5322_v42  ;;  %v2850_v41 = vld [vmem:[%s6701_s24 + $0x1f10] sm:$0xff]  ;;  %v5854_v42 = vpack.c.bf16 %v2855_v35, %v2851_v34  ;;  %v5344_v48 = vpack.c.bf16 %v2852_v40, %v2848_v39 }
 0x4d2   : > { %5835 = vmatprep.subr.bf16.mxu1 %v5834_v46  ;;  %v2859_v46 = vld [vmem:[%s6701_s24 + $0x1f58] sm:$0xff]  ;;  %v5856_v49 = vpack.c.bf16 %v2854_v43, %v2850_v41  ;;  %v4056_v43 = vrot.slane %v4043_v27, %v2892_v23 }
 0x4d4   : > { %5325 = vmatpush1.bf16.msra.mxu0 %v5324_v52  ;;  %v2860_v52 = vld [vmem:[%s6701_s24 + $0x1f60] sm:$0xff] }
 0x4d5   : > { %5837 = vmatpush1.bf16.msra.mxu1 %v5836_v53  ;;  %5327 = vmatprep.subr.bf16.mxu0 %v5326_v54  ;;  %v2858_v53 = vld [vmem:[%s6701_s24 + $0x1f50] sm:$0xff]  ;;  %v5858_v54 = vpack.c.bf16 %v2863_v47, %v2859_v46  ;;  %v5348_v60 = vpack.c.bf16 %v2860_v52, %v2856_v51 }
 0x4d6   : > { %5839 = vmatprep.subr.bf16.mxu1 %v5838_v58  ;;  %v2867_v58 = vld [vmem:[%s6701_s24 + $0x1f98] sm:$0xff]  ;;  %v5860_v61 = vpack.c.bf16 %v2862_v55, %v2858_v53 }
 0x4d8   : > { %5329 = vmatpush1.bf16.msra.mxu0 %v5328_v0  ;;  %v2868_v0 = vld [vmem:[%s6701_s24 + $0x1fa0] sm:$0xff] }
 0x4d9   : > { %5841 = vmatpush1.bf16.msra.mxu1 %v5840_v1  ;;  %5331 = vmatprep.subr.bf16.mxu0 %v5330_v2  ;;  %v2866_v1 = vld [vmem:[%s6701_s24 + $0x1f90] sm:$0xff]  ;;  %v5862_v2 = vpack.c.bf16 %v2871_v59, %v2867_v58  ;;  %v5352_v8 = vpack.c.bf16 %v2868_v0, %v2864_v63 }
 0x4da   : > { %5843 = vmatprep.subr.bf16.mxu1 %v5842_v6  ;;  %v2875_v6 = vld [vmem:[%s6701_s24 + $0x1fd8] sm:$0xff]  ;;  %v5864_v9 = vpack.c.bf16 %v2870_v3, %v2866_v1 }
 0x4dc   : > { %5333 = vmatpush1.bf16.msra.mxu0 %v5332_v12  ;;  %v2876_v12 = vld [vmem:[%s6701_s24 + $0x1fe0] sm:$0xff] }
 0x4dd   : > { %5845 = vmatpush1.bf16.msra.mxu1 %v5844_v13  ;;  %5335 = vmatprep.subr.bf16.mxu0 %v5334_v14  ;;  %v5866_v13 = vpack.c.bf16 %v2879_v7, %v2875_v6  ;;  %v2874_v14 = vld [vmem:[%s6701_s24 + $0x1fd0] sm:$0xff]  ;;  %v5356_v16 = vpack.c.bf16 %v2876_v12, %v2872_v11 }
 0x4de   : > { %5847 = vmatprep.subr.bf16.mxu1 %v5846_v18  ;;  %v5868_v17 = vpack.c.bf16 %v2878_v15, %v2874_v14  ;;  %v1854_v18 = vld [vmem:[#allocation2 + $0x70] sm:$0xff] }
 0x4e0   : > { %5337 = vmatpush1.bf16.msra.mxu0 %v5336_v24  ;;  %v2888_v24 = vsub.s32 1, %v2883_v20 }
 0x4e1   : > { %5849 = vmatpush1.bf16.msra.mxu1 %v5848_v25  ;;  %5339 = vmatprep.subr.bf16.mxu0 %v5338_v26  ;;  %v2896_v25 = vsub.s32 3, %v2883_v20  ;;  %v2885_v26 = vrot.slane %v2880_v22, %v2884_v21 }
 0x4e2   : > { %5851 = vmatprep.subr.bf16.mxu1 %v5850_v30  ;;  %v2889_v29 = vrot.slane %v2880_v22, %v2888_v24 }
 0x4e3   : > { %v2897_v30 = vrot.slane %v2880_v22, %v2896_v25 }
 0x4e4   : > { %5341 = vmatpush1.bf16.msra.mxu0 %v5340_v36 }
 0x4e5   : > { %5853 = vmatpush1.bf16.msra.mxu1 %v5852_v37  ;;  %5343 = vmatprep.subr.bf16.mxu0 %v5342_v38  ;;  %v4052_v38 = vrot.slane %v4043_v27, %v2888_v24 }
 0x4e6   : > { %5855 = vmatprep.subr.bf16.mxu1 %v5854_v42 }
 0x4e8   : > { %5345 = vmatpush1.bf16.msra.mxu0 %v5344_v48  ;;  %v4060_v48 = vrot.slane %v4043_v27, %v2896_v25 }
 0x4e9   : > { %5857 = vmatpush1.bf16.msra.mxu1 %v5856_v49  ;;  %5347 = vmatprep.subr.bf16.mxu0 %v5346_v50 }
 0x4ea   : > { %5859 = vmatprep.subr.bf16.mxu1 %v5858_v54  ;;  %v4042_v54 = vld [vmem:[#allocation3] sm:$0xff] }
 0x4ec   : > { %5349 = vmatpush1.bf16.msra.mxu0 %v5348_v60 }
 0x4ed   : > { %5861 = vmatpush1.bf16.msra.mxu1 %v5860_v61  ;;  %5351 = vmatprep.subr.bf16.mxu0 %v5350_v62 }
 0x4ee   : > { %5863 = vmatprep.subr.bf16.mxu1 %v5862_v2 }
 0x4f0   : > { %5353 = vmatpush1.bf16.msra.mxu0 %v5352_v8 }
 0x4f1   : > { %5865 = vmatpush1.bf16.msra.mxu1 %v5864_v9  ;;  %5355 = vmatprep.subr.bf16.mxu0 %v5354_v10 }
 0x4f2   : > { %5867 = vmatprep.subr.bf16.mxu1 %v5866_v13 }
 0x4f4   : > { %5357 = vmatpush1.bf16.msra.mxu0 %v5356_v16 }
 0x4f5   : > { %5869 = vmatpush1.bf16.msra.mxu1 %v5868_v17 }
 0x4f7   : > { %3464 = vmatmul.mubr.f32.vlgmr.msra.gmra.mrb[0].mxu0 %v1854_v18 }
 0x4f8   : > { %4032 = vmatmul.mubr.f32.vlgmr.msra.gmra.mrb[0].mxu1 %v1854_v18 }
 0x5ca   : > { %v3465_v31 = vpop.f32.mrb[0].mxu0 }
 0x5cb   : > { %v5890_v32 = vadd.f32 %v3465_v31, %v2885_v26  ;;  %v4033_v34 = vpop.f32.mrb[0].mxu1  ;;  %v3467_v35 = vpop.f32.mrb[1].mxu0 }
 0x5cc   : > { %v5892_v36 = vadd.f32 %v4033_v34, %v2893_v28  ;;  %v5891_v37 = vadd.f32 %v3467_v35, %v2889_v29  ;;  %v4035_v39 = vpop.f32.mrb[1].mxu1 }
 0x5cd   : > { %v4038_v40 = vmax.f32 %v5890_v32, 0.0  ;;  %v5893_v41 = vadd.f32 %v4035_v39, %v2897_v30 }
 0x5ce   : > { %v4040_v42 = vmax.f32 %v5892_v36, 0.0  ;;  %v4039_v44 = vmax.f32 %v5891_v37, 0.0 }
 0x5cf   : > { %v4065_v45 = vmul.f32 %v4048_v33, %v4038_v40  ;;  %v4041_v47 = vmax.f32 %v5893_v41, 0.0 }
 0x5d0   : > { %v4066_v46 = vmul.f32 %v4052_v38, %v4039_v44  ;;  %v4067_v49 = vmul.f32 %v4056_v43, %v4040_v42 }
 0x5d1   : > { %v4068_v51 = vmul.f32 %v4060_v48, %v4041_v47 }
 0x5d2   : > { %v4069_v50 = vadd.f32 %v4066_v46, %v4065_v45 }
 0x5d4   : > { %v4070_v52 = vadd.f32 %v4069_v50, %v4067_v49 }
 0x5d6   : > { %v4071_v53 = vadd.f32 %v4070_v52, %v4068_v51 }
 0x5d8   : > { %4072 = vadd.xlane.f32.xlu0 %v4071_v53 }
 0x665   : > { %v4073_v55 = vpop.xlane.xlu0 %4072 }
 0x666   : > { %v4074_v56 = vadd.f32 %v4073_v55, %v4042_v54 }
 0x668   : > { %4076 = vst.msk [vmem:[#allocation3] sm:$0xff] %vm4075_vm1, %v4074_v56 }
 0x669 PF: > { %s8476_s24 = sld [smem:[#allocation19_spill]] }
 0x66f   : > { %p4077_p7 = scmp.eq.s32.totalorder %s8476_s24, 3 }
 0x671   : > { %p4078_p1 = pnand %p4077_p7, %p1836_p5 }
 0x672   : > { %v4082_v57 = vld [vmem:[#allocation3] sm:$0xff] (!%p4078_p1)  ;;  %v4262_v58 = vld [vmem:[#allocation4] ss:$0 sm:$0xff] (!%p4078_p1)  ;;  %vm4091_vm2 = vcmask (!%p4078_p1), 7168   ;;  %s8478_s18 = sld [smem:[#allocation32_spill]] (!%p4078_p1) }
 0x673   : > { %4081 = sbr.rel (%p4078_p1) target bundleno = 1658 (0x67a), region = 84  ;;  %v4090_v59 = vadd.f32 (!%p4078_p1), %v4262_v58, %v4082_v57 }
 0x678   : > { %4092 = vst.msk [vmem:[%s8478_s18] sm:$0xff] (!%p4078_p1), %vm4091_vm2, %v4090_v59 }
 0x67a PF: > { %s28_s12 = sadd.s32 1, %s6296_s12   ;;  %s8479_s9 = sld [smem:[#allocation17_spill]] }
 0x67b   : > { %p25_p9 = scmp.ge.s32.totalorder %s28_s12, 10   ;;  %s8480_s28 = sld [smem:[#allocation28_spill]] }
 0x67c   : > { %s8481_s13 = sld [smem:[#allocation18_spill]]  ;;  %s8482_s8 = sld [smem:[#allocation26_spill]] }
 0x67d   : > { %s8483_s6 = sld [smem:[#allocation21_spill]]  ;;  %s8484_s25 = sld [smem:[#allocation22_spill]] }
 0x67e   : > { %s8485_s10 = sld [smem:[#allocation23_spill]]  ;;  %s8486_s11 = sld [smem:[#allocation24_spill]] }
 0x67f   : > { %s8487_s26 = smov %s6260_s27  ;;  %s8489_s29 = smov %s6272_s30 }
 0x680   : > { %s8488_s27 = smov %s8479_s9  ;;  %27 = sbr.rel (!%p25_p9) target bundleno = 16 (0x10), region = 149 }
 0x682   : > { %s8490_s30 = smov %s8481_s13 }
 0x683   : > { %s8491_s9 = smov %s8484_s25 }
 0x687   :  { %4104 = vsyncpa [#allocation6], 1 }
 0x688   :  { %4106 = vsyncpa [#allocation6 + $0x1], 1 }
 0x689   :  { %4107 = vsyncpa [#allocation8], 1 }
 0x68a   :  { %4109 = vsyncpa [#allocation8 + $0x1], 1 }
 0x68b   :  { %4110 = vsyncpa [#allocation11], 1 }
 0x68c   :  { %4112 = vsyncpa [#allocation11 + $0x1], 1 }

</bundles_post_ra>
